<compile_context>
chip_gen: v7x
topology: tpu7x:2x2x1
jax: 0.10.0
libtpu: 0.0.40
codegen_flags: <defaults>
</compile_context>

<pallas_src>
import math
import functools

import jax
import jax.numpy as jnp
from jax import lax
from jax.experimental import pallas as pl
from jax.experimental.pallas import tpu as pltpu

EPS = 1e-5  # PyTorch GroupNorm default

_COMPILER_PARAMS = pltpu.CompilerParams(
    dimension_semantics=("parallel",),          # batch axis -> megacore parallel
    vmem_limit_bytes=64 * 1024 * 1024,
)


# ----------------------------------------------------------------------------
# In-kernel helpers (trace-time Python; operate on values + scratch refs)
# ----------------------------------------------------------------------------
def _group_norm(x, gamma, beta, gmap, hw):
    """GroupNorm over a channels-last (HW, C) tile.

    gamma, beta : (1, C) ;  gmap : (C, G) one-hot group membership (f32).
    Single-pass stats (var = E[x^2] - E[x]^2); group reduce and the broadcast
    back to channels are tiny matmuls, keeping C on lanes (no reshapes).
    """
    C, G = gmap.shape
    inv_n = 1.0 / float(hw * (C // G))
    s = jnp.sum(x, axis=0, keepdims=True)                       # (1, C)
    ss = jnp.sum(x * x, axis=0, keepdims=True)                  # (1, C)
    mean_g = jnp.dot(s, gmap, preferred_element_type=jnp.float32) * inv_n
    ex2_g = jnp.dot(ss, gmap, preferred_element_type=jnp.float32) * inv_n
    var_g = ex2_g - mean_g * mean_g                             # (1, G)
    inv_g = lax.rsqrt(var_g + EPS)
    # broadcast group stats back to channels: (1,G) . (C,G)^T -> (1,C)
    dn = (((1,), (1,)), ((), ()))
    mean_c = lax.dot_general(mean_g, gmap, dn, preferred_element_type=jnp.float32)
    inv_c = lax.dot_general(inv_g, gmap, dn, preferred_element_type=jnp.float32)
    scale = inv_c * gamma
    shift = beta - mean_c * scale
    return x * scale + shift                                    # (HW, C)


def _conv3x3(y, pad_ref, w, H, W):
    """3x3 'same' conv on a channels-last (HW, Cin) tile.

    Zero-padding lives in a VMEM scratch (no HBM pad copy); the 9 shifted taps
    are concatenated along K into one im2col matmul (HW, 9*Cin) @ (9*Cin, Cout)
    with bf16 operands and f32 accumulation.
    """
    Cin = y.shape[-1]
    pad_ref[...] = jnp.zeros_like(pad_ref)                      # zero borders
    pad_ref[1:H + 1, 1:W + 1, :] = y.reshape(H, W, Cin)
    taps = [
        pad_ref[dy:dy + H, dx:dx + W, :].reshape(H * W, Cin)
        for dy in range(3) for dx in range(3)
    ]
    patches = jnp.concatenate(taps, axis=-1).astype(jnp.bfloat16)   # (HW, 9*Cin)
    return jnp.dot(patches, w, preferred_element_type=jnp.float32)  # (HW, Cout)


# ----------------------------------------------------------------------------
# Kernels
# ----------------------------------------------------------------------------
def _block1_kernel(x_ref, shift_ref, g_ref, b_ref, gmap_ref, w_ref, bias_ref,
                   o_ref, pad_ref, *, H, W):
    """block1 fused: GroupNorm + Swish + conv3x3 + bias + noise shift."""
    Cin = x_ref.shape[-1]
    Cout = o_ref.shape[-1]
    HW = H * W
    x = x_ref[0].reshape(HW, Cin)                               # (HW, Cin) f32
    xn = _group_norm(x, g_ref[...], b_ref[...], gmap_ref[...], HW)
    y = xn * jax.nn.sigmoid(xn)                                 # Swish
    acc = _conv3x3(y, pad_ref, w_ref[...], H, W)                # (HW, Cout) f32
    acc = acc + bias_ref[...] + shift_ref[0]                    # bias + FeatureWiseAffine
    o_ref[0] = acc.reshape(H, W, Cout)


def _block2_kernel(h_ref, x_ref, g_ref, b_ref, gmap_ref, w_ref, bias_ref,
                   rw_ref, rb_ref, o_ref, pad_ref, *, H, W):
    """block2 fused: GroupNorm + Swish + conv3x3 + bias + 1x1 res_conv residual."""
    C = h_ref.shape[-1]
    Cin = x_ref.shape[-1]
    HW = H * W
    h = h_ref[0].reshape(HW, C)
    hn = _group_norm(h, g_ref[...], b_ref[...], gmap_ref[...], HW)
    y = hn * jax.nn.sigmoid(hn)
    acc = _conv3x3(y, pad_ref, w_ref[...], H, W) + bias_ref[...]
    res = jnp.dot(x_ref[0].reshape(HW, Cin).astype(jnp.bfloat16), rw_ref[...],
                  preferred_element_type=jnp.float32) + rb_ref[...]
    o_ref[0] = (acc + res).reshape(H, W, C)


def _block2_identity_kernel(h_ref, x_ref, g_ref, b_ref, gmap_ref, w_ref,
                            bias_ref, o_ref, pad_ref, *, H, W):
    """block2 when dim == dim_out: residual is a plain add (no eye matmul)."""
    C = h_ref.shape[-1]
    HW = H * W
    h = h_ref[0].reshape(HW, C)
    hn = _group_norm(h, g_ref[...], b_ref[...], gmap_ref[...], HW)
    y = hn * jax.nn.sigmoid(hn)
    acc = _conv3x3(y, pad_ref, w_ref[...], H, W) + bias_ref[...]
    o_ref[0] = (acc + x_ref[0].reshape(HW, C)).reshape(H, W, C)


def _attn_kernel(y_ref, g_ref, b_ref, gmap_ref, wqkv_ref, wo_ref, bo_ref,
                 o_ref, *, sec):
    """Single-head self-attention fused with its GroupNorm and residual.

    wqkv_ref holds [Wq/sqrt(C) | Wk | Wv], each section padded to `sec` lanes
    so the q/k/v slices start on 128-lane boundaries.
    """
    HW, C = y_ref.shape[1], y_ref.shape[2]
    y = y_ref[0]                                                # (HW, C) f32
    xn = _group_norm(y, g_ref[...], b_ref[...], gmap_ref[...], HW)
    qkv = jnp.dot(xn.astype(jnp.bfloat16), wqkv_ref[...],
                  preferred_element_type=jnp.float32)           # (HW, 3*sec)
    q = qkv[:, 0:C].astype(jnp.bfloat16)
    k = qkv[:, sec:sec + C].astype(jnp.bfloat16)
    v = qkv[:, 2 * sec:2 * sec + C].astype(jnp.bfloat16)
    # scores (1/sqrt(C) already folded into Wq)
    s = lax.dot_general(q, k, (((1,), (1,)), ((), ())),
                        preferred_element_type=jnp.float32)     # (HW, HW)
    s = s - jnp.max(s, axis=-1, keepdims=True)
    e = jnp.exp(s)
    p = e * pl.reciprocal(jnp.sum(e, axis=-1, keepdims=True), approx=True)
    ctx = jnp.dot(p.astype(jnp.bfloat16), v, preferred_element_type=jnp.float32)
    out = jnp.dot(ctx.astype(jnp.bfloat16), wo_ref[...],
                  preferred_element_type=jnp.float32) + bo_ref[...]
    o_ref[0] = out + y
    # TODO(synk): for production SR3 resolutions (HW >= 2k) tile this flash-style
    # over a KV grid axis (online softmax) so the (HW, HW) tile fits v7x VMEM.


# ----------------------------------------------------------------------------
# pallas_call wrappers
# ----------------------------------------------------------------------------
def _block1_call(x_nhwc, shift, gamma, beta, gmap, w_im2col, bias):
    B, H, W, Cin = x_nhwc.shape
    Cout = w_im2col.shape[-1]
    G = gmap.shape[-1]
    kern = functools.partial(_block1_kernel, H=H, W=W)
    return pl.pallas_call(
        kern,
        out_shape=jax.ShapeDtypeStruct((B, H, W, Cout), jnp.float32),
        grid=(B,),
        in_specs=[
            pl.BlockSpec((1, H, W, Cin), lambda b: (b, 0, 0, 0)),
            pl.BlockSpec((1, 1, Cout), lambda b: (b, 0, 0)),
            pl.BlockSpec((1, Cin), lambda b: (0, 0)),
            pl.BlockSpec((1, Cin), lambda b: (0, 0)),
            pl.BlockSpec((Cin, G), lambda b: (0, 0)),
            pl.BlockSpec((9 * Cin, Cout), lambda b: (0, 0)),
            pl.BlockSpec((1, Cout), lambda b: (0, 0)),
        ],
        out_specs=pl.BlockSpec((1, H, W, Cout), lambda b: (b, 0, 0, 0)),
        scratch_shapes=[pltpu.VMEM((H + 2, W + 2, Cin), jnp.float32)],
        compiler_params=_COMPILER_PARAMS,
    )(x_nhwc, shift, gamma, beta, gmap, w_im2col, bias)


def _block2_call(h_nhwc, x_nhwc, gamma, beta, gmap, w_im2col, bias, res_w, res_b):
    B, H, W, C = h_nhwc.shape
    Cin = x_nhwc.shape[-1]
    G = gmap.shape[-1]
    if res_w is not None:
        kern = functools.partial(_block2_kernel, H=H, W=W)
        extra_specs = [pl.BlockSpec((Cin, C), lambda b: (0, 0)),
                       pl.BlockSpec((1, C), lambda b: (0, 0))]
        extra_args = (res_w, res_b)
    else:
        kern = functools.partial(_block2_identity_kernel, H=H, W=W)
        extra_specs = []
        extra_args = ()
    return pl.pallas_call(
        kern,
        out_shape=jax.ShapeDtypeStruct((B, H, W, C), jnp.float32),
        grid=(B,),
        in_specs=[
            pl.BlockSpec((1, H, W, C), lambda b: (b, 0, 0, 0)),
            pl.BlockSpec((1, H, W, Cin), lambda b: (b, 0, 0, 0)),
            pl.BlockSpec((1, C), lambda b: (0, 0)),
            pl.BlockSpec((1, C), lambda b: (0, 0)),
            pl.BlockSpec((C, G), lambda b: (0, 0)),
            pl.BlockSpec((9 * C, C), lambda b: (0, 0)),
            pl.BlockSpec((1, C), lambda b: (0, 0)),
        ] + extra_specs,
        out_specs=pl.BlockSpec((1, H, W, C), lambda b: (b, 0, 0, 0)),
        scratch_shapes=[pltpu.VMEM((H + 2, W + 2, C), jnp.float32)],
        compiler_params=_COMPILER_PARAMS,
    )(h_nhwc, x_nhwc, gamma, beta, gmap, w_im2col, bias, *extra_args)


def _attn_call(y_flat, gamma, beta, gmap, wqkv, wo, bo, sec):
    B, HW, C = y_flat.shape
    G = gmap.shape[-1]
    kern = functools.partial(_attn_kernel, sec=sec)
    return pl.pallas_call(
        kern,
        out_shape=jax.ShapeDtypeStruct((B, HW, C), jnp.float32),
        grid=(B,),
        in_specs=[
            pl.BlockSpec((1, HW, C), lambda b: (b, 0, 0)),
            pl.BlockSpec((1, C), lambda b: (0, 0)),
            pl.BlockSpec((1, C), lambda b: (0, 0)),
            pl.BlockSpec((C, G), lambda b: (0, 0)),
            pl.BlockSpec((C, 3 * sec), lambda b: (0, 0)),
            pl.BlockSpec((C, C), lambda b: (0, 0)),
            pl.BlockSpec((1, C), lambda b: (0, 0)),
        ],
        out_specs=pl.BlockSpec((1, HW, C), lambda b: (b, 0, 0)),
        compiler_params=_COMPILER_PARAMS,
    )(y_flat, gamma, beta, gmap, wqkv, wo, bo)


# ----------------------------------------------------------------------------
# Parameter plumbing + forward
# ----------------------------------------------------------------------------
def _group_membership(C, G):
    cg = C // G
    return (jnp.arange(C)[:, None] // cg == jnp.arange(G)[None, :]).astype(jnp.float32)


def _im2col_weight(w_oihw):
    """torch OIHW (O, I, 3, 3) -> (9*I, O), bf16 MXU operand."""
    O, I = w_oihw.shape[0], w_oihw.shape[1]
    return jnp.transpose(w_oihw, (2, 3, 1, 0)).reshape(9 * I, O).astype(jnp.bfloat16)


def resnet_block_with_attn(x, time_emb, p, *, norm_groups, with_attn=True):
    B, Cin, H, W = x.shape
    HW = H * W
    Cout = p["conv1_w"].shape[0]
    G = norm_groups
    assert Cin % G == 0 and Cout % G == 0

    # single layout change at the boundary: NCHW -> NHWC (channels-last)
    x_nhwc = jnp.transpose(x, (0, 2, 3, 1))

    gmap_in = _group_membership(Cin, G)
    gmap_out = _group_membership(Cout, G)

    # FeatureWiseAffine (use_affine_level=False): tiny Linear done by XLA,
    # consumed as a per-batch shift inside conv1's epilogue.
    shift = (time_emb @ p["lin_w"].T + p["lin_b"]).reshape(B, 1, Cout)

    # ---- block1: GN + Swish + conv3x3 + bias + noise shift (one kernel) ----
    h = _block1_call(
        x_nhwc, shift,
        p["gn1_g"].reshape(1, Cin), p["gn1_b"].reshape(1, Cin), gmap_in,
        _im2col_weight(p["conv1_w"]), p["conv1_b"].reshape(1, Cout))

    # ---- block2: GN + Swish + conv3x3 + bias + residual (one kernel) -------
    # (dropout=0 -> Identity)
    if Cin != Cout:
        res_w = p["res_w"][:, :, 0, 0].T.astype(jnp.bfloat16)   # (Cin, Cout)
        res_b = p["res_b"].reshape(1, Cout)
    else:
        res_w, res_b = None, None                               # plain add
    y = _block2_call(
        h, x_nhwc,
        p["gn2_g"].reshape(1, Cout), p["gn2_b"].reshape(1, Cout), gmap_out,
        _im2col_weight(p["conv2_w"]), p["conv2_b"].reshape(1, Cout),
        res_w, res_b)

    # ---- SelfAttention (one kernel) -----------------------------------------
    if with_attn:
        wqkv = p["qkv_w"][:, :, 0, 0]                           # (3C, C) 1x1 OIHW
        wq = wqkv[:Cout].T / math.sqrt(Cout)                    # fold 1/sqrt(C)
        wk = wqkv[Cout:2 * Cout].T
        wv = wqkv[2 * Cout:].T
        sec = max(128, ((Cout + 127) // 128) * 128)             # 128-aligned sections

        def _pad(wm):
            return jnp.pad(wm, ((0, 0), (0, sec - Cout)))

        wqkv_cat = jnp.concatenate([_pad(wq), _pad(wk), _pad(wv)],
                                   axis=1).astype(jnp.bfloat16)  # (C, 3*sec)
        wo = p["out_w"][:, :, 0, 0].T.astype(jnp.bfloat16)
        y_flat = _attn_call(
            y.reshape(B, HW, Cout),
            p["gna_g"].reshape(1, Cout), p["gna_b"].reshape(1, Cout), gmap_out,
            wqkv_cat, wo, p["out_b"].reshape(1, Cout), sec)
        y = y_flat.reshape(B, H, W, Cout)

    return jnp.transpose(y, (0, 3, 1, 2))                        # back to NCHW


# ----------------------------------------------------------------------------
# Pure-JAX reference (mirrors PyTorch semantics) for correctness checking
# ----------------------------------------------------------------------------
def _gn_ref(x, g, b, groups):
    B, C, H, W = x.shape
    xg = x.reshape(B, groups, -1)
    m = xg.mean(-1, keepdims=True)
    v = ((xg - m) ** 2).mean(-1, keepdims=True)
    xn = ((xg - m) / jnp.sqrt(v + EPS)).reshape(B, C, H, W)
    return xn * g[None, :, None, None] + b[None, :, None, None]


def _conv_ref(x, w, b=None, pad=1):
    y = jax.lax.conv_general_dilated(x, w, (1, 1), [(pad, pad), (pad, pad)],
                                     dimension_numbers=("NCHW", "OIHW", "NCHW"))
    if b is not None:
        y = y + b[None, :, None, None]
    return y


def forward_ref(x, t, p, *, norm_groups, with_attn=True):
    B, Cin, H, W = x.shape
    Cout = p["conv1_w"].shape[0]
    h = _gn_ref(x, p["gn1_g"], p["gn1_b"], norm_groups)
    h = h * jax.nn.sigmoid(h)
    h = _conv_ref(h, p["conv1_w"], p["conv1_b"], pad=1)
    noise = t @ p["lin_w"].T + p["lin_b"]
    h = h + noise[:, :, None, None]
    h2 = _gn_ref(h, p["gn2_g"], p["gn2_b"], norm_groups)
    h2 = h2 * jax.nn.sigmoid(h2)
    h2 = _conv_ref(h2, p["conv2_w"], p["conv2_b"], pad=1)
    res = _conv_ref(x, p["res_w"], p["res_b"], pad=0) if Cin != Cout else x
    y = h2 + res
    if with_attn:
        C = Cout
        n = _gn_ref(y, p["gna_g"], p["gna_b"], norm_groups)
        qkv = _conv_ref(n, p["qkv_w"], None, pad=0)
        q, k, v = jnp.split(qkv, 3, axis=1)
        attn = jnp.einsum("bchw,bcyx->bhwyx", q, k) / math.sqrt(C)
        attn = jax.nn.softmax(attn.reshape(B, H, W, H * W), axis=-1)
        attn = attn.reshape(B, H, W, H, W)
        out = jnp.einsum("bhwyx,bcyx->bchw", attn, v)
        out = _conv_ref(out, p["out_w"], p["out_b"], pad=0)
        y = out + y
    return y


# ----------------------------------------------------------------------------
if __name__ == "__main__":
    B, Cin, Cout, H, W = 2, 8, 16, 8, 8
    D_emb, groups = 32, 4

    key = jax.random.PRNGKey(0)
    ks = iter(jax.random.split(key, 32))

    def rnd(shape, s=0.2):
        return s * jax.random.normal(next(ks), shape, jnp.float32)

    # Deterministic synthetic parameters (PyTorch tensor layouts).
    p = {
        "gn1_g": 1.0 + rnd((Cin,), 0.1), "gn1_b": rnd((Cin,), 0.1),
        "conv1_w": rnd((Cout, Cin, 3, 3)), "conv1_b": rnd((Cout,), 0.1),
        "lin_w": rnd((Cout, D_emb)), "lin_b": rnd((Cout,), 0.1),
        "gn2_g": 1.0 + rnd((Cout,), 0.1), "gn2_b": rnd((Cout,), 0.1),
        "conv2_w": rnd((Cout, Cout, 3, 3)), "conv2_b": rnd((Cout,), 0.1),
        "res_w": rnd((Cout, Cin, 1, 1)), "res_b": rnd((Cout,), 0.1),
        "gna_g": 1.0 + rnd((Cout,), 0.1), "gna_b": rnd((Cout,), 0.1),
        "qkv_w": rnd((3 * Cout, Cout, 1, 1)),
        "out_w": rnd((Cout, Cout, 1, 1)), "out_b": rnd((Cout,), 0.1),
    }

    x = jax.random.normal(next(ks), (B, Cin, H, W), jnp.float32)
    time_emb = jax.random.normal(next(ks), (B, D_emb), jnp.float32)

    fwd = jax.jit(functools.partial(resnet_block_with_attn,
                                    norm_groups=groups, with_attn=True))
    out = jax.block_until_ready(fwd(x, time_emb, p))
    ref = jax.block_until_ready(
        forward_ref(x, time_emb, p, norm_groups=groups, with_attn=True))

    assert out.shape == (B, Cout, H, W), out.shape
    # bf16 MXU operands (intentional) -> loosened absolute tolerance.
    err = float(jnp.max(jnp.abs(out - ref)))
    assert err < 1e-1, f"mismatch vs reference: max abs err {err}"
    print("KERNEL_OK")
</pallas_src>

<mosaic_0001>
module attributes {stable_mosaic.version = 11 : i64} {
  func.func @_block1_kernel(%arg0: i32, %arg1: memref<1x8x8x8xf32, #tpu.memory_space<vmem>>, %arg2: memref<1x1x16xf32, #tpu.memory_space<vmem>>, %arg3: memref<1x8xf32, #tpu.memory_space<vmem>>, %arg4: memref<1x8xf32, #tpu.memory_space<vmem>>, %arg5: memref<8x4xf32, #tpu.memory_space<vmem>>, %arg6: memref<72x16xbf16, #tpu.memory_space<vmem>>, %arg7: memref<1x16xf32, #tpu.memory_space<vmem>>, %arg8: memref<1x8x8x16xf32, #tpu.memory_space<vmem>>, %arg9: memref<10x10x8xf32, #tpu.memory_space<vmem>>) attributes {dimension_semantics = [#tpu.dimension_semantics<parallel>], iteration_bounds = array<i64: 2>, scalar_prefetch = 0 : i64, scratch_operands = 1 : i64, tpu.core_type = #tpu.core_type<tc>, window_params = [{transform_indices = @transform_0, window_bounds = array<i64: 1, 8, 8, 8>}, {transform_indices = @transform_1, window_bounds = array<i64: 1, 1, 16>}, {pipeline_mode = #tpu.pipeline_mode<synchronous>, transform_indices = @transform_2, window_bounds = array<i64: 1, 8>}, {pipeline_mode = #tpu.pipeline_mode<synchronous>, transform_indices = @transform_3, window_bounds = array<i64: 1, 8>}, {pipeline_mode = #tpu.pipeline_mode<synchronous>, transform_indices = @transform_4, window_bounds = array<i64: 8, 4>}, {pipeline_mode = #tpu.pipeline_mode<synchronous>, transform_indices = @transform_5, window_bounds = array<i64: 72, 16>}, {pipeline_mode = #tpu.pipeline_mode<synchronous>, transform_indices = @transform_6, window_bounds = array<i64: 1, 16>}, {transform_indices = @transform_7, window_bounds = array<i64: 1, 8, 8, 16>}]} {
    %c0 = arith.constant 0 : index
    %c0_0 = arith.constant 0 : index
    %c0_1 = arith.constant 0 : index
    %c0_2 = arith.constant 0 : index
    %0 = vector.load %arg1[%c0, %c0_0, %c0_1, %c0_2] : memref<1x8x8x8xf32, #tpu.memory_space<vmem>>, vector<1x8x8x8xf32>
    %1 = vector.shape_cast %0 : vector<1x8x8x8xf32> to vector<8x8x8xf32>
    %2 = vector.shape_cast %1 : vector<8x8x8xf32> to vector<64x8xf32>
    %c0_3 = arith.constant 0 : index
    %c0_4 = arith.constant 0 : index
    %3 = vector.load %arg3[%c0_3, %c0_4] : memref<1x8xf32, #tpu.memory_space<vmem>>, vector<1x8xf32>
    %c0_5 = arith.constant 0 : index
    %c0_6 = arith.constant 0 : index
    %4 = vector.load %arg4[%c0_5, %c0_6] : memref<1x8xf32, #tpu.memory_space<vmem>>, vector<1x8xf32>
    %c0_7 = arith.constant 0 : index
    %c0_8 = arith.constant 0 : index
    %5 = vector.load %arg5[%c0_7, %c0_8] : memref<8x4xf32, #tpu.memory_space<vmem>>, vector<8x4xf32>
    %cst = arith.constant dense<0.000000e+00> : vector<8xf32>
    %6 = vector.multi_reduction <add>, %2, %cst [0] : vector<64x8xf32> to vector<8xf32>
    %7 = vector.shape_cast %6 : vector<8xf32> to vector<1x8xf32>
    %8 = arith.mulf %2, %2 : vector<64x8xf32>
    %cst_9 = arith.constant dense<0.000000e+00> : vector<8xf32>
    %9 = vector.multi_reduction <add>, %8, %cst_9 [0] : vector<64x8xf32> to vector<8xf32>
    %10 = vector.shape_cast %9 : vector<8xf32> to vector<1x8xf32>
    %cst_10 = arith.constant dense<0.000000e+00> : vector<1x4xf32>
    %11 = tpu.matmul %7, %5, %cst_10 {dimension_numbers = #tpu.dot_dimension_numbers<[1], [0], [0], [1], [0, 0, 1, 1], [], []>} : vector<1x8xf32>, vector<8x4xf32>, vector<1x4xf32> -> vector<1x4xf32>
    %cst_11 = arith.constant 7.812500e-03 : f32
    %12 = vector.broadcast %cst_11 : f32 to vector<1x4xf32>
    %13 = arith.mulf %11, %12 : vector<1x4xf32>
    %cst_12 = arith.constant dense<0.000000e+00> : vector<1x4xf32>
    %14 = tpu.matmul %10, %5, %cst_12 {dimension_numbers = #tpu.dot_dimension_numbers<[1], [0], [0], [1], [0, 0, 1, 1], [], []>} : vector<1x8xf32>, vector<8x4xf32>, vector<1x4xf32> -> vector<1x4xf32>
    %cst_13 = arith.constant 7.812500e-03 : f32
    %15 = vector.broadcast %cst_13 : f32 to vector<1x4xf32>
    %16 = arith.mulf %14, %15 : vector<1x4xf32>
    %17 = arith.mulf %13, %13 : vector<1x4xf32>
    %18 = arith.subf %16, %17 : vector<1x4xf32>
    %cst_14 = arith.constant 9.99999974E-6 : f32
    %19 = vector.broadcast %cst_14 : f32 to vector<1x4xf32>
    %20 = arith.addf %18, %19 : vector<1x4xf32>
    %21 = math.rsqrt %20 : vector<1x4xf32>
    %cst_15 = arith.constant dense<0.000000e+00> : vector<1x8xf32>
    %22 = tpu.matmul %13, %5, %cst_15 {dimension_numbers = #tpu.dot_dimension_numbers<[1], [1], [0], [0], [0, 0, 1, 0], [], []>} : vector<1x4xf32>, vector<8x4xf32>, vector<1x8xf32> -> vector<1x8xf32>
    %cst_16 = arith.constant dense<0.000000e+00> : vector<1x8xf32>
    %23 = tpu.matmul %21, %5, %cst_16 {dimension_numbers = #tpu.dot_dimension_numbers<[1], [1], [0], [0], [0, 0, 1, 0], [], []>} : vector<1x4xf32>, vector<8x4xf32>, vector<1x8xf32> -> vector<1x8xf32>
    %24 = arith.mulf %23, %3 : vector<1x8xf32>
    %25 = arith.mulf %22, %24 : vector<1x8xf32>
    %26 = arith.subf %4, %25 : vector<1x8xf32>
    %27 = vector.broadcast %24 : vector<1x8xf32> to vector<64x8xf32>
    %28 = arith.mulf %2, %27 : vector<64x8xf32>
    %29 = vector.broadcast %26 : vector<1x8xf32> to vector<64x8xf32>
    %30 = arith.addf %28, %29 : vector<64x8xf32>
    %31 = arith.negf %30 : vector<64x8xf32>
    %32 = math.exp %31 : vector<64x8xf32>
    %cst_17 = arith.constant 1.000000e+00 : f32
    %33 = vector.broadcast %cst_17 : f32 to vector<64x8xf32>
    %34 = arith.addf %33, %32 : vector<64x8xf32>
    %35 = arith.divf %33, %34 : vector<64x8xf32>
    %36 = arith.mulf %30, %35 : vector<64x8xf32>
    %c0_18 = arith.constant 0 : index
    %c0_19 = arith.constant 0 : index
    %37 = vector.load %arg6[%c0_18, %c0_19] : memref<72x16xbf16, #tpu.memory_space<vmem>>, vector<72x16xbf16>
    %cst_20 = arith.constant 0.000000e+00 : f32
    %38 = vector.broadcast %cst_20 : f32 to vector<10x10x8xf32>
    %c0_21 = arith.constant 0 : index
    %c0_22 = arith.constant 0 : index
    %c0_23 = arith.constant 0 : index
    %39 = vector.load %arg9[%c0_21, %c0_22, %c0_23] : memref<10x10x8xf32, #tpu.memory_space<vmem>>, vector<10x10x8xf32>
    tpu.vector_store %arg9[%c0_21, %c0_22, %c0_23], %38 {strides = array<i32>} : memref<10x10x8xf32, #tpu.memory_space<vmem>>, vector<10x10x8xf32>,
    %40 = vector.shape_cast %36 : vector<64x8xf32> to vector<8x8x8xf32>
    %c1 = arith.constant 1 : index
    %c1_24 = arith.constant 1 : index
    %c0_25 = arith.constant 0 : index
    %41 = vector.load %arg9[%c1, %c1_24, %c0_25] : memref<10x10x8xf32, #tpu.memory_space<vmem>>, vector<8x8x8xf32>
    tpu.vector_store %arg9[%c1, %c1_24, %c0_25], %40 {strides = array<i32>} : memref<10x10x8xf32, #tpu.memory_space<vmem>>, vector<8x8x8xf32>,
    %c0_26 = arith.constant 0 : index
    %c0_27 = arith.constant 0 : index
    %c0_28 = arith.constant 0 : index
    %42 = vector.load %arg9[%c0_26, %c0_27, %c0_28] : memref<10x10x8xf32, #tpu.memory_space<vmem>>, vector<8x8x8xf32>
    %43 = vector.shape_cast %42 : vector<8x8x8xf32> to vector<64x8xf32>
    %c0_29 = arith.constant 0 : index
    %c1_30 = arith.constant 1 : index
    %c0_31 = arith.constant 0 : index
    %44 = vector.load %arg9[%c0_29, %c1_30, %c0_31] : memref<10x10x8xf32, #tpu.memory_space<vmem>>, vector<8x8x8xf32>
    %45 = vector.shape_cast %44 : vector<8x8x8xf32> to vector<64x8xf32>
    %c0_32 = arith.constant 0 : index
    %c2 = arith.constant 2 : index
    %c0_33 = arith.constant 0 : index
    %46 = vector.load %arg9[%c0_32, %c2, %c0_33] : memref<10x10x8xf32, #tpu.memory_space<vmem>>, vector<8x8x8xf32>
    %47 = vector.shape_cast %46 : vector<8x8x8xf32> to vector<64x8xf32>
    %c1_34 = arith.constant 1 : index
    %c0_35 = arith.constant 0 : index
    %c0_36 = arith.constant 0 : index
    %48 = vector.load %arg9[%c1_34, %c0_35, %c0_36] : memref<10x10x8xf32, #tpu.memory_space<vmem>>, vector<8x8x8xf32>
    %49 = vector.shape_cast %48 : vector<8x8x8xf32> to vector<64x8xf32>
    %c1_37 = arith.constant 1 : index
    %c1_38 = arith.constant 1 : index
    %c0_39 = arith.constant 0 : index
    %50 = vector.load %arg9[%c1_37, %c1_38, %c0_39] : memref<10x10x8xf32, #tpu.memory_space<vmem>>, vector<8x8x8xf32>
    %51 = vector.shape_cast %50 : vector<8x8x8xf32> to vector<64x8xf32>
    %c1_40 = arith.constant 1 : index
    %c2_41 = arith.constant 2 : index
    %c0_42 = arith.constant 0 : index
    %52 = vector.load %arg9[%c1_40, %c2_41, %c0_42] : memref<10x10x8xf32, #tpu.memory_space<vmem>>, vector<8x8x8xf32>
    %53 = vector.shape_cast %52 : vector<8x8x8xf32> to vector<64x8xf32>
    %c2_43 = arith.constant 2 : index
    %c0_44 = arith.constant 0 : index
    %c0_45 = arith.constant 0 : index
    %54 = vector.load %arg9[%c2_43, %c0_44, %c0_45] : memref<10x10x8xf32, #tpu.memory_space<vmem>>, vector<8x8x8xf32>
    %55 = vector.shape_cast %54 : vector<8x8x8xf32> to vector<64x8xf32>
    %c2_46 = arith.constant 2 : index
    %c1_47 = arith.constant 1 : index
    %c0_48 = arith.constant 0 : index
    %56 = vector.load %arg9[%c2_46, %c1_47, %c0_48] : memref<10x10x8xf32, #tpu.memory_space<vmem>>, vector<8x8x8xf32>
    %57 = vector.shape_cast %56 : vector<8x8x8xf32> to vector<64x8xf32>
    %c2_49 = arith.constant 2 : index
    %c2_50 = arith.constant 2 : index
    %c0_51 = arith.constant 0 : index
    %58 = vector.load %arg9[%c2_49, %c2_50, %c0_51] : memref<10x10x8xf32, #tpu.memory_space<vmem>>, vector<8x8x8xf32>
    %59 = vector.shape_cast %58 : vector<8x8x8xf32> to vector<64x8xf32>
    %60 = tpu.concatenate %43, %45, %47, %49, %51, %53, %55, %57, %59 in 1 : vector<64x8xf32>, vector<64x8xf32>, vector<64x8xf32>, vector<64x8xf32>, vector<64x8xf32>, vector<64x8xf32>, vector<64x8xf32>, vector<64x8xf32>, vector<64x8xf32> -> vector<64x72xf32>
    %61 = arith.truncf %60 : vector<64x72xf32> to vector<64x72xbf16>
    %cst_52 = arith.constant dense<0.000000e+00> : vector<64x16xf32>
    %62 = tpu.matmul %61, %37, %cst_52 {dimension_numbers = #tpu.dot_dimension_numbers<[1], [0], [0], [1], [0, 0, 1, 1], [], []>} : vector<64x72xbf16>, vector<72x16xbf16>, vector<64x16xf32> -> vector<64x16xf32>
    %c0_53 = arith.constant 0 : index
    %c0_54 = arith.constant 0 : index
    %63 = vector.load %arg7[%c0_53, %c0_54] : memref<1x16xf32, #tpu.memory_space<vmem>>, vector<1x16xf32>
    %64 = vector.broadcast %63 : vector<1x16xf32> to vector<64x16xf32>
    %65 = arith.addf %62, %64 : vector<64x16xf32>
    %c0_55 = arith.constant 0 : index
    %c0_56 = arith.constant 0 : index
    %c0_57 = arith.constant 0 : index
    %66 = vector.load %arg2[%c0_55, %c0_56, %c0_57] : memref<1x1x16xf32, #tpu.memory_space<vmem>>, vector<1x1x16xf32>
    %67 = vector.shape_cast %66 : vector<1x1x16xf32> to vector<1x16xf32>
    %68 = vector.broadcast %67 : vector<1x16xf32> to vector<64x16xf32>
    %69 = arith.addf %65, %68 : vector<64x16xf32>
    %70 = vector.shape_cast %69 : vector<64x16xf32> to vector<8x8x16xf32>
    %c0_58 = arith.constant 0 : index
    %c0_59 = arith.constant 0 : index
    %c0_60 = arith.constant 0 : index
    %c0_61 = arith.constant 0 : index
    %71 = vector.load %arg8[%c0_58, %c0_59, %c0_60, %c0_61] : memref<1x8x8x16xf32, #tpu.memory_space<vmem>>, vector<1x8x8x16xf32>
    %72 = vector.shape_cast %71 : vector<1x8x8x16xf32> to vector<8x8x16xf32>
    %73 = vector.shape_cast %70 : vector<8x8x16xf32> to vector<1x8x8x16xf32>
    tpu.vector_store %arg8[%c0_58, %c0_59, %c0_60, %c0_61], %73 {strides = array<i32>} : memref<1x8x8x16xf32, #tpu.memory_space<vmem>>, vector<1x8x8x16xf32>,
    return
  }
  func.func @transform_0(%arg0: i32) -> (i32, i32, i32, i32) {
    %c0_i32 = arith.constant 0 : i32
    %c0_i32_0 = arith.constant 0 : i32
    %c0_i32_1 = arith.constant 0 : i32
    %c0_i32_2 = arith.constant 0 : i32
    return %arg0, %c0_i32, %c0_i32_0, %c0_i32_1 : i32, i32, i32, i32
  }
  func.func @transform_1(%arg0: i32) -> (i32, i32, i32) {
    %c0_i32 = arith.constant 0 : i32
    %c0_i32_0 = arith.constant 0 : i32
    %c0_i32_1 = arith.constant 0 : i32
    return %arg0, %c0_i32, %c0_i32_0 : i32, i32, i32
  }
  func.func @transform_2(%arg0: i32) -> (i32, i32) {
    %c0_i32 = arith.constant 0 : i32
    %c0_i32_0 = arith.constant 0 : i32
    %c0_i32_1 = arith.constant 0 : i32
    return %c0_i32, %c0_i32_0 : i32, i32
  }
  func.func @transform_3(%arg0: i32) -> (i32, i32) {
    %c0_i32 = arith.constant 0 : i32
    %c0_i32_0 = arith.constant 0 : i32
    %c0_i32_1 = arith.constant 0 : i32
    return %c0_i32, %c0_i32_0 : i32, i32
  }
  func.func @transform_4(%arg0: i32) -> (i32, i32) {
    %c0_i32 = arith.constant 0 : i32
    %c0_i32_0 = arith.constant 0 : i32
    %c0_i32_1 = arith.constant 0 : i32
    return %c0_i32, %c0_i32_0 : i32, i32
  }
  func.func @transform_5(%arg0: i32) -> (i32, i32) {
    %c0_i32 = arith.constant 0 : i32
    %c0_i32_0 = arith.constant 0 : i32
    %c0_i32_1 = arith.constant 0 : i32
    return %c0_i32, %c0_i32_0 : i32, i32
  }
  func.func @transform_6(%arg0: i32) -> (i32, i32) {
    %c0_i32 = arith.constant 0 : i32
    %c0_i32_0 = arith.constant 0 : i32
    %c0_i32_1 = arith.constant 0 : i32
    return %c0_i32, %c0_i32_0 : i32, i32
  }
  func.func @transform_7(%arg0: i32) -> (i32, i32, i32, i32) {
    %c0_i32 = arith.constant 0 : i32
    %c0_i32_0 = arith.constant 0 : i32
    %c0_i32_1 = arith.constant 0 : i32
    %c0_i32_2 = arith.constant 0 : i32
    return %arg0, %c0_i32, %c0_i32_0, %c0_i32_1 : i32, i32, i32, i32
  }
}

module attributes {stable_mosaic.version = 11 : i64} {
  func.func @_block2_kernel(%arg0: i32, %arg1: memref<1x8x8x16xf32, #tpu.memory_space<vmem>>, %arg2: memref<1x8x8x8xf32, #tpu.memory_space<vmem>>, %arg3: memref<1x16xf32, #tpu.memory_space<vmem>>, %arg4: memref<1x16xf32, #tpu.memory_space<vmem>>, %arg5: memref<16x4xf32, #tpu.memory_space<vmem>>, %arg6: memref<144x16xbf16, #tpu.memory_space<vmem>>, %arg7: memref<1x16xf32, #tpu.memory_space<vmem>>, %arg8: memref<8x16xbf16, #tpu.memory_space<vmem>>, %arg9: memref<1x16xf32, #tpu.memory_space<vmem>>, %arg10: memref<1x8x8x16xf32, #tpu.memory_space<vmem>>, %arg11: memref<10x10x16xf32, #tpu.memory_space<vmem>>) attributes {dimension_semantics = [#tpu.dimension_semantics<parallel>], iteration_bounds = array<i64: 2>, scalar_prefetch = 0 : i64, scratch_operands = 1 : i64, tpu.core_type = #tpu.core_type<tc>, window_params = [{transform_indices = @transform_0, window_bounds = array<i64: 1, 8, 8, 16>}, {transform_indices = @transform_1, window_bounds = array<i64: 1, 8, 8, 8>}, {pipeline_mode = #tpu.pipeline_mode<synchronous>, transform_indices = @transform_2, window_bounds = array<i64: 1, 16>}, {pipeline_mode = #tpu.pipeline_mode<synchronous>, transform_indices = @transform_3, window_bounds = array<i64: 1, 16>}, {pipeline_mode = #tpu.pipeline_mode<synchronous>, transform_indices = @transform_4, window_bounds = array<i64: 16, 4>}, {pipeline_mode = #tpu.pipeline_mode<synchronous>, transform_indices = @transform_5, window_bounds = array<i64: 144, 16>}, {pipeline_mode = #tpu.pipeline_mode<synchronous>, transform_indices = @transform_6, window_bounds = array<i64: 1, 16>}, {pipeline_mode = #tpu.pipeline_mode<synchronous>, transform_indices = @transform_7, window_bounds = array<i64: 8, 16>}, {pipeline_mode = #tpu.pipeline_mode<synchronous>, transform_indices = @transform_8, window_bounds = array<i64: 1, 16>}, {transform_indices = @transform_9, window_bounds = array<i64: 1, 8, 8, 16>}]} {
    %c0 = arith.constant 0 : index
    %c0_0 = arith.constant 0 : index
    %c0_1 = arith.constant 0 : index
    %c0_2 = arith.constant 0 : index
    %0 = vector.load %arg1[%c0, %c0_0, %c0_1, %c0_2] : memref<1x8x8x16xf32, #tpu.memory_space<vmem>>, vector<1x8x8x16xf32>
    %1 = vector.shape_cast %0 : vector<1x8x8x16xf32> to vector<8x8x16xf32>
    %2 = vector.shape_cast %1 : vector<8x8x16xf32> to vector<64x16xf32>
    %c0_3 = arith.constant 0 : index
    %c0_4 = arith.constant 0 : index
    %3 = vector.load %arg3[%c0_3, %c0_4] : memref<1x16xf32, #tpu.memory_space<vmem>>, vector<1x16xf32>
    %c0_5 = arith.constant 0 : index
    %c0_6 = arith.constant 0 : index
    %4 = vector.load %arg4[%c0_5, %c0_6] : memref<1x16xf32, #tpu.memory_space<vmem>>, vector<1x16xf32>
    %c0_7 = arith.constant 0 : index
    %c0_8 = arith.constant 0 : index
    %5 = vector.load %arg5[%c0_7, %c0_8] : memref<16x4xf32, #tpu.memory_space<vmem>>, vector<16x4xf32>
    %cst = arith.constant dense<0.000000e+00> : vector<16xf32>
    %6 = vector.multi_reduction <add>, %2, %cst [0] : vector<64x16xf32> to vector<16xf32>
    %7 = vector.shape_cast %6 : vector<16xf32> to vector<1x16xf32>
    %8 = arith.mulf %2, %2 : vector<64x16xf32>
    %cst_9 = arith.constant dense<0.000000e+00> : vector<16xf32>
    %9 = vector.multi_reduction <add>, %8, %cst_9 [0] : vector<64x16xf32> to vector<16xf32>
    %10 = vector.shape_cast %9 : vector<16xf32> to vector<1x16xf32>
    %cst_10 = arith.constant dense<0.000000e+00> : vector<1x4xf32>
    %11 = tpu.matmul %7, %5, %cst_10 {dimension_numbers = #tpu.dot_dimension_numbers<[1], [0], [0], [1], [0, 0, 1, 1], [], []>} : vector<1x16xf32>, vector<16x4xf32>, vector<1x4xf32> -> vector<1x4xf32>
    %cst_11 = arith.constant 3.906250e-03 : f32
    %12 = vector.broadcast %cst_11 : f32 to vector<1x4xf32>
    %13 = arith.mulf %11, %12 : vector<1x4xf32>
    %cst_12 = arith.constant dense<0.000000e+00> : vector<1x4xf32>
    %14 = tpu.matmul %10, %5, %cst_12 {dimension_numbers = #tpu.dot_dimension_numbers<[1], [0], [0], [1], [0, 0, 1, 1], [], []>} : vector<1x16xf32>, vector<16x4xf32>, vector<1x4xf32> -> vector<1x4xf32>
    %cst_13 = arith.constant 3.906250e-03 : f32
    %15 = vector.broadcast %cst_13 : f32 to vector<1x4xf32>
    %16 = arith.mulf %14, %15 : vector<1x4xf32>
    %17 = arith.mulf %13, %13 : vector<1x4xf32>
    %18 = arith.subf %16, %17 : vector<1x4xf32>
    %cst_14 = arith.constant 9.99999974E-6 : f32
    %19 = vector.broadcast %cst_14 : f32 to vector<1x4xf32>
    %20 = arith.addf %18, %19 : vector<1x4xf32>
    %21 = math.rsqrt %20 : vector<1x4xf32>
    %cst_15 = arith.constant dense<0.000000e+00> : vector<1x16xf32>
    %22 = tpu.matmul %13, %5, %cst_15 {dimension_numbers = #tpu.dot_dimension_numbers<[1], [1], [0], [0], [0, 0, 1, 0], [], []>} : vector<1x4xf32>, vector<16x4xf32>, vector<1x16xf32> -> vector<1x16xf32>
    %cst_16 = arith.constant dense<0.000000e+00> : vector<1x16xf32>
    %23 = tpu.matmul %21, %5, %cst_16 {dimension_numbers = #tpu.dot_dimension_numbers<[1], [1], [0], [0], [0, 0, 1, 0], [], []>} : vector<1x4xf32>, vector<16x4xf32>, vector<1x16xf32> -> vector<1x16xf32>
    %24 = arith.mulf %23, %3 : vector<1x16xf32>
    %25 = arith.mulf %22, %24 : vector<1x16xf32>
    %26 = arith.subf %4, %25 : vector<1x16xf32>
    %27 = vector.broadcast %24 : vector<1x16xf32> to vector<64x16xf32>
    %28 = arith.mulf %2, %27 : vector<64x16xf32>
    %29 = vector.broadcast %26 : vector<1x16xf32> to vector<64x16xf32>
    %30 = arith.addf %28, %29 : vector<64x16xf32>
    %31 = arith.negf %30 : vector<64x16xf32>
    %32 = math.exp %31 : vector<64x16xf32>
    %cst_17 = arith.constant 1.000000e+00 : f32
    %33 = vector.broadcast %cst_17 : f32 to vector<64x16xf32>
    %34 = arith.addf %33, %32 : vector<64x16xf32>
    %35 = arith.divf %33, %34 : vector<64x16xf32>
    %36 = arith.mulf %30, %35 : vector<64x16xf32>
    %c0_18 = arith.constant 0 : index
    %c0_19 = arith.constant 0 : index
    %37 = vector.load %arg6[%c0_18, %c0_19] : memref<144x16xbf16, #tpu.memory_space<vmem>>, vector<144x16xbf16>
    %cst_20 = arith.constant 0.000000e+00 : f32
    %38 = vector.broadcast %cst_20 : f32 to vector<10x10x16xf32>
    %c0_21 = arith.constant 0 : index
    %c0_22 = arith.constant 0 : index
    %c0_23 = arith.constant 0 : index
    %39 = vector.load %arg11[%c0_21, %c0_22, %c0_23] : memref<10x10x16xf32, #tpu.memory_space<vmem>>, vector<10x10x16xf32>
    tpu.vector_store %arg11[%c0_21, %c0_22, %c0_23], %38 {strides = array<i32>} : memref<10x10x16xf32, #tpu.memory_space<vmem>>, vector<10x10x16xf32>,
    %40 = vector.shape_cast %36 : vector<64x16xf32> to vector<8x8x16xf32>
    %c1 = arith.constant 1 : index
    %c1_24 = arith.constant 1 : index
    %c0_25 = arith.constant 0 : index
    %41 = vector.load %arg11[%c1, %c1_24, %c0_25] : memref<10x10x16xf32, #tpu.memory_space<vmem>>, vector<8x8x16xf32>
    tpu.vector_store %arg11[%c1, %c1_24, %c0_25], %40 {strides = array<i32>} : memref<10x10x16xf32, #tpu.memory_space<vmem>>, vector<8x8x16xf32>,
    %c0_26 = arith.constant 0 : index
    %c0_27 = arith.constant 0 : index
    %c0_28 = arith.constant 0 : index
    %42 = vector.load %arg11[%c0_26, %c0_27, %c0_28] : memref<10x10x16xf32, #tpu.memory_space<vmem>>, vector<8x8x16xf32>
    %43 = vector.shape_cast %42 : vector<8x8x16xf32> to vector<64x16xf32>
    %c0_29 = arith.constant 0 : index
    %c1_30 = arith.constant 1 : index
    %c0_31 = arith.constant 0 : index
    %44 = vector.load %arg11[%c0_29, %c1_30, %c0_31] : memref<10x10x16xf32, #tpu.memory_space<vmem>>, vector<8x8x16xf32>
    %45 = vector.shape_cast %44 : vector<8x8x16xf32> to vector<64x16xf32>
    %c0_32 = arith.constant 0 : index
    %c2 = arith.constant 2 : index
    %c0_33 = arith.constant 0 : index
    %46 = vector.load %arg11[%c0_32, %c2, %c0_33] : memref<10x10x16xf32, #tpu.memory_space<vmem>>, vector<8x8x16xf32>
    %47 = vector.shape_cast %46 : vector<8x8x16xf32> to vector<64x16xf32>
    %c1_34 = arith.constant 1 : index
    %c0_35 = arith.constant 0 : index
    %c0_36 = arith.constant 0 : index
    %48 = vector.load %arg11[%c1_34, %c0_35, %c0_36] : memref<10x10x16xf32, #tpu.memory_space<vmem>>, vector<8x8x16xf32>
    %49 = vector.shape_cast %48 : vector<8x8x16xf32> to vector<64x16xf32>
    %c1_37 = arith.constant 1 : index
    %c1_38 = arith.constant 1 : index
    %c0_39 = arith.constant 0 : index
    %50 = vector.load %arg11[%c1_37, %c1_38, %c0_39] : memref<10x10x16xf32, #tpu.memory_space<vmem>>, vector<8x8x16xf32>
    %51 = vector.shape_cast %50 : vector<8x8x16xf32> to vector<64x16xf32>
    %c1_40 = arith.constant 1 : index
    %c2_41 = arith.constant 2 : index
    %c0_42 = arith.constant 0 : index
    %52 = vector.load %arg11[%c1_40, %c2_41, %c0_42] : memref<10x10x16xf32, #tpu.memory_space<vmem>>, vector<8x8x16xf32>
    %53 = vector.shape_cast %52 : vector<8x8x16xf32> to vector<64x16xf32>
    %c2_43 = arith.constant 2 : index
    %c0_44 = arith.constant 0 : index
    %c0_45 = arith.constant 0 : index
    %54 = vector.load %arg11[%c2_43, %c0_44, %c0_45] : memref<10x10x16xf32, #tpu.memory_space<vmem>>, vector<8x8x16xf32>
    %55 = vector.shape_cast %54 : vector<8x8x16xf32> to vector<64x16xf32>
    %c2_46 = arith.constant 2 : index
    %c1_47 = arith.constant 1 : index
    %c0_48 = arith.constant 0 : index
    %56 = vector.load %arg11[%c2_46, %c1_47, %c0_48] : memref<10x10x16xf32, #tpu.memory_space<vmem>>, vector<8x8x16xf32>
    %57 = vector.shape_cast %56 : vector<8x8x16xf32> to vector<64x16xf32>
    %c2_49 = arith.constant 2 : index
    %c2_50 = arith.constant 2 : index
    %c0_51 = arith.constant 0 : index
    %58 = vector.load %arg11[%c2_49, %c2_50, %c0_51] : memref<10x10x16xf32, #tpu.memory_space<vmem>>, vector<8x8x16xf32>
    %59 = vector.shape_cast %58 : vector<8x8x16xf32> to vector<64x16xf32>
    %60 = tpu.concatenate %43, %45, %47, %49, %51, %53, %55, %57, %59 in 1 : vector<64x16xf32>, vector<64x16xf32>, vector<64x16xf32>, vector<64x16xf32>, vector<64x16xf32>, vector<64x16xf32>, vector<64x16xf32>, vector<64x16xf32>, vector<64x16xf32> -> vector<64x144xf32>
    %61 = arith.truncf %60 : vector<64x144xf32> to vector<64x144xbf16>
    %cst_52 = arith.constant dense<0.000000e+00> : vector<64x16xf32>
    %62 = tpu.matmul %61, %37, %cst_52 {dimension_numbers = #tpu.dot_dimension_numbers<[1], [0], [0], [1], [0, 0, 1, 1], [], []>} : vector<64x144xbf16>, vector<144x16xbf16>, vector<64x16xf32> -> vector<64x16xf32>
    %c0_53 = arith.constant 0 : index
    %c0_54 = arith.constant 0 : index
    %63 = vector.load %arg7[%c0_53, %c0_54] : memref<1x16xf32, #tpu.memory_space<vmem>>, vector<1x16xf32>
    %64 = vector.broadcast %63 : vector<1x16xf32> to vector<64x16xf32>
    %65 = arith.addf %62, %64 : vector<64x16xf32>
    %c0_55 = arith.constant 0 : index
    %c0_56 = arith.constant 0 : index
    %c0_57 = arith.constant 0 : index
    %c0_58 = arith.constant 0 : index
    %66 = vector.load %arg2[%c0_55, %c0_56, %c0_57, %c0_58] : memref<1x8x8x8xf32, #tpu.memory_space<vmem>>, vector<1x8x8x8xf32>
    %67 = vector.shape_cast %66 : vector<1x8x8x8xf32> to vector<8x8x8xf32>
    %68 = vector.shape_cast %67 : vector<8x8x8xf32> to vector<64x8xf32>
    %69 = arith.truncf %68 : vector<64x8xf32> to vector<64x8xbf16>
    %c0_59 = arith.constant 0 : index
    %c0_60 = arith.constant 0 : index
    %70 = vector.load %arg8[%c0_59, %c0_60] : memref<8x16xbf16, #tpu.memory_space<vmem>>, vector<8x16xbf16>
    %cst_61 = arith.constant dense<0.000000e+00> : vector<64x16xf32>
    %71 = tpu.matmul %69, %70, %cst_61 {dimension_numbers = #tpu.dot_dimension_numbers<[1], [0], [0], [1], [0, 0, 1, 1], [], []>} : vector<64x8xbf16>, vector<8x16xbf16>, vector<64x16xf32> -> vector<64x16xf32>
    %c0_62 = arith.constant 0 : index
    %c0_63 = arith.constant 0 : index
    %72 = vector.load %arg9[%c0_62, %c0_63] : memref<1x16xf32, #tpu.memory_space<vmem>>, vector<1x16xf32>
    %73 = vector.broadcast %72 : vector<1x16xf32> to vector<64x16xf32>
    %74 = arith.addf %71, %73 : vector<64x16xf32>
    %75 = arith.addf %65, %74 : vector<64x16xf32>
    %76 = vector.shape_cast %75 : vector<64x16xf32> to vector<8x8x16xf32>
    %c0_64 = arith.constant 0 : index
    %c0_65 = arith.constant 0 : index
    %c0_66 = arith.constant 0 : index
    %c0_67 = arith.constant 0 : index
    %77 = vector.load %arg10[%c0_64, %c0_65, %c0_66, %c0_67] : memref<1x8x8x16xf32, #tpu.memory_space<vmem>>, vector<1x8x8x16xf32>
    %78 = vector.shape_cast %77 : vector<1x8x8x16xf32> to vector<8x8x16xf32>
    %79 = vector.shape_cast %76 : vector<8x8x16xf32> to vector<1x8x8x16xf32>
    tpu.vector_store %arg10[%c0_64, %c0_65, %c0_66, %c0_67], %79 {strides = array<i32>} : memref<1x8x8x16xf32, #tpu.memory_space<vmem>>, vector<1x8x8x16xf32>,
    return
  }
  func.func @transform_0(%arg0: i32) -> (i32, i32, i32, i32) {
    %c0_i32 = arith.constant 0 : i32
    %c0_i32_0 = arith.constant 0 : i32
    %c0_i32_1 = arith.constant 0 : i32
    %c0_i32_2 = arith.constant 0 : i32
    return %arg0, %c0_i32, %c0_i32_0, %c0_i32_1 : i32, i32, i32, i32
  }
  func.func @transform_1(%arg0: i32) -> (i32, i32, i32, i32) {
    %c0_i32 = arith.constant 0 : i32
    %c0_i32_0 = arith.constant 0 : i32
    %c0_i32_1 = arith.constant 0 : i32
    %c0_i32_2 = arith.constant 0 : i32
    return %arg0, %c0_i32, %c0_i32_0, %c0_i32_1 : i32, i32, i32, i32
  }
  func.func @transform_2(%arg0: i32) -> (i32, i32) {
    %c0_i32 = arith.constant 0 : i32
    %c0_i32_0 = arith.constant 0 : i32
    %c0_i32_1 = arith.constant 0 : i32
    return %c0_i32, %c0_i32_0 : i32, i32
  }
  func.func @transform_3(%arg0: i32) -> (i32, i32) {
    %c0_i32 = arith.constant 0 : i32
    %c0_i32_0 = arith.constant 0 : i32
    %c0_i32_1 = arith.constant 0 : i32
    return %c0_i32, %c0_i32_0 : i32, i32
  }
  func.func @transform_4(%arg0: i32) -> (i32, i32) {
    %c0_i32 = arith.constant 0 : i32
    %c0_i32_0 = arith.constant 0 : i32
    %c0_i32_1 = arith.constant 0 : i32
    return %c0_i32, %c0_i32_0 : i32, i32
  }
  func.func @transform_5(%arg0: i32) -> (i32, i32) {
    %c0_i32 = arith.constant 0 : i32
    %c0_i32_0 = arith.constant 0 : i32
    %c0_i32_1 = arith.constant 0 : i32
    return %c0_i32, %c0_i32_0 : i32, i32
  }
  func.func @transform_6(%arg0: i32) -> (i32, i32) {
    %c0_i32 = arith.constant 0 : i32
    %c0_i32_0 = arith.constant 0 : i32
    %c0_i32_1 = arith.constant 0 : i32
    return %c0_i32, %c0_i32_0 : i32, i32
  }
  func.func @transform_7(%arg0: i32) -> (i32, i32) {
    %c0_i32 = arith.constant 0 : i32
    %c0_i32_0 = arith.constant 0 : i32
    %c0_i32_1 = arith.constant 0 : i32
    return %c0_i32, %c0_i32_0 : i32, i32
  }
  func.func @transform_8(%arg0: i32) -> (i32, i32) {
    %c0_i32 = arith.constant 0 : i32
    %c0_i32_0 = arith.constant 0 : i32
    %c0_i32_1 = arith.constant 0 : i32
    return %c0_i32, %c0_i32_0 : i32, i32
  }
  func.func @transform_9(%arg0: i32) -> (i32, i32, i32, i32) {
    %c0_i32 = arith.constant 0 : i32
    %c0_i32_0 = arith.constant 0 : i32
    %c0_i32_1 = arith.constant 0 : i32
    %c0_i32_2 = arith.constant 0 : i32
    return %arg0, %c0_i32, %c0_i32_0, %c0_i32_1 : i32, i32, i32, i32
  }
}

module attributes {stable_mosaic.version = 11 : i64} {
  func.func @_attn_kernel(%arg0: i32, %arg1: memref<1x64x16xf32, #tpu.memory_space<vmem>>, %arg2: memref<1x16xf32, #tpu.memory_space<vmem>>, %arg3: memref<1x16xf32, #tpu.memory_space<vmem>>, %arg4: memref<16x4xf32, #tpu.memory_space<vmem>>, %arg5: memref<16x384xbf16, #tpu.memory_space<vmem>>, %arg6: memref<16x16xbf16, #tpu.memory_space<vmem>>, %arg7: memref<1x16xf32, #tpu.memory_space<vmem>>, %arg8: memref<1x64x16xf32, #tpu.memory_space<vmem>>) attributes {dimension_semantics = [#tpu.dimension_semantics<parallel>], iteration_bounds = array<i64: 2>, scalar_prefetch = 0 : i64, scratch_operands = 0 : i64, tpu.core_type = #tpu.core_type<tc>, window_params = [{transform_indices = @transform_0, window_bounds = array<i64: 1, 64, 16>}, {pipeline_mode = #tpu.pipeline_mode<synchronous>, transform_indices = @transform_1, window_bounds = array<i64: 1, 16>}, {pipeline_mode = #tpu.pipeline_mode<synchronous>, transform_indices = @transform_2, window_bounds = array<i64: 1, 16>}, {pipeline_mode = #tpu.pipeline_mode<synchronous>, transform_indices = @transform_3, window_bounds = array<i64: 16, 4>}, {pipeline_mode = #tpu.pipeline_mode<synchronous>, transform_indices = @transform_4, window_bounds = array<i64: 16, 384>}, {pipeline_mode = #tpu.pipeline_mode<synchronous>, transform_indices = @transform_5, window_bounds = array<i64: 16, 16>}, {pipeline_mode = #tpu.pipeline_mode<synchronous>, transform_indices = @transform_6, window_bounds = array<i64: 1, 16>}, {transform_indices = @transform_7, window_bounds = array<i64: 1, 64, 16>}]} {
    %c0 = arith.constant 0 : index
    %c0_0 = arith.constant 0 : index
    %c0_1 = arith.constant 0 : index
    %0 = vector.load %arg1[%c0, %c0_0, %c0_1] : memref<1x64x16xf32, #tpu.memory_space<vmem>>, vector<1x64x16xf32>
    %1 = vector.shape_cast %0 : vector<1x64x16xf32> to vector<64x16xf32>
    %c0_2 = arith.constant 0 : index
    %c0_3 = arith.constant 0 : index
    %2 = vector.load %arg2[%c0_2, %c0_3] : memref<1x16xf32, #tpu.memory_space<vmem>>, vector<1x16xf32>
    %c0_4 = arith.constant 0 : index
    %c0_5 = arith.constant 0 : index
    %3 = vector.load %arg3[%c0_4, %c0_5] : memref<1x16xf32, #tpu.memory_space<vmem>>, vector<1x16xf32>
    %c0_6 = arith.constant 0 : index
    %c0_7 = arith.constant 0 : index
    %4 = vector.load %arg4[%c0_6, %c0_7] : memref<16x4xf32, #tpu.memory_space<vmem>>, vector<16x4xf32>
    %cst = arith.constant dense<0.000000e+00> : vector<16xf32>
    %5 = vector.multi_reduction <add>, %1, %cst [0] : vector<64x16xf32> to vector<16xf32>
    %6 = vector.shape_cast %5 : vector<16xf32> to vector<1x16xf32>
    %7 = arith.mulf %1, %1 : vector<64x16xf32>
    %cst_8 = arith.constant dense<0.000000e+00> : vector<16xf32>
    %8 = vector.multi_reduction <add>, %7, %cst_8 [0] : vector<64x16xf32> to vector<16xf32>
    %9 = vector.shape_cast %8 : vector<16xf32> to vector<1x16xf32>
    %cst_9 = arith.constant dense<0.000000e+00> : vector<1x4xf32>
    %10 = tpu.matmul %6, %4, %cst_9 {dimension_numbers = #tpu.dot_dimension_numbers<[1], [0], [0], [1], [0, 0, 1, 1], [], []>} : vector<1x16xf32>, vector<16x4xf32>, vector<1x4xf32> -> vector<1x4xf32>
    %cst_10 = arith.constant 3.906250e-03 : f32
    %11 = vector.broadcast %cst_10 : f32 to vector<1x4xf32>
    %12 = arith.mulf %10, %11 : vector<1x4xf32>
    %cst_11 = arith.constant dense<0.000000e+00> : vector<1x4xf32>
    %13 = tpu.matmul %9, %4, %cst_11 {dimension_numbers = #tpu.dot_dimension_numbers<[1], [0], [0], [1], [0, 0, 1, 1], [], []>} : vector<1x16xf32>, vector<16x4xf32>, vector<1x4xf32> -> vector<1x4xf32>
    %cst_12 = arith.constant 3.906250e-03 : f32
    %14 = vector.broadcast %cst_12 : f32 to vector<1x4xf32>
    %15 = arith.mulf %13, %14 : vector<1x4xf32>
    %16 = arith.mulf %12, %12 : vector<1x4xf32>
    %17 = arith.subf %15, %16 : vector<1x4xf32>
    %cst_13 = arith.constant 9.99999974E-6 : f32
    %18 = vector.broadcast %cst_13 : f32 to vector<1x4xf32>
    %19 = arith.addf %17, %18 : vector<1x4xf32>
    %20 = math.rsqrt %19 : vector<1x4xf32>
    %cst_14 = arith.constant dense<0.000000e+00> : vector<1x16xf32>
    %21 = tpu.matmul %12, %4, %cst_14 {dimension_numbers = #tpu.dot_dimension_numbers<[1], [1], [0], [0], [0, 0, 1, 0], [], []>} : vector<1x4xf32>, vector<16x4xf32>, vector<1x16xf32> -> vector<1x16xf32>
    %cst_15 = arith.constant dense<0.000000e+00> : vector<1x16xf32>
    %22 = tpu.matmul %20, %4, %cst_15 {dimension_numbers = #tpu.dot_dimension_numbers<[1], [1], [0], [0], [0, 0, 1, 0], [], []>} : vector<1x4xf32>, vector<16x4xf32>, vector<1x16xf32> -> vector<1x16xf32>
    %23 = arith.mulf %22, %2 : vector<1x16xf32>
    %24 = arith.mulf %21, %23 : vector<1x16xf32>
    %25 = arith.subf %3, %24 : vector<1x16xf32>
    %26 = vector.broadcast %23 : vector<1x16xf32> to vector<64x16xf32>
    %27 = arith.mulf %1, %26 : vector<64x16xf32>
    %28 = vector.broadcast %25 : vector<1x16xf32> to vector<64x16xf32>
    %29 = arith.addf %27, %28 : vector<64x16xf32>
    %30 = arith.truncf %29 : vector<64x16xf32> to vector<64x16xbf16>
    %c0_16 = arith.constant 0 : index
    %c0_17 = arith.constant 0 : index
    %31 = vector.load %arg5[%c0_16, %c0_17] : memref<16x384xbf16, #tpu.memory_space<vmem>>, vector<16x384xbf16>
    %cst_18 = arith.constant dense<0.000000e+00> : vector<64x384xf32>
    %32 = tpu.matmul %30, %31, %cst_18 {dimension_numbers = #tpu.dot_dimension_numbers<[1], [0], [0], [1], [0, 0, 1, 1], [], []>} : vector<64x16xbf16>, vector<16x384xbf16>, vector<64x384xf32> -> vector<64x384xf32>
    %33 = vector.extract_strided_slice %32 {offsets = [0, 0], sizes = [64, 16], strides = [1, 1]} : vector<64x384xf32> to vector<64x16xf32>
    %34 = arith.truncf %33 : vector<64x16xf32> to vector<64x16xbf16>
    %35 = vector.extract_strided_slice %32 {offsets = [0, 128], sizes = [64, 16], strides = [1, 1]} : vector<64x384xf32> to vector<64x16xf32>
    %36 = arith.truncf %35 : vector<64x16xf32> to vector<64x16xbf16>
    %37 = vector.extract_strided_slice %32 {offsets = [0, 256], sizes = [64, 16], strides = [1, 1]} : vector<64x384xf32> to vector<64x16xf32>
    %38 = arith.truncf %37 : vector<64x16xf32> to vector<64x16xbf16>
    %cst_19 = arith.constant dense<0.000000e+00> : vector<64x64xf32>
    %39 = tpu.matmul %34, %36, %cst_19 {dimension_numbers = #tpu.dot_dimension_numbers<[1], [1], [0], [0], [0, 0, 1, 0], [], []>} : vector<64x16xbf16>, vector<64x16xbf16>, vector<64x64xf32> -> vector<64x64xf32>
    %cst_20 = arith.constant dense<0xFF800000> : vector<64xf32>
    %40 = vector.multi_reduction <maximumf>, %39, %cst_20 [1] : vector<64x64xf32> to vector<64xf32>
    %41 = vector.shape_cast %40 : vector<64xf32> to vector<64x1xf32>
    %42 = vector.broadcast %41 : vector<64x1xf32> to vector<64x64xf32>
    %43 = arith.subf %39, %42 : vector<64x64xf32>
    %44 = math.exp %43 : vector<64x64xf32>
    %cst_21 = arith.constant dense<0.000000e+00> : vector<64xf32>
    %45 = vector.multi_reduction <add>, %44, %cst_21 [1] : vector<64x64xf32> to vector<64xf32>
    %46 = vector.shape_cast %45 : vector<64xf32> to vector<64x1xf32>
    %47 = tpu.reciprocal %46 {approx = true} : vector<64x1xf32> -> vector<64x1xf32>
    %48 = vector.broadcast %47 : vector<64x1xf32> to vector<64x64xf32>
    %49 = arith.mulf %44, %48 : vector<64x64xf32>
    %50 = arith.truncf %49 : vector<64x64xf32> to vector<64x64xbf16>
    %cst_22 = arith.constant dense<0.000000e+00> : vector<64x16xf32>
    %51 = tpu.matmul %50, %38, %cst_22 {dimension_numbers = #tpu.dot_dimension_numbers<[1], [0], [0], [1], [0, 0, 1, 1], [], []>} : vector<64x64xbf16>, vector<64x16xbf16>, vector<64x16xf32> -> vector<64x16xf32>
    %52 = arith.truncf %51 : vector<64x16xf32> to vector<64x16xbf16>
    %c0_23 = arith.constant 0 : index
    %c0_24 = arith.constant 0 : index
    %53 = vector.load %arg6[%c0_23, %c0_24] : memref<16x16xbf16, #tpu.memory_space<vmem>>, vector<16x16xbf16>
    %cst_25 = arith.constant dense<0.000000e+00> : vector<64x16xf32>
    %54 = tpu.matmul %52, %53, %cst_25 {dimension_numbers = #tpu.dot_dimension_numbers<[1], [0], [0], [1], [0, 0, 1, 1], [], []>} : vector<64x16xbf16>, vector<16x16xbf16>, vector<64x16xf32> -> vector<64x16xf32>
    %c0_26 = arith.constant 0 : index
    %c0_27 = arith.constant 0 : index
    %55 = vector.load %arg7[%c0_26, %c0_27] : memref<1x16xf32, #tpu.memory_space<vmem>>, vector<1x16xf32>
    %56 = vector.broadcast %55 : vector<1x16xf32> to vector<64x16xf32>
    %57 = arith.addf %54, %56 : vector<64x16xf32>
    %58 = arith.addf %57, %1 : vector<64x16xf32>
    %c0_28 = arith.constant 0 : index
    %c0_29 = arith.constant 0 : index
    %c0_30 = arith.constant 0 : index
    %59 = vector.load %arg8[%c0_28, %c0_29, %c0_30] : memref<1x64x16xf32, #tpu.memory_space<vmem>>, vector<1x64x16xf32>
    %60 = vector.shape_cast %59 : vector<1x64x16xf32> to vector<64x16xf32>
    %61 = vector.shape_cast %58 : vector<64x16xf32> to vector<1x64x16xf32>
    tpu.vector_store %arg8[%c0_28, %c0_29, %c0_30], %61 {strides = array<i32>} : memref<1x64x16xf32, #tpu.memory_space<vmem>>, vector<1x64x16xf32>,
    return
  }
  func.func @transform_0(%arg0: i32) -> (i32, i32, i32) {
    %c0_i32 = arith.constant 0 : i32
    %c0_i32_0 = arith.constant 0 : i32
    %c0_i32_1 = arith.constant 0 : i32
    return %arg0, %c0_i32, %c0_i32_0 : i32, i32, i32
  }
  func.func @transform_1(%arg0: i32) -> (i32, i32) {
    %c0_i32 = arith.constant 0 : i32
    %c0_i32_0 = arith.constant 0 : i32
    %c0_i32_1 = arith.constant 0 : i32
    return %c0_i32, %c0_i32_0 : i32, i32
  }
  func.func @transform_2(%arg0: i32) -> (i32, i32) {
    %c0_i32 = arith.constant 0 : i32
    %c0_i32_0 = arith.constant 0 : i32
    %c0_i32_1 = arith.constant 0 : i32
    return %c0_i32, %c0_i32_0 : i32, i32
  }
  func.func @transform_3(%arg0: i32) -> (i32, i32) {
    %c0_i32 = arith.constant 0 : i32
    %c0_i32_0 = arith.constant 0 : i32
    %c0_i32_1 = arith.constant 0 : i32
    return %c0_i32, %c0_i32_0 : i32, i32
  }
  func.func @transform_4(%arg0: i32) -> (i32, i32) {
    %c0_i32 = arith.constant 0 : i32
    %c0_i32_0 = arith.constant 0 : i32
    %c0_i32_1 = arith.constant 0 : i32
    return %c0_i32, %c0_i32_0 : i32, i32
  }
  func.func @transform_5(%arg0: i32) -> (i32, i32) {
    %c0_i32 = arith.constant 0 : i32
    %c0_i32_0 = arith.constant 0 : i32
    %c0_i32_1 = arith.constant 0 : i32
    return %c0_i32, %c0_i32_0 : i32, i32
  }
  func.func @transform_6(%arg0: i32) -> (i32, i32) {
    %c0_i32 = arith.constant 0 : i32
    %c0_i32_0 = arith.constant 0 : i32
    %c0_i32_1 = arith.constant 0 : i32
    return %c0_i32, %c0_i32_0 : i32, i32
  }
  func.func @transform_7(%arg0: i32) -> (i32, i32, i32) {
    %c0_i32 = arith.constant 0 : i32
    %c0_i32_0 = arith.constant 0 : i32
    %c0_i32_1 = arith.constant 0 : i32
    return %arg0, %c0_i32, %c0_i32_0 : i32, i32, i32
  }
}

</mosaic_0001>

<bundles_post_ra>
// kernel: resnet_block_with_attn.5
= control target key start
LH: loop header
LB: loop body
LE: loop exit
PB: predicated region body
PF: predicated region fallthrough
CT: control target
= control target key end

     0   :  { %s2660_s0 = inlined_call_operand.hbm [shape: f32[2,64,16], index: 0, kind: input, shape index: {}]   ;;  %s2661_s1 = inlined_call_operand.hbm [shape: f32[1,16], index: 1, kind: input, shape index: {}]   ;;  %s2662_s2 = inlined_call_operand.hbm [shape: f32[1,16], index: 2, kind: input, shape index: {}]   ;;  %s2663_s3 = inlined_call_operand.hbm [shape: f32[16,4], index: 3, kind: input, shape index: {}]   ;;  %s2664_s4 = inlined_call_operand.hbm [shape: bf16[16,384], index: 4, kind: input, shape index: {}]   ;;  %s2665_s5 = inlined_call_operand.hbm [shape: bf16[16,16], index: 5, kind: input, shape index: {}]   ;;  %s2666_s6 = inlined_call_operand.hbm [shape: f32[1,16], index: 6, kind: input, shape index: {}]   ;;  %s2667_s7 = inlined_call_operand.hbm [shape: f32[2,64,16], index: 7, kind: output, shape index: {}]  }
   0x1   :  { %2673 = sst [smem:[#allocation20_spill]] %s2661_s1 }
   0x2   :  { %12 = vsyncpa [#allocation3], 0 }
   0x3   :  { %14 = vsyncpa [#allocation3 + $0x1], 0 }
   0x4   :  { %15 = vsyncpa [#allocation6], 0 }
   0x5   :  { %16 = vsyncpa [#allocation9], 0 }
   0x6   :  { %17 = vsyncpa [#allocation12], 0 }
   0x7   :  { %18 = vsyncpa [#allocation4], 0 }
   0x8   :  { %20 = vsyncpa [#allocation4 + $0x1], 0  ;;  %s2170_s24 = smov 0   ;;  %s2172_s25 = smov 0  }
   0x9   :  { %s2174_s26 = smov 0   ;;  %s2176_s27 = smov 0  }
   0xa LB: > { %s2110_s28 = smov [#allocation5]   ;;  %s2191_s30 = sadd.s32 4294967295, %s2108_s27   ;;  %s2108_s27 = sphi %s2176_s27, %s2699_s27   ;;  %s2104_s26 = sphi %s2174_s26, %s2698_s26   ;;  %s2100_s25 = sphi %s2172_s25, %s2697_s25   ;;  %s2096_s24 = sphi %s2170_s24, %s2696_s24  }
   0xb   : > { %s222_s29 = sshll.u32 %s2110_s28, 4  ;;  %p1478_p0 = scmp.ge.s32.totalorder %s2108_s27, 1  ;;  %s2196_s29 = int_to_ptr.vmem [resolvable:$true] %s222_s29 }
   0xc   : > { %p2670_p1 = scmp.eq.s32.totalorder %s2191_s30, 0  ;;  %p209_p2 = scmp.lt.s32.totalorder %s2108_s27, 3 }
   0xd   : > { %s2111_s9 = smov [#allocation8]   ;;  %s2112_s12 = smov [#allocation11]  }
   0xe   : > { %p2198_p3 = pnand %p1478_p0, %p209_p2  ;;  %s243_s10 = sshll.u32 %s2111_s9, 4  ;;  %s2205_s10 = int_to_ptr.vmem [resolvable:$true] %s243_s10 }
   0xf   : > { %s269_s13 = sshll.u32 %s2112_s12, 4  ;;  %s2676_s1 = sld [smem:[#allocation20_spill]]  ;;  %s2213_s13 = int_to_ptr.vmem [resolvable:$true] %s269_s13 }
  0x10   : > { %s2674_s8 = scalar_select %p2198_p3, 1, 0 }
  0x11   : > { %p1702_p5 = pneg %p2198_p3 }
  0x13   : > { %p2209_p6 = pnand %p1702_p5, %p2670_p1 }
  0x15   : > { %s1832_s16 = scalar_lea.hbm %s2676_s1, 16  ;;  %p2223_p8 = pneg %p2209_p6 }
  0x16   : > { %p1833_p7 = scmp.ne.s32.totalorder %s2676_s1, %s1832_s16  ;;  %p1839_p11 = scmp.lt.u32.totalorder %s1832_s16, %s2676_s1 }
  0x18   : > { %p1835_p9 = pnand %p2223_p8, %p1833_p7 }
  0x1a   : > { %p1836_p10 = pneg %p1835_p9 }
  0x1c   : > { %p1841_p12 = pnand %p1839_p11, %p1836_p10 }
  0x1e   : > { %1844 = shalt.err (!%p1841_p12)
}
  0x1f   : > { %s1845_s22 = scalar_lea.vmem %s2196_s29, 16  ;;  %s1852_s23 = scalar_lea.vmem %s2196_s29, 32 }
  0x20   : > { %p1846_p13 = scmp.ne.s32.totalorder %s2196_s29, %s1845_s22  ;;  %p1853_p5 = scmp.lt.s32.totalorder %s2196_s29, %s2196_s29 }
  0x21   : > { %p1854_p7 = scmp.lt.s32.totalorder %s1852_s23, %s1845_s22 }
  0x22   : > { %p1848_p0 = pnand %p1846_p13, %p2223_p8 }
  0x23   : > { %p1855_p9 = por %p1854_p7, %p1853_p5 }
  0x24   : > { %p1849_p2 = pneg %p1848_p0 }
  0x26   : > { %p1856_p4 = pnand %p1855_p9, %p1849_p2 }
  0x28   : > { %1859 = shalt.err (!%p1856_p4)
}
  0x29   : > { %1705 = dma.hbm_to_vmem [thread:$0]  (!%p2209_p6), %s2676_s1, 16, %s2196_s29, [#allocation6]  }
  0x2a   : > { %s1860_s15 = scalar_lea.hbm %s2663_s3, 256 }
  0x2b   : > { %p1861_p10 = scmp.ne.s32.totalorder %s2663_s3, %s1860_s15  ;;  %p1867_p4 = scmp.lt.u32.totalorder %s1860_s15, %s2663_s3 }
  0x2d   : > { %p1863_p11 = pnand %p1861_p10, %p2223_p8 }
  0x2f   : > { %p1864_p12 = pneg %p1863_p11 }
  0x31   : > { %p1869_p13 = pnand %p1867_p4, %p1864_p12 }
  0x33   : > { %1872 = shalt.err (!%p1869_p13)
}
  0x34   : > { %s1873_s29 = scalar_lea.vmem %s2205_s10, 256  ;;  %p1881_p7 = scmp.lt.s32.totalorder %s2205_s10, %s2205_s10 }
  0x35   : > { %p1874_p0 = scmp.ne.s32.totalorder %s2205_s10, %s1873_s29  ;;  %p1882_p9 = scmp.lt.s32.totalorder %s1873_s29, %s1873_s29 }
  0x37   : > { %p1876_p2 = pnand %p1874_p0, %p2223_p8  ;;  %p1883_p10 = por %p1882_p9, %p1881_p7 }
  0x39   : > { %p1877_p5 = pneg %p1876_p2 }
  0x3b   : > { %p1884_p11 = pnand %p1883_p10, %p1877_p5 }
  0x3d   : > { %1887 = shalt.err (!%p1884_p11)
}
  0x3e   : > { %s2668_s21 = smov 128   ;;  %s2669_s22 = smov 8  }
  0x3f   : > { %1711 = dma.hbm_to_vmem [thread:$0]  (!%p2209_p6), %s2663_s3, 256, %s2205_s10, [#allocation9], %s2668_s21, %s2668_s21, %s2669_s22  }
  0x40   : > { %s1888_s14 = scalar_lea.hbm %s2665_s5, 128 }
  0x41   : > { %p1889_p12 = scmp.ne.s32.totalorder %s2665_s5, %s1888_s14  ;;  %p1895_p0 = scmp.lt.u32.totalorder %s1888_s14, %s2665_s5 }
  0x43   : > { %p1891_p4 = pnand %p1889_p12, %p2223_p8 }
  0x45   : > { %p1892_p13 = pneg %p1891_p4 }
  0x47   : > { %p1897_p2 = pnand %p1895_p0, %p1892_p13 }
  0x49   : > { %1900 = shalt.err (!%p1897_p2)
}
  0x4a   : > { %s1901_s10 = scalar_lea.vmem %s2213_s13, 128  ;;  %p1909_p10 = scmp.lt.s32.totalorder %s2213_s13, %s2213_s13 }
  0x4b   : > { %p1902_p5 = scmp.ne.s32.totalorder %s2213_s13, %s1901_s10  ;;  %p1910_p11 = scmp.lt.s32.totalorder %s1901_s10, %s1901_s10 }
  0x4d   : > { %p1904_p7 = pnand %p1902_p5, %p2223_p8  ;;  %p1911_p12 = por %p1910_p11, %p1909_p10 }
  0x4f   : > { %p1905_p9 = pneg %p1904_p7 }
  0x51   : > { %p1912_p4 = pnand %p1911_p12, %p1905_p9 }
  0x53   : > { %1915 = shalt.err (!%p1912_p4)
}
  0x54   : > { %s2115_s20 = smov 64   ;;  %s2116_s29 = smov 4  }
  0x55   : > { %1717 = dma.hbm_to_vmem [thread:$0]  (!%p2209_p6), %s2665_s5, 128, %s2213_s13, [#allocation12], %s2115_s20, %s2115_s20, %s2116_s29  }
  0x56   : > { %s2117_s9 = smov [#allocation7]   ;;  %s2118_s14 = smov [#allocation10]  }
  0x57   : > { %s233_s12 = sshll.u32 %s2117_s9, 4  ;;  %s256_s15 = sshll.u32 %s2118_s14, 4  ;;  %s234_s12 = int_to_ptr.vmem [resolvable:$true] %s233_s12  ;;  %s257_s15 = int_to_ptr.vmem [resolvable:$true] %s256_s15 }
  0x58   : > { %s1916_s18 = scalar_lea.hbm %s2662_s2, 16 }
  0x59   : > { %p1917_p13 = scmp.ne.s32.totalorder %s2662_s2, %s1916_s18  ;;  %p1923_p5 = scmp.lt.u32.totalorder %s1916_s18, %s2662_s2 }
  0x5b   : > { %p1919_p0 = pnand %p1917_p13, %p2223_p8 }
  0x5d   : > { %p1920_p2 = pneg %p1919_p0 }
  0x5f   : > { %p1925_p7 = pnand %p1923_p5, %p1920_p2 }
  0x61   : > { %1928 = shalt.err (!%p1925_p7)
}
  0x62   : > { %s1929_s13 = scalar_lea.vmem %s234_s12, 16  ;;  %s1936_s20 = scalar_lea.vmem %s234_s12, 32 }
  0x63   : > { %p1930_p9 = scmp.ne.s32.totalorder %s234_s12, %s1929_s13  ;;  %p1937_p12 = scmp.lt.s32.totalorder %s234_s12, %s234_s12 }
  0x64   : > { %p1938_p4 = scmp.lt.s32.totalorder %s1936_s20, %s1929_s13 }
  0x65   : > { %p1932_p10 = pnand %p1930_p9, %p2223_p8 }
  0x66   : > { %p1939_p1 = por %p1938_p4, %p1937_p12 }
  0x67   : > { %p1933_p11 = pneg %p1932_p10 }
  0x69   : > { %p1940_p3 = pnand %p1939_p1, %p1933_p11 }
  0x6b   : > { %1943 = shalt.err (!%p1940_p3)
}
  0x6c   : > { %1708 = dma.hbm_to_vmem [thread:$0]  (!%p2209_p6), %s2662_s2, 16, %s234_s12, [#allocation6]  }
  0x6d   : > { %s1944_s23 = scalar_lea.hbm %s2664_s4, 384 }
  0x6e   : > { %p1945_p13 = scmp.ne.s32.totalorder %s2664_s4, %s1944_s23  ;;  %p1951_p3 = scmp.lt.u32.totalorder %s1944_s23, %s2664_s4 }
  0x70   : > { %p1947_p0 = pnand %p1945_p13, %p2223_p8 }
  0x72   : > { %p1948_p1 = pneg %p1947_p0 }
  0x74   : > { %p1953_p2 = pnand %p1951_p3, %p1948_p1 }
  0x76   : > { %1956 = shalt.err (!%p1953_p2)
}
  0x77   : > { %s1957_s17 = scalar_lea.vmem %s257_s15, 384  ;;  %p1965_p10 = scmp.lt.s32.totalorder %s257_s15, %s257_s15 }
  0x78   : > { %p1958_p5 = scmp.ne.s32.totalorder %s257_s15, %s1957_s17  ;;  %p1966_p11 = scmp.lt.s32.totalorder %s1957_s17, %s1957_s17 }
  0x7a   : > { %p1960_p7 = pnand %p1958_p5, %p2223_p8  ;;  %p1967_p12 = por %p1966_p11, %p1965_p10 }
  0x7c   : > { %p1961_p9 = pneg %p1960_p7 }
  0x7e   : > { %p1968_p4 = pnand %p1967_p12, %p1961_p9 }
  0x80   : > { %1971 = shalt.err (!%p1968_p4)
}
  0x81   : > { %s2119_s12 = smov 192   ;;  %s2120_s18 = smov 12  }
  0x82   : > { %1714 = dma.hbm_to_vmem [thread:$0]  (!%p2209_p6), %s2664_s4, 384, %s257_s15, [#allocation9], %s2119_s12, %s2119_s12, %s2120_s18  }
  0x83   : > { %s2121_s20 = smov [#allocation13]   ;;  %s1972_s22 = scalar_lea.hbm %s2666_s6, 16 }
  0x84   : > { %s283_s21 = sshll.u32 %s2121_s20, 4  ;;  %p1973_p13 = scmp.ne.s32.totalorder %s2666_s6, %s1972_s22  ;;  %s284_s21 = int_to_ptr.vmem [resolvable:$true] %s283_s21 }
  0x85   : > { %p1979_p3 = scmp.lt.u32.totalorder %s1972_s22, %s2666_s6 }
  0x86   : > { %p1975_p0 = pnand %p1973_p13, %p2223_p8 }
  0x88   : > { %p1976_p1 = pneg %p1975_p0 }
  0x8a   : > { %p1981_p2 = pnand %p1979_p3, %p1976_p1 }
  0x8c   : > { %1984 = shalt.err (!%p1981_p2)
}
  0x8d   : > { %s1985_s15 = scalar_lea.vmem %s284_s21, 16  ;;  %s1992_s16 = scalar_lea.vmem %s284_s21, 32 }
  0x8e   : > { %p1986_p5 = scmp.ne.s32.totalorder %s284_s21, %s1985_s15  ;;  %p1993_p10 = scmp.lt.s32.totalorder %s284_s21, %s284_s21 }
  0x8f   : > { %p1994_p11 = scmp.lt.s32.totalorder %s1992_s16, %s1985_s15 }
  0x90   : > { %p1988_p7 = pnand %p1986_p5, %p2223_p8 }
  0x91   : > { %p1995_p12 = por %p1994_p11, %p1993_p10 }
  0x92   : > { %p1989_p9 = pneg %p1988_p7 }
  0x94   : > { %p1996_p4 = pnand %p1995_p12, %p1989_p9 }
  0x96   : > { %1999 = shalt.err (!%p1996_p4)
}
  0x97   : > { %1720 = dma.hbm_to_vmem [thread:$0]  (!%p2209_p6), %s2666_s6, 16, %s284_s21, [#allocation12]  }
  0x98   : > { %s1477_s19 = sadd.s32 4294967294, %s2108_s27   ;;  %s2350_s11 = sadd.s32 1, %s2108_s27  }
  0x99   : > { %s30_s18 = ssub.s32 %s2108_s27, %s2350_s11  ;;  %s33_s10 = sadd.s32 1, %s2104_s26 }
  0x9a   : > { %p31_p8 = scmp.eq.s32.totalorder %s30_s18, 0  ;;  %p40_p13 = scmp.ne.s32.totalorder %s2104_s26, %s2100_s25 }
  0x9b   : > { %p41_p0 = scmp.eq.s32.totalorder %s2108_s27, 0  ;;  %p46_p1 = scmp.ne.s32.totalorder %s2100_s25, %s2096_s24 }
  0x9c   : > { %s2361_s13 = scalar_select %p31_p8, %s2104_s26, %s33_s10  }
  0x9d   : > { %p2363_p3 = por %p41_p0, %p40_p13  ;;  %p2679_p2 = scmp.eq.s32.totalorder %s2191_s30, 0 }
  0x9e   : > { %p196_p5 = scmp.eq.s32.totalorder %s2191_s30, 1  ;;  %p202_p7 = scmp.eq.s32.totalorder %s1477_s19, 1 }
  0x9f   : > { %p2369_p6 = por %p2679_p2, %p46_p1  ;;  %p1735_p9 = scmp.lt.s32.totalorder %s2108_s27, 2 }
  0xa0   : > { %s294_s29 = sand.u32 1, %s2104_s26   ;;  %p2376_p10 = por %p196_p5, %p40_p13 }
  0xa1   : > { %p2380_p11 = por %p202_p7, %p46_p1  ;;  %s1486_s23 = sshll.u32 %s294_s29, 6 }
  0xa2   : > { %s2681_s1 = scalar_select %p2376_p10, 1, 0 }
  0xa3   : > { %s2682_s22 = scalar_select %p2380_p11, 1, 0 }
  0xa4   : > { %s1536_s28 = sshll.u32 %s2108_s27, 10  ;;  %s298_s16 = scalar_lea.vmem [#allocation2], %s1486_s23 }
  0xa5   : > { %s2388_s15 = scalar_lea.hbm %s2660_s0, %s1536_s28  ;;  %s305_s17 = sshll.u32 %s298_s16, 4  ;;  %s2390_s17 = int_to_ptr.vmem [resolvable:$true] %s305_s17 }
  0xa6   : > { %p2394_p12 = pnand %p1735_p9, %p2363_p3  ;;  %s2398_s19 = scalar_lea.sflag [#allocation3], %s294_s29 }
  0xa7   : > { %s2000_s18 = scalar_lea.hbm %s2388_s15, 1024  ;;  %s2005_s20 = scalar_lea.hbm %s2660_s0, 2048 }
  0xa8   : > { %p2001_p4 = scmp.ne.s32.totalorder %s2388_s15, %s2000_s18  ;;  %p2002_p8 = pneg %p2394_p12 }
  0xa9   : > { %p2006_p1 = scmp.lt.u32.totalorder %s2388_s15, %s2660_s0  ;;  %p2007_p3 = scmp.lt.u32.totalorder %s2005_s20, %s2000_s18 }
  0xaa   : > { %p2003_p13 = pnand %p2002_p8, %p2001_p4  ;;  %p2009_p5 = scmp.lt.u32.totalorder %s2000_s18, %s2388_s15 }
  0xab   : > { %p2008_p2 = por %p2007_p3, %p2006_p1 }
  0xac   : > { %p2004_p0 = pneg %p2003_p13 }
  0xad   : > { %p2010_p7 = por %p2009_p5, %p2008_p2 }
  0xaf   : > { %p2011_p9 = pnand %p2010_p7, %p2004_p0 }
  0xb1   : > { %2014 = shalt.err (!%p2011_p9)
}
  0xb2   : > { %s2015_s29 = scalar_lea.vmem %s2390_s17, 1024  ;;  %s2122_s14 = smov [#allocation2]  }
  0xb3   : > { %p2016_p4 = scmp.ne.s32.totalorder %s2390_s17, %s2015_s29  ;;  %s2020_s16 = sshll.u32 %s2122_s14, 4  ;;  %s2021_s16 = int_to_ptr.vmem [resolvable:$false] %s2020_s16 }
  0xb4   : > { %s2022_s10 = scalar_lea.vmem %s2021_s16, 2048  ;;  %p2023_p10 = scmp.lt.s32.totalorder %s2390_s17, %s2021_s16 }
  0xb5   : > { %p2018_p13 = pnand %p2016_p4, %p2002_p8  ;;  %p2024_p1 = scmp.lt.s32.totalorder %s2022_s10, %s2015_s29 }
  0xb7   : > { %p2019_p11 = pneg %p2018_p13  ;;  %p2025_p3 = por %p2024_p1, %p2023_p10 }
  0xb9   : > { %p2026_p2 = pnand %p2025_p3, %p2019_p11 }
  0xbb   : > { %2029 = shalt.err (!%p2026_p2)
}
  0xbc   : > { %s2684_s18 = smov 8   ;;  %s2685_s23 = smov 128  }
  0xbd   : > { %1724 = dma.hbm_to_vmem [thread:$0]  (!%p2394_p12), %s2388_s15, 1024, %s2390_s17, %s2398_s19, %s2685_s23, %s2685_s23, %s2684_s18  }
  0xbe   : > { %p2686_p8 = scmp.ne.s32.totalorder %s2674_s8, 0 }
  0xbf   : > { %s2432_s20 = sand.u32 (!%p2686_p8), 1, %s2100_s25  }
  0xc0   : > { %317 = sbr.rel (%p2686_p8) target bundleno = 1942 (0x796), region = 48  ;;  %s1490_s28 = sshll.u32 (!%p2686_p8), %s2432_s20, 6 }
  0xc1   : > { %s320_s9 = scalar_lea.sflag (!%p2686_p8), [#allocation3], %s2432_s20  ;;  %s2438_s12 = scalar_lea.vmem (!%p2686_p8), [#allocation2], %s1490_s28 }
  0xc7   : > { %2075 = dma.done.wait (%p2369_p6), %s320_s9, 1024  }
  0xc8   : > { %2077 = vsyncadd (%p2369_p6), %s320_s9, 4294966272  ;;  %p2687_p10 = scmp.eq.s32.totalorder %s2191_s30, 0 }
  0xca   : > { %2079 = dma.done.wait (%p2687_p10), [#allocation6], 32   ;;  %p2688_p11 = pmov %p2687_p10 }
  0xcb   : > { %p2689_p12 = pmov %p2687_p10 }
  0xcc   : > { %2081 = vsyncadd (%p2688_p11), [#allocation6], 4294967264 }
  0xcd   : > { %2083 = dma.done.wait (%p2689_p12), [#allocation9], 640   ;;  %p2690_p0 = pmov %p2687_p10 }
  0xcf   : > { %2085 = vsyncadd (%p2690_p0), [#allocation9], 4294966656  ;;  %p2691_p5 = pmov %p2690_p0 }
  0xd0   : > { %p2692_p7 = pmov %p2690_p0 }
  0xd1   : > { %2087 = dma.done.wait (%p2691_p5), [#allocation12], 144  }
  0xd2   : > { %2089 = vsyncadd (%p2692_p7), [#allocation12], 4294967152  ;;  %v2123_v0 = vmov 0.0|0.0   ;;  %vm2124_vm0 = vmmov 0   ;;  %v2125_v1 = vmov 0.0   ;;  %vm391_vm1 = vcmask 130048  }
  0xd3   : > { %1656 = vmatprep.subr.bf16.mxu0 %v2123_v0  ;;  %1659 = vmatprep.subr.bf16.mxu1 %v2123_v0  ;;  %v389_v2 = vld [vmem:[#allocation8] sm:$0xff]  ;;  %v390_v3 = vld [vmem:[#allocation8 + $0x8] sm:$0xff]  ;;  %v2472_v8 = vld [vmem:[%s2438_s12 + $0x18] sm:$0xff]  ;;  %vm594_vm2 = vcmask 31744   ;;  %vm1051_vm4 = vcmask 523264   ;;  %s377_s8 = scalar_lea.vmem [#allocation14], %s1490_s28 }
  0xd4   : > { %1580 = vmatprep.mubr.msk.f32.mxu0 %vm2124_vm0, %v2125_v1  ;;  %1587 = vmatprep.mubr.msk.f32.mxu1 %vm2124_vm0, %v2125_v1  ;;  %v2461_v4 = vld [vmem:[%s2438_s12] sm:$0xff]  ;;  %v2463_v5 = vpack.c.bf16 %v390_v3, %v389_v2  ;;  %v2466_v6 = vld [vmem:[%s2438_s12 + $0x8] sm:$0xff]  ;;  %v2469_v7 = vld [vmem:[%s2438_s12 + $0x10] sm:$0xff]  ;;  %v397_v16 = vsel %vm391_vm1, %v2472_v8, 0.0  ;;  %v416_v18 = vmul.f32 %v2472_v8, %v2472_v8  ;;  %s1537_s21 = sshll.u32 %s2191_s30, 10  ;;  %s1347_s15 = sshll.u32 %s377_s8, 4  ;;  %s2612_s15 = int_to_ptr.vmem [resolvable:$true] %s1347_s15 }
  0xd5   : > { %v392_v9 = vsel %vm391_vm1, %v2461_v4, 0.0  ;;  %v2477_v10 = vld [vmem:[%s2438_s12 + $0x20] sm:$0xff]  ;;  %v393_v11 = vsel %vm391_vm1, %v2466_v6, 0.0  ;;  %v395_v12 = vsel %vm391_vm1, %v2469_v7, 0.0  ;;  %v413_v13 = vmul.f32 %v2461_v4, %v2461_v4  ;;  %v2496_v19 = vld [vmem:[%s2438_s12 + $0x28] sm:$0xff]  ;;  %v2506_v26 = vld [vmem:[%s2438_s12 + $0x30] sm:$0xff]  ;;  %s2610_s29 = scalar_lea.hbm %s2667_s7, %s1537_s21 }
  0xd6   : > { %v414_v14 = vmul.f32 %v2466_v6, %v2466_v6  ;;  %1658 = vmatpush3.bf16.msra.mxu0 %v2463_v5  ;;  %1661 = vmatpush3.bf16.msra.mxu1 %v2463_v5  ;;  %v394_v15 = vadd.f32 %v393_v11, %v392_v9  ;;  %v415_v17 = vmul.f32 %v2469_v7, %v2469_v7  ;;  %v399_v21 = vsel %vm391_vm1, %v2477_v10, 0.0  ;;  %v2514_v32 = vld [vmem:[%s2438_s12 + $0x38] sm:$0xff]  ;;  %vm1664_vm3 = vmpackc.low %vm594_vm2, %vm594_vm2  ;;  %s1334_s30 = scalar_lea.sflag [#allocation4], %s2432_s20  ;;  %s2030_s14 = scalar_lea.vmem %s2612_s15, 1024 }
  0xd7   : > { %1662 = vmatprep.subr.bf16.mxu0 %v2123_v0  ;;  %1666 = vmatprep.subr.bf16.mxu1 %v2123_v0  ;;  %v417_v22 = vmul.f32 %v2477_v10, %v2477_v10  ;;  %v421_v23 = vsel %vm391_vm1, %v413_v13, 0.0  ;;  %v401_v29 = vsel %vm391_vm1, %v2496_v19, 0.0  ;;  %v418_v30 = vmul.f32 %v2496_v19, %v2496_v19  ;;  %p2031_p6 = scmp.ne.s32.totalorder %s2612_s15, %s2030_s14  ;;  %p2693_p9 = scmp.ne.s32.totalorder %s2681_s1, 0 }
  0xd8   : > { %v396_v20 = vadd.f32 %v395_v12, %v394_v15  ;;  %v422_v24 = vsel %vm391_vm1, %v414_v14, 0.0  ;;  %v424_v25 = vsel %vm391_vm1, %v415_v17, 0.0  ;;  %v426_v31 = vsel %vm391_vm1, %v416_v18, 0.0  ;;  %v1796_v17 = vld [vmem:[#allocation10 + $0x8] ss:$12 sps:$4 sm:$0xff]   ;;  %s2127_s16 = smov [#allocation14]  }
  0xd9   : > { %v423_v28 = vadd.f32 %v422_v24, %v421_v23  ;;  %v403_v35 = vsel %vm391_vm1, %v2506_v26, 0.0  ;;  %v419_v36 = vmul.f32 %v2506_v26, %v2506_v26  ;;  %v428_v37 = vsel %vm391_vm1, %v417_v22, 0.0  ;;  %v387_v23 = vld [vmem:[#allocation5] sm:$0x1]  ;;  %p2032_p4 = pnand %p2031_p6, %p2693_p9  ;;  %s2034_s10 = sshll.u32 %s2127_s16, 4  ;;  %s2035_s10 = int_to_ptr.vmem [resolvable:$false] %s2034_s10 }
  0xda   : > { %v398_v27 = vadd.f32 %v397_v16, %v396_v20  ;;  %v405_v40 = vsel %vm391_vm1, %v2514_v32, 0.0  ;;  %v420_v41 = vmul.f32 %v2514_v32, %v2514_v32  ;;  %v430_v42 = vsel %vm391_vm1, %v418_v30, 0.0  ;;  %v1793_v16 = vld [vmem:[#allocation10] ss:$12 sps:$4 sm:$0xff]   ;;  %s2036_s18 = scalar_lea.vmem %s2035_s10, 2048  ;;  %p2037_p1 = scmp.lt.s32.totalorder %s2612_s15, %s2035_s10 }
  0xdb   : > { %v425_v34 = vadd.f32 %v424_v25, %v423_v28  ;;  %v432_v45 = vsel %vm391_vm1, %v419_v36, 0.0  ;;  %p2033_p13 = pneg %p2032_p4  ;;  %p2038_p3 = scmp.lt.s32.totalorder %s2036_s18, %s2030_s14 }
  0xdc   : > { %v400_v33 = vadd.f32 %v399_v21, %v398_v27  ;;  %v434_v48 = vsel %vm391_vm1, %v420_v41, 0.0  ;;  %v750_v21 = vlaneseq }
  0xdd   : > { %v427_v39 = vadd.f32 %v426_v31, %v425_v34  ;;  %p2039_p2 = por %p2038_p3, %p2037_p1 }
  0xde   : > { %v402_v38 = vadd.f32 %v401_v29, %v400_v33  ;;  %v751_v22 = vshrl.u32 %v750_v21, 7  ;;  %v388_v29 = vld [vmem:[#allocation7] sm:$0x1] }
  0xdf   : > { %v429_v44 = vadd.f32 %v428_v37, %v427_v39  ;;  %p2040_p8 = pnand %p2039_p2, %p2033_p13 }
  0xe0   : > { %v404_v43 = vadd.f32 %v403_v35, %v402_v38  ;;  %v752_v24 = vsub.s32 0, %v751_v22 }
  0xe1   : > { %v431_v47 = vadd.f32 %v430_v42, %v429_v44 }
  0xe2   : > { %v406_v46 = vadd.f32 %v405_v40, %v404_v43 }
  0xe3   : > { %v433_v50 = vadd.f32 %v432_v45, %v431_v47 }
  0xe4   : > { %v407_v49 = vrot.slane %v406_v46, 4 }
  0xe5   : > { %v435_v52 = vadd.f32 %v434_v48, %v433_v50 }
  0xe6   : > { %v408_v51 = vadd.f32 %v407_v49, %v406_v46 }
  0xe7   : > { %v436_v54 = vrot.slane %v435_v52, 4 }
  0xe8   : > { %v409_v53 = vrot.slane %v408_v51, 2 }
  0xe9   : > { %v437_v56 = vadd.f32 %v436_v54, %v435_v52 }
  0xea   : > { %v410_v55 = vadd.f32 %v409_v53, %v408_v51 }
  0xeb   : > { %v438_v58 = vrot.slane %v437_v56, 2 }
  0xec   : > { %v411_v57 = vrot.slane %v410_v55, 1 }
  0xed   : > { %v439_v60 = vadd.f32 %v438_v58, %v437_v56 }
  0xee   : > { %v412_v59 = vadd.f32 %v411_v57, %v410_v55 }
  0xef   : > { %v440_v61 = vrot.slane %v439_v60, 1 }
  0xf0   : > { %1581 = vmatmul.mubr.msk.f32.vlgmr.msra.gmra.mrb[0].mxu0 %vm391_vm1, %v412_v59 }
  0xf1   : > { %1665 = vmatpush3.bf16.xpose.msk.msra.mxu0 %vm1664_vm3, %v2463_v5  ;;  %1594 = vmatprep.mubr.msk.f32.mxu0 %vm2124_vm0, %v2125_v1  ;;  %v441_v62 = vadd.f32 %v440_v61, %v439_v60 }
  0xf3   : > { %1588 = vmatmul.mubr.msk.f32.vlgmr.msra.gmra.mrb[0].mxu1 %vm391_vm1, %v441_v62 }
  0xf4   : > { %1669 = vmatpush3.bf16.xpose.msk.msra.mxu1 %vm1664_vm3, %v2463_v5  ;;  %1601 = vmatprep.mubr.msk.f32.mxu1 %vm2124_vm0, %v2125_v1  ;;  %v1795_v5 = vld [vmem:[#allocation10 + $0x4] ss:$12 sps:$4 sm:$0xff]   ;;  %v2126_v1 = vmov 0  }
  0xf5   : > { %812 = vmatprep.subr.bf16.mxu0 %v1795_v5  ;;  %1604 = vmatprep.subr.bf16.mxu1 %v1796_v17 }
 0x1c3   : > { %v511_v63 = vpop.f32.mrb[0].mxu0 }
 0x1c4   : > { %v515_v0 = vmul.f32 0.00390625, %v511_v63  ;;  %v1582_v2 = vpop.f32.mrb[1].mxu0 }
 0x1c6   : > { %v590_v3 = vmul.f32 %v515_v0, %v515_v0  ;;  %1595 = vmatmul.mubr.msk.f32.vlgmr.msra.gmra.mrb[2].mxu0 %vm594_vm2, %v515_v0  ;;  %v585_v9 = vpop.f32.mrb[0].mxu1 }
 0x1c7   : > { %v589_v11 = vmul.f32 0.00390625, %v585_v9  ;;  %v1589_v12 = vpop.f32.mrb[1].mxu1  ;;  %813 = vmatpush1.bf16.msra.mxu0 %v1793_v16  ;;  %844 = vmatprep.mubr.bf16.mxu0 %v2126_v1 }
 0x1c9   : > { %v591_v13 = vsub.f32 %v589_v11, %v590_v3 }
 0x1cb   : > { %v592_v14 = vadd.f32 1e-05, %v591_v13 }
 0x1cd   : > { %1798 = vrsqrt.f32 %v592_v14 }
 0x1d7   : > { %v1799_v15 = vpop.eup %1798 }
 0x1d8   : > { %1602 = vmatmul.mubr.msk.f32.vlgmr.msra.gmra.mrb[2].mxu1 %vm594_vm2, %v1799_v15 }
 0x1d9   : > { %1605 = vmatpush3.bf16.msra.mxu1 %v1796_v17 }
 0x299   : > { %v670_v18 = vpop.f32.mrb[2].mxu0 }
 0x29a   : > { %v1596_v20 = vpop.f32.mrb[3].mxu0 }
 0x2ab   : > { %v743_v25 = vpop.f32.mrb[2].mxu1 }
 0x2ac   : > { %v747_v27 = vmul.f32 %v743_v25, %v387_v23  ;;  %v1603_v28 = vpop.f32.mrb[3].mxu1 }
 0x2ae   : > { %v748_v30 = vmul.f32 %v747_v27, %v670_v18  ;;  %v753_v31 = vrot.slane %v747_v27, %v752_v24 }
 0x2b0   : > { %v749_v33 = vsub.f32 %v388_v29, %v748_v30  ;;  %v754_v34 = vmul.f32 %v753_v31, %v2461_v4  ;;  %v755_v36 = vmul.f32 %v753_v31, %v2466_v6  ;;  %v756_v37 = vmul.f32 %v753_v31, %v2469_v7 }
 0x2b1   : > { %v757_v38 = vmul.f32 %v753_v31, %v2472_v8  ;;  %v758_v39 = vmul.f32 %v753_v31, %v2477_v10  ;;  %v759_v40 = vmul.f32 %v753_v31, %v2496_v19  ;;  %v760_v41 = vmul.f32 %v753_v31, %v2506_v26 }
 0x2b2   : > { %v766_v35 = vrot.slane %v749_v33, %v752_v24  ;;  %v761_v42 = vmul.f32 %v753_v31, %v2514_v32 }
 0x2b4   : > { %v768_v43 = vadd.f32 %v766_v35, %v754_v34  ;;  %v769_v44 = vadd.f32 %v766_v35, %v755_v36  ;;  %v770_v45 = vadd.f32 %v766_v35, %v756_v37  ;;  %v771_v46 = vadd.f32 %v766_v35, %v757_v38 }
 0x2b5   : > { %v772_v47 = vadd.f32 %v766_v35, %v758_v39  ;;  %v773_v48 = vadd.f32 %v766_v35, %v759_v40  ;;  %v774_v49 = vadd.f32 %v766_v35, %v760_v41  ;;  %v775_v50 = vadd.f32 %v766_v35, %v761_v42 }
 0x2b6   : > { %v776_v51 = vpack.c.bf16 %v769_v44, %v768_v43  ;;  %v777_v52 = vpack.c.bf16 %v771_v46, %v770_v45 }
 0x2b7   : > { %v778_v53 = vpack.c.bf16 %v773_v48, %v772_v47  ;;  %v779_v54 = vpack.c.bf16 %v775_v50, %v774_v49 }
 0x2b8   : > { %1509 = vmatmul.mubr.msk.bf16.vlgmr.msra.gmra.mrb[4].mxu0 %vm391_vm1, %v776_v51  ;;  %1606 = vmatprep.mubr.msk.bf16.mxu1 %vm391_vm1, %v776_v51 }
 0x2b9   : > { %1607 = vmatmul.mubr.msk.bf16.vlgmr.msra.gmra.mrb[4].mxu1 %vm391_vm1, %v777_v52  ;;  %854 = vmatprep.mubr.bf16.mxu0 %v2126_v1 }
 0x2ba   : > { %1610 = vmatprep.mubr.msk.bf16.mxu1 %vm391_vm1, %v778_v53 }
 0x2c0   : > { %1510 = vmatmul.mubr.msk.bf16.gmra.mrb[8].mxu0 %vm391_vm1, %v777_v52 }
 0x2c1   : > { %1611 = vmatmul.mubr.msk.bf16.gmra.mrb[8].mxu1 %vm391_vm1, %v779_v54  ;;  %864 = vmatprep.mubr.bf16.mxu0 %v2126_v1 }
 0x2c8   : > { %1511 = vmatmul.mubr.msk.bf16.gmra.mrb[12].mxu0 %vm391_vm1, %v778_v53 }
 0x2c9   : > { %874 = vmatprep.mubr.bf16.mxu0 %v2126_v1 }
 0x2d0   : > { %1512 = vmatmul.mubr.msk.bf16.gmra.mrb[16].mxu0 %vm391_vm1, %v779_v54 }
 0x38b   : > { %v846_v55 = vpop.f32.mrb[4].mxu0 }
 0x38c   : > { %v848_v56 = vpop.f32.mrb[5].mxu0  ;;  %v1608_v57 = vpop.f32.mrb[4].mxu1 }
 0x38d   : > { %v850_v58 = vpop.f32.mrb[6].mxu0  ;;  %v919_v59 = vpop.f32.mrb[5].mxu1 }
 0x38e   : > { %v950_v60 = vpack.c.bf16 %v850_v58, %v846_v55  ;;  %v852_v61 = vpop.f32.mrb[7].mxu0  ;;  %v1609_v62 = vpop.f32.mrb[6].mxu1 }
 0x38f   : > { %v954_v63 = vpack.c.bf16 %v852_v61, %v848_v56  ;;  %v959_v0 = vpack.c.bf16 %v1609_v62, %v1608_v57  ;;  %v922_v2 = vpop.f32.mrb[7].mxu1 }
 0x390   : > { %v958_v3 = vpack.c.bf16 %v922_v2, %v919_v59  ;;  %1622 = vmatprep.mubr.msk.bf16.mxu0 %vm391_vm1, %v950_v60 }
 0x391   : > { %v975_v9 = vsel %vm391_vm1, %v954_v63, 0  ;;  %1670 = vmatprep.subr.msk.bf16.mxu0 %vm391_vm1, %v954_v63 }
 0x392   : > { %1615 = vmatpush3.bf16.xpose.msra.mxu0 %v975_v9  ;;  %1630 = vmatprep.subr.bf16.mxu1 %v958_v3 }
 0x393   : > { %v856_v11 = vpop.f32.mrb[8].mxu0  ;;  %1631 = vmatpush3.bf16.msra.mxu1 %v958_v3 }
 0x394   : > { %v858_v12 = vpop.f32.mrb[9].mxu0  ;;  %v1612_v13 = vpop.f32.mrb[8].mxu1  ;;  %1632 = vmatprep.subr.bf16.mxu1 %v959_v0 }
 0x395   : > { %v860_v14 = vpop.f32.mrb[10].mxu0  ;;  %v935_v15 = vpop.f32.mrb[9].mxu1 }
 0x396   : > { %v951_v16 = vpack.c.bf16 %v860_v14, %v856_v11  ;;  %v862_v5 = vpop.f32.mrb[11].mxu0  ;;  %v1613_v17 = vpop.f32.mrb[10].mxu1 }
 0x397   : > { %v955_v1 = vpack.c.bf16 %v862_v5, %v858_v12  ;;  %v961_v18 = vpack.c.bf16 %v1613_v17, %v1612_v13  ;;  %v938_v20 = vpop.f32.mrb[11].mxu1  ;;  %1633 = vmatpush3.bf16.msra.mxu1 %v959_v0 }
 0x398   : > { %v960_v21 = vpack.c.bf16 %v938_v20, %v935_v15 }
 0x399   : > { %v978_v22 = vsel %vm391_vm1, %v955_v1, 0  ;;  %1671 = vmatprep.subr.msk.bf16.mxu0 %vm391_vm1, %v955_v1 }
 0x39a   : > { %1617 = vmatpush3.bf16.xpose.msra.mxu0 %v978_v22  ;;  %1634 = vmatprep.subr.bf16.mxu1 %v960_v21 }
 0x39b   : > { %v866_v23 = vpop.f32.mrb[12].mxu0  ;;  %1635 = vmatpush3.bf16.msra.mxu1 %v960_v21 }
 0x39c   : > { %v868_v24 = vpop.f32.mrb[13].mxu0  ;;  %1636 = vmatprep.subr.bf16.mxu1 %v961_v18 }
 0x39d   : > { %v870_v25 = vpop.f32.mrb[14].mxu0 }
 0x39e   : > { %v952_v27 = vpack.c.bf16 %v870_v25, %v866_v23  ;;  %v872_v28 = vpop.f32.mrb[15].mxu0 }
 0x39f   : > { %v956_v29 = vpack.c.bf16 %v872_v28, %v868_v24  ;;  %1637 = vmatpush3.bf16.msra.mxu1 %v961_v18 }
 0x3a1   : > { %v981_v30 = vsel %vm391_vm1, %v956_v29, 0  ;;  %1672 = vmatprep.subr.msk.bf16.mxu0 %vm391_vm1, %v956_v29 }
 0x3a2   : > { %1619 = vmatpush3.bf16.xpose.msra.mxu0 %v981_v30 }
 0x3a3   : > { %v876_v31 = vpop.f32.mrb[16].mxu0 }
 0x3a4   : > { %v878_v33 = vpop.f32.mrb[17].mxu0 }
 0x3a5   : > { %v880_v34 = vpop.f32.mrb[18].mxu0 }
 0x3a6   : > { %v953_v35 = vpack.c.bf16 %v880_v34, %v876_v31  ;;  %v882_v36 = vpop.f32.mrb[19].mxu0 }
 0x3a7   : > { %v957_v37 = vpack.c.bf16 %v882_v36, %v878_v33 }
 0x3a9   : > { %v984_v38 = vsel %vm391_vm1, %v957_v37, 0  ;;  %1673 = vmatprep.subr.msk.bf16.mxu0 %vm391_vm1, %v957_v37 }
 0x3aa   : > { %1621 = vmatpush3.bf16.xpose.msra.mxu0 %v984_v38 }
 0x3b1   : > { %1623 = vmatmul.mubr.msk.bf16.vlgmr.msra.gmra.mrb[20].mxu0 %vm391_vm1, %v951_v16 }
 0x3b2   : > { %1626 = vmatprep.mubr.msk.bf16.mxu0 %vm391_vm1, %v952_v27 }
 0x3b9   : > { %1627 = vmatmul.mubr.msk.bf16.gmra.mrb[24].mxu0 %vm391_vm1, %v953_v35 }
 0x484   : > { %v1624_v39 = vpop.f32.mrb[20].mxu0 }
 0x485   : > { %v1020_v40 = vpop.f32.mrb[21].mxu0  ;;  %v1058_v41 = vsel %vm1051_vm4, %v1624_v39, -inf }
 0x486   : > { %1059 = vmax.xlane.f32.xlu1 %v1058_v41  ;;  %v1625_v42 = vpop.f32.mrb[22].mxu0  ;;  %v1052_v43 = vsel %vm1051_vm4, %v1020_v40, -inf }
 0x487   : > { %1053 = vmax.xlane.f32.xlu0 %v1052_v43  ;;  %v1023_v44 = vpop.f32.mrb[23].mxu0  ;;  %v1061_v45 = vsel %vm1051_vm4, %v1625_v42, -inf }
 0x488   : > { %v1055_v46 = vsel %vm1051_vm4, %v1023_v44, -inf }
 0x48a   : > { %1062 = vmax.xlane.f32.xlu1 %v1061_v45 }
 0x48b   : > { %1056 = vmax.xlane.f32.xlu0 %v1055_v46 }
 0x48c   : > { %v1628_v47 = vpop.f32.mrb[24].mxu0 }
 0x48d   : > { %v1036_v48 = vpop.f32.mrb[25].mxu0  ;;  %v1070_v53 = vsel %vm1051_vm4, %v1628_v47, -inf }
 0x48e   : > { %v1629_v49 = vpop.f32.mrb[26].mxu0  ;;  %v1064_v50 = vsel %vm1051_vm4, %v1036_v48, -inf }
 0x48f   : > { %1065 = vmax.xlane.f32.xlu0 %v1064_v50  ;;  %v1039_v51 = vpop.f32.mrb[27].mxu0  ;;  %v1073_v54 = vsel %vm1051_vm4, %v1629_v49, -inf }
 0x490   : > { %v1067_v52 = vsel %vm1051_vm4, %v1039_v51, -inf }
 0x491   : > { %1068 = vmax.xlane.f32.xlu1 %v1067_v52 }
 0x493   : > { %1071 = vmax.xlane.f32.xlu0 %v1070_v53 }
 0x495   : > { %1074 = vmax.xlane.f32.xlu1 %v1073_v54 }
 0x513   : > { %v1060_v55 = vpop.xlane.xlu1 %1059 }
 0x514   : > { %v1078_v56 = vsub.f32 %v1624_v39, %v1060_v55  ;;  %v1054_v57 = vpop.xlane.xlu0 %1053  ;;  %v1797_v39 = vld [vmem:[#allocation11] sm:$0xff]  }
 0x515   : > { %v1076_v58 = vsub.f32 %v1020_v40, %v1054_v57  ;;  %1646 = vmatprep.subr.bf16.mxu1 %v1797_v39 }
 0x516   : > { %v1088_v59 = vmul.f32 1.442695, %v1078_v56 }
 0x517   : > { %v1084_v60 = vmul.f32 1.442695, %v1076_v58  ;;  %v1063_v61 = vpop.xlane.xlu1 %1062 }
 0x518   : > { %v1079_v62 = vsub.f32 %v1625_v42, %v1063_v61  ;;  %v1057_v63 = vpop.xlane.xlu0 %1056 }
 0x519   : > { %1800 = vpow2.f32 %v1084_v60  ;;  %v1077_v0 = vsub.f32 %v1023_v44, %v1057_v63 }
 0x51a   : > { %1802 = vpow2.f32 %v1088_v59  ;;  %v1090_v2 = vmul.f32 1.442695, %v1079_v62 }
 0x51b   : > { %v1086_v3 = vmul.f32 1.442695, %v1077_v0 }
 0x51c   : > { %v1066_v9 = vpop.xlane.xlu0 %1065 }
 0x51d   : > { %1804 = vpow2.f32 %v1086_v3  ;;  %v1080_v11 = vsub.f32 %v1036_v48, %v1066_v9 }
 0x51e   : > { %v1069_v12 = vpop.xlane.xlu1 %1068  ;;  %1806 = vpow2.f32 %v1090_v2 }
 0x51f   : > { %v1092_v13 = vmul.f32 1.442695, %v1080_v11  ;;  %v1081_v14 = vsub.f32 %v1039_v51, %v1069_v12 }
 0x520   : > { %v1072_v15 = vpop.xlane.xlu0 %1071 }
 0x521   : > { %1808 = vpow2.f32 %v1092_v13  ;;  %v1094_v16 = vmul.f32 1.442695, %v1081_v14  ;;  %v1082_v5 = vsub.f32 %v1628_v47, %v1072_v15 }
 0x522   : > { %v1075_v17 = vpop.xlane.xlu1 %1074 }
 0x523   : > { %v1801_v1 = vpop.eup %1800  ;;  %1810 = vpow2.f32 %v1094_v16  ;;  %v1096_v18 = vmul.f32 1.442695, %v1082_v5  ;;  %v1083_v20 = vsub.f32 %v1629_v49, %v1075_v17 }
 0x524   : > { %v1100_v21 = vsel %vm1051_vm4, %v1801_v1, 0.0  ;;  %v1803_v22 = vpop.eup %1802 }
 0x525   : > { %1812 = vpow2.f32 %v1096_v18  ;;  %v1098_v23 = vmul.f32 1.442695, %v1083_v20  ;;  %1101 = vadd.xlane.f32.xlu0 %v1100_v21  ;;  %v1106_v25 = vsel %vm1051_vm4, %v1803_v22, 0.0 }
 0x527   : > { %v1805_v24 = vpop.eup %1804  ;;  %1814 = vpow2.f32 %v1098_v23 }
 0x528   : > { %v1103_v27 = vsel %vm1051_vm4, %v1805_v24, 0.0  ;;  %v1807_v28 = vpop.eup %1806 }
 0x529   : > { %1107 = vadd.xlane.f32.xlu0 %v1106_v25  ;;  %1104 = vadd.xlane.f32.xlu1 %v1103_v27  ;;  %v1109_v31 = vsel %vm1051_vm4, %v1807_v28, 0.0 }
 0x52b   : > { %v1809_v29 = vpop.eup %1808 }
 0x52c   : > { %v1112_v30 = vsel %vm1051_vm4, %v1809_v29, 0.0 }
 0x52d   : > { %v1811_v33 = vpop.eup %1810  ;;  %1113 = vadd.xlane.f32.xlu0 %v1112_v30  ;;  %1110 = vadd.xlane.f32.xlu1 %v1109_v31 }
 0x52e   : > { %v1115_v36 = vsel %vm1051_vm4, %v1811_v33, 0.0 }
 0x52f   : > { %v1813_v34 = vpop.eup %1812 }
 0x530   : > { %v1118_v35 = vsel %vm1051_vm4, %v1813_v34, 0.0 }
 0x531   : > { %v1815_v37 = vpop.eup %1814  ;;  %1119 = vadd.xlane.f32.xlu0 %v1118_v35  ;;  %1116 = vadd.xlane.f32.xlu1 %v1115_v36 }
 0x532   : > { %v1121_v38 = vsel %vm1051_vm4, %v1815_v37, 0.0 }
 0x535   : > { %1122 = vadd.xlane.f32.xlu1 %v1121_v38 }
 0x5b2   : > { %v1102_v40 = vpop.xlane.xlu0 %1101 }
 0x5b3   : > { %1816 = vrcp.f32 %v1102_v40 }
 0x5b6   : > { %v1108_v41 = vpop.xlane.xlu0 %1107  ;;  %v1105_v42 = vpop.xlane.xlu1 %1104 }
 0x5b7   : > { %1818 = vrcp.f32 %v1105_v42 }
 0x5b8   : > { %1820 = vrcp.f32 %v1108_v41 }
 0x5ba   : > { %v1114_v43 = vpop.xlane.xlu0 %1113  ;;  %v1111_v44 = vpop.xlane.xlu1 %1110 }
 0x5bb   : > { %1822 = vrcp.f32 %v1111_v44 }
 0x5bc   : > { %1824 = vrcp.f32 %v1114_v43 }
 0x5bd   : > { %v1817_v47 = vpop.eup %1816 }
 0x5be   : > { %v1120_v45 = vpop.xlane.xlu0 %1119  ;;  %v1117_v46 = vpop.xlane.xlu1 %1116  ;;  %v1132_v50 = vmul.f32 %v1817_v47, %v1801_v1 }
 0x5bf   : > { %1826 = vrcp.f32 %v1117_v46 }
 0x5c0   : > { %1828 = vrcp.f32 %v1120_v45 }
 0x5c1   : > { %v1819_v48 = vpop.eup %1818 }
 0x5c2   : > { %v1123_v49 = vpop.xlane.xlu1 %1122  ;;  %v1133_v51 = vmul.f32 %v1819_v48, %v1805_v24  ;;  %v1821_v52 = vpop.eup %1820 }
 0x5c3   : > { %1830 = vrcp.f32 %v1123_v49  ;;  %v1134_v55 = vmul.f32 %v1821_v52, %v1803_v22  ;;  %v1525_v22 = vld [vmem:[#allocation13] ss:$0 sm:$0xff] }
 0x5c4   : > { %v1140_v53 = vpack.c.bf16 %v1133_v51, %v1132_v50 }
 0x5c5   : > { %v1823_v54 = vpop.eup %1822 }
 0x5c6   : > { %v1135_v56 = vmul.f32 %v1823_v54, %v1807_v28  ;;  %1638 = vmatprep.mubr.msk.bf16.mxu1 %vm1051_vm4, %v1140_v53  ;;  %v1825_v57 = vpop.eup %1824 }
 0x5c7   : > { %v1136_v61 = vmul.f32 %v1825_v57, %v1809_v29 }
 0x5c8   : > { %v1141_v58 = vpack.c.bf16 %v1135_v56, %v1134_v55 }
 0x5c9   : > { %v1827_v59 = vpop.eup %1826 }
 0x5ca   : > { %v1829_v60 = vpop.eup %1828  ;;  %1639 = vmatmul.mubr.msk.bf16.vlgmr.msra.gmra.mrb[12].mxu1 %vm1051_vm4, %v1141_v58  ;;  %v1137_v62 = vmul.f32 %v1827_v59, %v1811_v33 }
 0x5cb   : > { %1647 = vmatpush3.bf16.msra.mxu1 %v1797_v39  ;;  %v1138_v2 = vmul.f32 %v1829_v60, %v1813_v34 }
 0x5cc   : > { %v1142_v0 = vpack.c.bf16 %v1137_v62, %v1136_v61 }
 0x5cd   : > { %v1831_v63 = vpop.eup %1830 }
 0x5ce   : > { %v1139_v3 = vmul.f32 %v1831_v63, %v1815_v37  ;;  %1642 = vmatprep.mubr.msk.bf16.mxu1 %vm1051_vm4, %v1142_v0 }
 0x5d0   : > { %v1143_v9 = vpack.c.bf16 %v1139_v3, %v1138_v2 }
 0x5d2   : > { %1643 = vmatmul.mubr.msk.bf16.gmra.mrb[16].mxu1 %vm1051_vm4, %v1143_v9 }
 0x69d   : > { %v1640_v11 = vpop.f32.mrb[12].mxu1 }
 0x69e   : > { %v1190_v12 = vpop.f32.mrb[13].mxu1 }
 0x69f   : > { %v1641_v13 = vpop.f32.mrb[14].mxu1 }
 0x6a0   : > { %v1222_v14 = vpack.c.bf16 %v1641_v13, %v1640_v11  ;;  %v1193_v15 = vpop.f32.mrb[15].mxu1 }
 0x6a1   : > { %v1221_v16 = vpack.c.bf16 %v1193_v15, %v1190_v12 }
 0x6a3   : > { %1648 = vmatprep.mubr.msk.bf16.mxu1 %vm391_vm1, %v1221_v16 }
 0x6a4   : > { %1649 = vmatmul.mubr.msk.bf16.vlgmr.msra.gmra.mrb[20].mxu1 %vm391_vm1, %v1222_v14 }
 0x6a5   : > { %v1644_v5 = vpop.f32.mrb[16].mxu1 }
 0x6a6   : > { %v1206_v17 = vpop.f32.mrb[17].mxu1 }
 0x6a7   : > { %v1645_v1 = vpop.f32.mrb[18].mxu1 }
 0x6a8   : > { %v1224_v18 = vpack.c.bf16 %v1645_v1, %v1644_v5  ;;  %v1209_v20 = vpop.f32.mrb[19].mxu1 }
 0x6a9   : > { %v1223_v21 = vpack.c.bf16 %v1209_v20, %v1206_v17 }
 0x6ab   : > { %1652 = vmatprep.mubr.msk.bf16.mxu1 %vm391_vm1, %v1223_v21 }
 0x6ac   : > { %1653 = vmatmul.mubr.msk.bf16.gmra.mrb[24].mxu1 %vm391_vm1, %v1224_v18 }
 0x777   : > { %v1650_v23 = vpop.f32.mrb[20].mxu1 }
 0x778   : > { %v1295_v24 = vadd.f32 %v1650_v23, %v1525_v22  ;;  %v1286_v25 = vpop.f32.mrb[21].mxu1 }
 0x779   : > { %v1287_v27 = vadd.f32 %v1525_v22, %v1286_v25  ;;  %v1651_v28 = vpop.f32.mrb[22].mxu1 }
 0x77a   : > { %v1319_v29 = vadd.f32 %v1295_v24, %v2469_v7  ;;  %v1298_v30 = vadd.f32 %v1651_v28, %v1525_v22  ;;  %v1289_v31 = vpop.f32.mrb[23].mxu1 }
 0x77b   : > { %v1317_v33 = vadd.f32 %v1287_v27, %v2461_v4  ;;  %v1290_v34 = vadd.f32 %v1525_v22, %v1289_v31 }
 0x77c   : > { %1327 = vst.msk [vmem:[%s377_s8 + $0x10] sm:$0xff] %vm391_vm1, %v1319_v29  ;;  %v1320_v35 = vadd.f32 %v1298_v30, %v2472_v8 }
 0x77d   : > { %1325 = vst.msk [vmem:[%s377_s8] sm:$0xff] %vm391_vm1, %v1317_v33  ;;  %v1318_v36 = vadd.f32 %v1290_v34, %v2466_v6 }
 0x77e   : > { %1328 = vst.msk [vmem:[%s377_s8 + $0x18] sm:$0xff] %vm391_vm1, %v1320_v35 }
 0x77f   : > { %1326 = vst.msk [vmem:[%s377_s8 + $0x8] sm:$0xff] %vm391_vm1, %v1318_v36  ;;  %v1654_v7 = vpop.f32.mrb[24].mxu1 }
 0x780   : > { %v1311_v37 = vadd.f32 %v1654_v7, %v1525_v22  ;;  %v1302_v38 = vpop.f32.mrb[25].mxu1 }
 0x781   : > { %v1303_v39 = vadd.f32 %v1525_v22, %v1302_v38  ;;  %v1655_v4 = vpop.f32.mrb[26].mxu1 }
 0x782   : > { %v1323_v40 = vadd.f32 %v1311_v37, %v2506_v26  ;;  %v1314_v8 = vadd.f32 %v1655_v4, %v1525_v22  ;;  %v1305_v41 = vpop.f32.mrb[27].mxu1 }
 0x783   : > { %v1321_v42 = vadd.f32 %v1303_v39, %v2477_v10  ;;  %v1306_v6 = vadd.f32 %v1525_v22, %v1305_v41 }
 0x784   : > { %1331 = vst.msk [vmem:[%s377_s8 + $0x30] sm:$0xff] %vm391_vm1, %v1323_v40  ;;  %v1324_v43 = vadd.f32 %v1314_v8, %v2514_v32 }
 0x785   : > { %1329 = vst.msk [vmem:[%s377_s8 + $0x20] sm:$0xff] %vm391_vm1, %v1321_v42  ;;  %v1322_v26 = vadd.f32 %v1306_v6, %v2496_v19 }
 0x786   : > { %1332 = vst.msk [vmem:[%s377_s8 + $0x38] sm:$0xff] %vm391_vm1, %v1324_v43 }
 0x787   : > { %1330 = vst.msk [vmem:[%s377_s8 + $0x28] sm:$0xff] %vm391_vm1, %v1322_v26 }
 0x788   : > { %2043 = shalt.err (!%p2040_p8)
}
 0x789   : > { %s2044_s23 = scalar_lea.hbm %s2610_s29, 1024  ;;  %s2048_s12 = scalar_lea.hbm %s2667_s7, 2048 }
 0x78a   : > { %p2045_p10 = scmp.ne.s32.totalorder %s2610_s29, %s2044_s23  ;;  %p2049_p0 = scmp.lt.u32.totalorder %s2610_s29, %s2667_s7 }
 0x78b   : > { %p2050_p5 = scmp.lt.u32.totalorder %s2048_s12, %s2044_s23  ;;  %p2052_p6 = scmp.lt.u32.totalorder %s2044_s23, %s2610_s29 }
 0x78c   : > { %p2046_p11 = pnand %p2045_p10, %p2693_p9 }
 0x78d   : > { %p2051_p7 = por %p2050_p5, %p2049_p0 }
 0x78e   : > { %p2047_p12 = pneg %p2046_p11 }
 0x78f   : > { %p2053_p4 = por %p2052_p6, %p2051_p7 }
 0x791   : > { %p2054_p13 = pnand %p2053_p4, %p2047_p12 }
 0x793   : > { %2057 = shalt.err (!%p2054_p13)
}
 0x794   : > { %s2128_s17 = smov 128   ;;  %s2129_s19 = smov 8  }
 0x795   : > { %1700 = dma.vmem_to_hbm [thread:$0]  (%p2693_p9), %s2612_s15, 1024, %s2610_s29, %s1334_s30, %s2128_s17, %s2128_s17, %s2129_s19  }
 0x796 PF: > { %s1362_s14 = sand.u32 1, %s2096_s24   ;;  %p2694_p1 = scmp.ne.s32.totalorder %s2682_s22, 0 }
 0x797   : > { %p2695_p3 = scmp.ge.s32.totalorder %s2108_s27, 2  ;;  %s1363_s16 = scalar_lea.sflag [#allocation4], %s1362_s14 }
 0x799   : > { %p1726_p2 = pnand %p2695_p3, %p2694_p1 }
 0x79b   : > { %2091 = dma.done.wait (!%p1726_p2), %s1363_s16, 1024  }
 0x79c   : > { %2093 = vsyncadd (!%p1726_p2), %s1363_s16, 4294966272  ;;  %p23_p8 = scmp.ge.s32.totalorder %s2350_s11, 4   ;;  %s2696_s24 = smov %s2100_s25 }
 0x79d   : > { %s2697_s25 = smov %s2104_s26  ;;  %s2698_s26 = smov %s2361_s13 }
 0x79e   : > { %s2699_s27 = smov %s2350_s11  ;;  %25 = sbr.rel (!%p23_p8) target bundleno = 10 (0xa), region = 117 }
 0x7a5   :  { %1368 = vsyncpa [#allocation3], 1 }
 0x7a6   :  { %1370 = vsyncpa [#allocation3 + $0x1], 1 }
 0x7a7   :  { %1371 = vsyncpa [#allocation6], 1 }
 0x7a8   :  { %1372 = vsyncpa [#allocation9], 1 }
 0x7a9   :  { %1373 = vsyncpa [#allocation12], 1 }
 0x7aa   :  { %1374 = vsyncpa [#allocation4], 1 }
 0x7ab   :  { %1376 = vsyncpa [#allocation4 + $0x1], 1 }

// kernel: resnet_block_with_attn.3
= control target key start
LH: loop header
LB: loop body
LE: loop exit
PB: predicated region body
PF: predicated region fallthrough
CT: control target
= control target key end

     0   :  { %s3031_s0 = inlined_call_operand.hbm [shape: f32[2,8,8,8], index: 0, kind: input, shape index: {}]   ;;  %s3032_s1 = inlined_call_operand.hbm [shape: f32[2,1,16], index: 1, kind: input, shape index: {}]   ;;  %s3033_s2 = inlined_call_operand.hbm [shape: f32[1,8], index: 2, kind: input, shape index: {}]   ;;  %s3034_s3 = inlined_call_operand.hbm [shape: f32[1,8], index: 3, kind: input, shape index: {}]   ;;  %s3035_s4 = inlined_call_operand.hbm [shape: f32[8,4], index: 4, kind: input, shape index: {}]   ;;  %s3036_s5 = inlined_call_operand.hbm [shape: bf16[72,16], index: 5, kind: input, shape index: {}]   ;;  %s3037_s6 = inlined_call_operand.hbm [shape: f32[1,16], index: 6, kind: input, shape index: {}]   ;;  %s3038_s7 = inlined_call_operand.hbm [shape: f32[2,8,8,16], index: 7, kind: output, shape index: {}]  }
   0x1   :  { %3043 = sst [smem:[#allocation22_spill]] %s3031_s0 }
   0x2   :  { %3044 = sst [smem:[#allocation23_spill]] %s3033_s2 }
   0x3   :  { %3045 = sst [smem:[#allocation24_spill]] %s3034_s3 }
   0x4   :  { %3046 = sst [smem:[#allocation25_spill]] %s3035_s4 }
   0x5   :  { %12 = vsyncpa [#allocation4], 0 }
   0x6   :  { %14 = vsyncpa [#allocation4 + $0x1], 0 }
   0x7   :  { %15 = vsyncpa [#allocation7], 0 }
   0x8   :  { %17 = vsyncpa [#allocation7 + $0x1], 0 }
   0x9   :  { %18 = vsyncpa [#allocation10], 0 }
   0xa   :  { %19 = vsyncpa [#allocation13], 0 }
   0xb   :  { %20 = vsyncpa [#allocation5], 0 }
   0xc   :  { %22 = vsyncpa [#allocation5 + $0x1], 0  ;;  %s2363_s24 = smov 0   ;;  %s2365_s25 = smov 0  }
   0xd   :  { %s2367_s26 = smov 0   ;;  %s2369_s27 = smov 0  }
   0xe LB: > { %s2300_s28 = smov [#allocation8]   ;;  %s2384_s30 = sadd.s32 4294967295, %s2298_s27   ;;  %s2298_s27 = sphi %s2369_s27, %s3073_s27   ;;  %s2294_s26 = sphi %s2367_s26, %s3072_s26   ;;  %s2290_s25 = sphi %s2365_s25, %s3071_s25   ;;  %s2286_s24 = sphi %s2363_s24, %s3070_s24  }
   0xf   : > { %s229_s29 = sshll.u32 %s2300_s28, 4  ;;  %p1582_p0 = scmp.ge.s32.totalorder %s2298_s27, 1  ;;  %s2389_s29 = int_to_ptr.vmem [resolvable:$true] %s229_s29 }
  0x10   : > { %p3039_p1 = scmp.eq.s32.totalorder %s2384_s30, 0  ;;  %p216_p2 = scmp.lt.s32.totalorder %s2298_s27, 3 }
  0x11   : > { %s2301_s9 = smov [#allocation9]   ;;  %s2302_s11 = smov [#allocation12]  }
  0x12   : > { %p2391_p3 = pnand %p1582_p0, %p216_p2  ;;  %s240_s10 = sshll.u32 %s2301_s9, 4  ;;  %s2398_s10 = int_to_ptr.vmem [resolvable:$true] %s240_s10 }
  0x13   : > { %s261_s12 = sshll.u32 %s2302_s11, 4  ;;  %s3049_s2 = sld [smem:[#allocation23_spill]]  ;;  %s2406_s12 = int_to_ptr.vmem [resolvable:$true] %s261_s12 }
  0x14   : > { %s3047_s8 = scalar_select %p2391_p3, 1, 0 }
  0x15   : > { %p1726_p5 = pneg %p2391_p3 }
  0x17   : > { %p2402_p6 = pnand %p1726_p5, %p3039_p1 }
  0x19   : > { %s2016_s16 = scalar_lea.hbm %s3049_s2, 16  ;;  %p2416_p8 = pneg %p2402_p6 }
  0x1a   : > { %p2017_p7 = scmp.ne.s32.totalorder %s3049_s2, %s2016_s16  ;;  %p2023_p11 = scmp.lt.u32.totalorder %s2016_s16, %s3049_s2 }
  0x1c   : > { %p2019_p9 = pnand %p2416_p8, %p2017_p7 }
  0x1e   : > { %p2020_p10 = pneg %p2019_p9 }
  0x20   : > { %p2025_p12 = pnand %p2023_p11, %p2020_p10 }
  0x22   : > { %2028 = shalt.err (!%p2025_p12)
}
  0x23   : > { %s2029_s22 = scalar_lea.vmem %s2389_s29, 16  ;;  %s2036_s23 = scalar_lea.vmem %s2389_s29, 32 }
  0x24   : > { %p2030_p13 = scmp.ne.s32.totalorder %s2389_s29, %s2029_s22  ;;  %p2037_p5 = scmp.lt.s32.totalorder %s2389_s29, %s2389_s29 }
  0x25   : > { %p2038_p7 = scmp.lt.s32.totalorder %s2036_s23, %s2029_s22 }
  0x26   : > { %p2032_p0 = pnand %p2030_p13, %p2416_p8 }
  0x27   : > { %p2039_p9 = por %p2038_p7, %p2037_p5 }
  0x28   : > { %p2033_p2 = pneg %p2032_p0 }
  0x2a   : > { %p2040_p4 = pnand %p2039_p9, %p2033_p2 }
  0x2c   : > { %2043 = shalt.err (!%p2040_p4)
}
  0x2d   : > { %1729 = dma.hbm_to_vmem [thread:$0]  (!%p2402_p6), %s3049_s2, 16, %s2389_s29, [#allocation7]  }
  0x2e   : > { %s3051_s3 = sld [smem:[#allocation24_spill]] }
  0x34   : > { %s2044_s15 = scalar_lea.hbm %s3051_s3, 16 }
  0x35   : > { %p2045_p10 = scmp.ne.s32.totalorder %s3051_s3, %s2044_s15  ;;  %p2051_p4 = scmp.lt.u32.totalorder %s2044_s15, %s3051_s3 }
  0x37   : > { %p2047_p11 = pnand %p2045_p10, %p2416_p8 }
  0x39   : > { %p2048_p12 = pneg %p2047_p11 }
  0x3b   : > { %p2053_p13 = pnand %p2051_p4, %p2048_p12 }
  0x3d   : > { %2056 = shalt.err (!%p2053_p13)
}
  0x3e   : > { %s2057_s29 = scalar_lea.vmem %s2398_s10, 16  ;;  %s2064_s21 = scalar_lea.vmem %s2398_s10, 32 }
  0x3f   : > { %p2058_p0 = scmp.ne.s32.totalorder %s2398_s10, %s2057_s29  ;;  %p2065_p7 = scmp.lt.s32.totalorder %s2398_s10, %s2398_s10 }
  0x40   : > { %p2066_p9 = scmp.lt.s32.totalorder %s2064_s21, %s2057_s29 }
  0x41   : > { %p2060_p2 = pnand %p2058_p0, %p2416_p8 }
  0x42   : > { %p2067_p10 = por %p2066_p9, %p2065_p7 }
  0x43   : > { %p2061_p5 = pneg %p2060_p2 }
  0x45   : > { %p2068_p11 = pnand %p2067_p10, %p2061_p5 }
  0x47   : > { %2071 = shalt.err (!%p2068_p11)
}
  0x48   : > { %1732 = dma.hbm_to_vmem [thread:$0]  (!%p2402_p6), %s3051_s3, 16, %s2398_s10, [#allocation10]  }
  0x49   : > { %s2072_s11 = scalar_lea.hbm %s3036_s5, 576 }
  0x4a   : > { %p2073_p12 = scmp.ne.s32.totalorder %s3036_s5, %s2072_s11  ;;  %p2079_p0 = scmp.lt.u32.totalorder %s2072_s11, %s3036_s5 }
  0x4c   : > { %p2075_p4 = pnand %p2073_p12, %p2416_p8 }
  0x4e   : > { %p2076_p13 = pneg %p2075_p4 }
  0x50   : > { %p2081_p2 = pnand %p2079_p0, %p2076_p13 }
  0x52   : > { %2084 = shalt.err (!%p2081_p2)
}
  0x53   : > { %s2085_s10 = scalar_lea.vmem %s2406_s12, 576  ;;  %p2093_p10 = scmp.lt.s32.totalorder %s2406_s12, %s2406_s12 }
  0x54   : > { %p2086_p5 = scmp.ne.s32.totalorder %s2406_s12, %s2085_s10  ;;  %p2094_p11 = scmp.lt.s32.totalorder %s2085_s10, %s2085_s10 }
  0x56   : > { %p2088_p7 = pnand %p2086_p5, %p2416_p8  ;;  %p2095_p12 = por %p2094_p11, %p2093_p10 }
  0x58   : > { %p2089_p9 = pneg %p2088_p7 }
  0x5a   : > { %p2096_p4 = pnand %p2095_p12, %p2089_p9 }
  0x5c   : > { %2099 = shalt.err (!%p2096_p4)
}
  0x5d   : > { %s2303_s18 = smov 64   ;;  %s2304_s20 = smov 4  }
  0x5e   : > { %1738 = dma.hbm_to_vmem [thread:$0]  (!%p2402_p6), %s3036_s5, 576, %s2406_s12, [#allocation13], %s2303_s18, %s2303_s18, %s2304_s20  }
  0x5f   : > { %s2305_s22 = smov [#allocation11]   ;;  %s2306_s28 = smov [#allocation14]  }
  0x60   : > { %s251_s23 = sshll.u32 %s2305_s22, 4  ;;  %s275_s9 = sshll.u32 %s2306_s28, 4  ;;  %s252_s23 = int_to_ptr.vmem [resolvable:$true] %s251_s23  ;;  %s276_s9 = int_to_ptr.vmem [resolvable:$true] %s275_s9 }
  0x61   : > { %s3052_s4 = sld [smem:[#allocation25_spill]] }
  0x67   : > { %s2100_s15 = scalar_lea.hbm %s3052_s4, 128 }
  0x68   : > { %p2101_p13 = scmp.ne.s32.totalorder %s3052_s4, %s2100_s15  ;;  %p2107_p5 = scmp.lt.u32.totalorder %s2100_s15, %s3052_s4 }
  0x6a   : > { %p2103_p0 = pnand %p2101_p13, %p2416_p8 }
  0x6c   : > { %p2104_p2 = pneg %p2103_p0 }
  0x6e   : > { %p2109_p7 = pnand %p2107_p5, %p2104_p2 }
  0x70   : > { %2112 = shalt.err (!%p2109_p7)
}
  0x71   : > { %s2113_s12 = scalar_lea.vmem %s252_s23, 128  ;;  %p2121_p12 = scmp.lt.s32.totalorder %s252_s23, %s252_s23 }
  0x72   : > { %p2114_p9 = scmp.ne.s32.totalorder %s252_s23, %s2113_s12  ;;  %p2122_p4 = scmp.lt.s32.totalorder %s2113_s12, %s2113_s12 }
  0x74   : > { %p2116_p10 = pnand %p2114_p9, %p2416_p8  ;;  %p2123_p1 = por %p2122_p4, %p2121_p12 }
  0x76   : > { %p2117_p11 = pneg %p2116_p10 }
  0x78   : > { %p2124_p3 = pnand %p2123_p1, %p2117_p11 }
  0x7a   : > { %2127 = shalt.err (!%p2124_p3)
}
  0x7b   : > { %1735 = dma.hbm_to_vmem [thread:$0]  (!%p2402_p6), %s3052_s4, 128, %s252_s23, [#allocation10]  }
  0x7c   : > { %s2128_s21 = scalar_lea.hbm %s3037_s6, 16 }
  0x7d   : > { %p2129_p13 = scmp.ne.s32.totalorder %s3037_s6, %s2128_s21  ;;  %p2135_p3 = scmp.lt.u32.totalorder %s2128_s21, %s3037_s6 }
  0x7f   : > { %p2131_p0 = pnand %p2129_p13, %p2416_p8 }
  0x81   : > { %p2132_p1 = pneg %p2131_p0 }
  0x83   : > { %p2137_p2 = pnand %p2135_p3, %p2132_p1 }
  0x85   : > { %2140 = shalt.err (!%p2137_p2)
}
  0x86   : > { %s2141_s15 = scalar_lea.vmem %s276_s9, 16  ;;  %s2148_s23 = scalar_lea.vmem %s276_s9, 32 }
  0x87   : > { %p2142_p5 = scmp.ne.s32.totalorder %s276_s9, %s2141_s15  ;;  %p2149_p10 = scmp.lt.s32.totalorder %s276_s9, %s276_s9 }
  0x88   : > { %p2150_p11 = scmp.lt.s32.totalorder %s2148_s23, %s2141_s15 }
  0x89   : > { %p2144_p7 = pnand %p2142_p5, %p2416_p8 }
  0x8a   : > { %p2151_p12 = por %p2150_p11, %p2149_p10 }
  0x8b   : > { %p2145_p9 = pneg %p2144_p7 }
  0x8d   : > { %p2152_p4 = pnand %p2151_p12, %p2145_p9 }
  0x8f   : > { %2155 = shalt.err (!%p2152_p4)
}
  0x90   : > { %1741 = dma.hbm_to_vmem [thread:$0]  (!%p2402_p6), %s3037_s6, 16, %s276_s9, [#allocation13]  }
  0x91   : > { %s1581_s19 = sadd.s32 4294967294, %s2298_s27   ;;  %s2523_s13 = sadd.s32 1, %s2298_s27  }
  0x92   : > { %s35_s10 = sadd.s32 1, %s2294_s26  ;;  %s32_s12 = ssub.s32 %s2298_s27, %s2523_s13 }
  0x93   : > { %p42_p8 = scmp.ne.s32.totalorder %s2294_s26, %s2290_s25  ;;  %p33_p13 = scmp.eq.s32.totalorder %s32_s12, 0 }
  0x94   : > { %p43_p0 = scmp.eq.s32.totalorder %s2298_s27, 0  ;;  %p48_p1 = scmp.ne.s32.totalorder %s2290_s25, %s2286_s24 }
  0x95   : > { %p203_p3 = scmp.eq.s32.totalorder %s2384_s30, 1  ;;  %p3053_p5 = scmp.eq.s32.totalorder %s2384_s30, 0 }
  0x96   : > { %s2535_s18 = scalar_select %p33_p13, %s2294_s26, %s35_s10  }
  0x97   : > { %p44_p2 = por %p43_p0, %p42_p8  ;;  %p2539_p7 = por %p3053_p5, %p48_p1 }
  0x98   : > { %p2543_p6 = por %p203_p3, %p42_p8  ;;  %p209_p9 = scmp.eq.s32.totalorder %s1581_s19, 1 }
  0x99   : > { %s3054_s20 = scalar_select %p2539_p7, 1, 0 }
  0x9a   : > { %s3055_s9 = scalar_select %p2543_p6, 1, 0 }
  0x9b   : > { %p1758_p10 = scmp.lt.s32.totalorder %s2298_s27, 2  ;;  %s2549_s2 = sand.u32 1, %s2294_s26  }
  0x9c   : > { %p2551_p11 = por %p209_p9, %p48_p1  ;;  %s1589_s21 = sshll.u32 %s2549_s2, 6 }
  0x9d   : > { %s1631_s22 = sshll.u32 %s2298_s27, 10  ;;  %s3057_s0 = sld [smem:[#allocation22_spill]] }
  0x9e   : > { %s3056_s29 = scalar_select %p2551_p11, 1, 0 }
  0x9f   : > { %s290_s15 = scalar_lea.vmem [#allocation3], %s1589_s21  ;;  %p2562_p12 = pnand %p1758_p10, %p44_p2 }
  0xa0   : > { %s297_s23 = sshll.u32 %s290_s15, 4  ;;  %s287_s17 = scalar_lea.sflag [#allocation4], %s2549_s2  ;;  %s2566_s23 = int_to_ptr.vmem [resolvable:$true] %s297_s23 }
  0xa1   : > { %p2158_p8 = pneg %p2562_p12 }
  0xa3   : > { %s2560_s14 = scalar_lea.hbm %s3057_s0, %s1631_s22  ;;  %s2161_s21 = scalar_lea.hbm %s3057_s0, 2048 }
  0xa4   : > { %s2156_s19 = scalar_lea.hbm %s2560_s14, 1024  ;;  %p2162_p1 = scmp.lt.u32.totalorder %s2560_s14, %s3057_s0 }
  0xa5   : > { %p2157_p4 = scmp.ne.s32.totalorder %s2560_s14, %s2156_s19  ;;  %p2163_p3 = scmp.lt.u32.totalorder %s2161_s21, %s2156_s19 }
  0xa6   : > { %p2165_p5 = scmp.lt.u32.totalorder %s2156_s19, %s2560_s14 }
  0xa7   : > { %p2159_p13 = pnand %p2158_p8, %p2157_p4  ;;  %p2164_p2 = por %p2163_p3, %p2162_p1 }
  0xa9   : > { %p2160_p0 = pneg %p2159_p13  ;;  %p2166_p9 = por %p2165_p5, %p2164_p2 }
  0xab   : > { %p2167_p10 = pnand %p2166_p9, %p2160_p0 }
  0xad   : > { %2170 = shalt.err (!%p2167_p10)
}
  0xae   : > { %s2171_s11 = scalar_lea.vmem %s2566_s23, 1024  ;;  %s2307_s15 = smov [#allocation3]  }
  0xaf   : > { %p2172_p4 = scmp.ne.s32.totalorder %s2566_s23, %s2171_s11  ;;  %s2176_s10 = sshll.u32 %s2307_s15, 4  ;;  %s2177_s10 = int_to_ptr.vmem [resolvable:$false] %s2176_s10 }
  0xb0   : > { %s2178_s12 = scalar_lea.vmem %s2177_s10, 2048  ;;  %p2179_p6 = scmp.lt.s32.totalorder %s2566_s23, %s2177_s10 }
  0xb1   : > { %p2174_p13 = pnand %p2172_p4, %p2158_p8  ;;  %p2180_p1 = scmp.lt.s32.totalorder %s2178_s12, %s2171_s11 }
  0xb3   : > { %p2175_p11 = pneg %p2174_p13  ;;  %p2181_p3 = por %p2180_p1, %p2179_p6 }
  0xb5   : > { %p2182_p2 = pnand %p2181_p3, %p2175_p11 }
  0xb7   : > { %2185 = shalt.err (!%p2182_p2)
}
  0xb8   : > { %s2308_s19 = smov 128   ;;  %s2309_s21 = smov 8  }
  0xb9   : > { %1745 = dma.hbm_to_vmem [thread:$0]  (!%p2562_p12), %s2560_s14, 1024, %s2566_s23, %s287_s17, %s2308_s19, %s2308_s19, %s2309_s21  }
  0xba   : > { %s307_s22 = sand.u32 1, %s2298_s27   ;;  %s1592_s28 = sshll.u32 %s2298_s27, 4 }
  0xbb   : > { %s2601_s10 = scalar_lea.hbm %s3032_s1, %s1592_s28  ;;  %s310_s12 = scalar_lea.vmem [#allocation6], %s2549_s2 }
  0xbc   : > { %s317_s0 = sshll.u32 %s310_s12, 4  ;;  %s308_s3 = scalar_lea.sflag [#allocation7], %s307_s22  ;;  %s318_s0 = int_to_ptr.vmem [resolvable:$true] %s317_s0 }
  0xbd   : > { %s2186_s4 = scalar_lea.hbm %s2601_s10, 16  ;;  %s2191_s17 = scalar_lea.hbm %s3032_s1, 32 }
  0xbe   : > { %p2187_p6 = scmp.ne.s32.totalorder %s2601_s10, %s2186_s4  ;;  %p2192_p5 = scmp.lt.u32.totalorder %s2601_s10, %s3032_s1 }
  0xbf   : > { %p2193_p9 = scmp.lt.u32.totalorder %s2191_s17, %s2186_s4  ;;  %p2195_p4 = scmp.lt.u32.totalorder %s2186_s4, %s2601_s10 }
  0xc0   : > { %p2189_p11 = pnand %p2187_p6, %p2158_p8 }
  0xc1   : > { %p2194_p10 = por %p2193_p9, %p2192_p5 }
  0xc2   : > { %p2190_p0 = pneg %p2189_p11 }
  0xc3   : > { %p2196_p13 = por %p2195_p4, %p2194_p10 }
  0xc5   : > { %p2197_p1 = pnand %p2196_p13, %p2190_p0 }
  0xc7   : > { %2200 = shalt.err (!%p2197_p1)
}
  0xc8   : > { %s2201_s2 = scalar_lea.vmem %s318_s0, 16  ;;  %s2310_s22 = smov [#allocation6]  }
  0xc9   : > { %p2202_p3 = scmp.ne.s32.totalorder %s318_s0, %s2201_s2  ;;  %s2206_s28 = sshll.u32 %s2310_s22, 4  ;;  %s2207_s28 = int_to_ptr.vmem [resolvable:$false] %s2206_s28 }
  0xca   : > { %s2208_s15 = scalar_lea.vmem %s2207_s28, 32  ;;  %p2209_p11 = scmp.lt.s32.totalorder %s318_s0, %s2207_s28 }
  0xcb   : > { %p2204_p2 = pnand %p2202_p3, %p2158_p8  ;;  %p2210_p7 = scmp.lt.s32.totalorder %s2208_s15, %s2201_s2 }
  0xcd   : > { %p2205_p6 = pneg %p2204_p2  ;;  %p2211_p5 = por %p2210_p7, %p2209_p11 }
  0xcf   : > { %p2212_p9 = pnand %p2211_p5, %p2205_p6 }
  0xd1   : > { %2215 = shalt.err (!%p2212_p9)
}
  0xd2   : > { %1748 = dma.hbm_to_vmem [thread:$0]  (!%p2562_p12), %s2601_s10, 16, %s318_s0, %s308_s3  }
  0xd3   : > { %p3059_p0 = scmp.ne.s32.totalorder %s3047_s8, 0 }
  0xd4   : > { %s2626_s4 = sand.u32 (!%p3059_p0), 1, %s2290_s25   ;;  %p3060_p7 = scmp.ne.s32.totalorder (!%p3059_p0), %s3054_s20, 0 }
  0xd5   : > { %326 = sbr.rel (%p3059_p0) target bundleno = 1171 (0x493), region = 48  ;;  %s1594_s11 = sshll.u32 (!%p3059_p0), %s2626_s4, 6 }
  0xd6   : > { %s329_s12 = scalar_lea.sflag (!%p3059_p0), [#allocation4], %s2626_s4  ;;  %s2632_s14 = scalar_lea.vmem (!%p3059_p0), [#allocation3], %s1594_s11 }
  0xdc   : > { %2261 = dma.done.wait (%p3060_p7), %s329_s12, 1024  }
  0xdd   : > { %2263 = vsyncadd (%p3060_p7), %s329_s12, 4294966272  ;;  %s337_s0 = sand.u32 1, %s2384_s30   ;;  %s340_s8 = scalar_lea.vmem [#allocation6], %s2626_s4 }
  0xde   : > { %s338_s3 = scalar_lea.sflag [#allocation7], %s337_s0 }
  0xdf   : > { %2265 = dma.done.wait (%p3060_p7), %s338_s3, 16  }
  0xe0   : > { %2267 = vsyncadd (%p3060_p7), %s338_s3, 4294967280  ;;  %p3061_p12 = scmp.eq.s32.totalorder %s2384_s30, 0 }
  0xe2   : > { %2269 = dma.done.wait (%p3061_p12), [#allocation7], 16   ;;  %p3062_p8 = pmov %p3061_p12 }
  0xe4   : > { %2271 = vsyncadd (%p3062_p8), [#allocation7], 4294967280  ;;  %p3063_p10 = pmov %p3062_p8 }
  0xe5   : > { %p3064_p4 = pmov %p3062_p8 }
  0xe6   : > { %2273 = dma.done.wait (%p3063_p10), [#allocation10], 144  }
  0xe7   : > { %2275 = vsyncadd (%p3064_p4), [#allocation10], 4294967152  ;;  %p3065_p13 = pmov %p3064_p4 }
  0xe8   : > { %p3066_p1 = pmov %p3064_p4 }
  0xe9   : > { %2277 = dma.done.wait (%p3065_p13), [#allocation13], 592  }
  0xea   : > { %2279 = vsyncadd (%p3066_p1), [#allocation13], 4294966704  ;;  %vm407_vm0 = vcmask 64512   ;;  %v2311_v0 = vmov 0.0   ;;  %vm2312_vm1 = vmmov 0   ;;  %v2682_v1 = vld [vmem:[#allocation11] sm:$0xff] }
  0xeb   : > { %1650 = vmatprep.subr.mxu0 %v2311_v0  ;;  %1652 = vmatprep.mubr.msk.f32.mxu0 %vm2312_vm1, %v2311_v0  ;;  %854 = vst.msk [vmem:[#allocation2] sm:$0xff] %vm407_vm0, %v2311_v0  ;;  %857 = vst.msk [vmem:[#allocation2 + $0x10] sm:$0xff] %vm407_vm0, %v2311_v0  ;;  %v2685_v2 = vld [vmem:[%s2632_s14] sm:$0xff]  ;;  %v2688_v3 = vld [vmem:[%s2632_s14 + $0x8] sm:$0xff]  ;;  %vm610_vm2 = vcmask 31744   ;;  %vm855_vm3 = vcmask 58368  }
  0xec   : > { %859 = vst.msk [vmem:[#allocation2 + $0x20] sm:$0xff] %vm407_vm0, %v2311_v0  ;;  %861 = vst.msk [vmem:[#allocation2 + $0x30] sm:$0xff] %vm407_vm0, %v2311_v0  ;;  %1655 = vmatprep.subr.mxu1 %v2311_v0  ;;  %1657 = vmatprep.mubr.msk.f32.mxu1 %vm2312_vm1, %v2311_v0  ;;  %v2692_v4 = vld [vmem:[%s2632_s14 + $0x10] sm:$0xff]  ;;  %v2695_v5 = vld [vmem:[%s2632_s14 + $0x18] sm:$0xff]  ;;  %v408_v7 = vsel %vm407_vm0, %v2685_v2, 0.0  ;;  %v409_v8 = vsel %vm407_vm0, %v2688_v3, 0.0  ;;  %v429_v9 = vmul.f32 %v2685_v2, %v2685_v2 }
  0xed   : > { %863 = vst.msk [vmem:[#allocation2 + $0x40] sm:$0xff] %vm407_vm0, %v2311_v0  ;;  %865 = vst.msk [vmem:[#allocation2 + $0x50] sm:$0xff] %vm407_vm0, %v2311_v0  ;;  %1651 = vmatpush3.msra.mxu0 %v2682_v1  ;;  %v2698_v6 = vld [vmem:[%s2632_s14 + $0x20] sm:$0xff]  ;;  %1656 = vmatpush3.msra.mxu1 %v2682_v1  ;;  %v430_v10 = vmul.f32 %v2688_v3, %v2688_v3  ;;  %v410_v11 = vadd.f32 %v409_v8, %v408_v7  ;;  %v411_v12 = vsel %vm407_vm0, %v2692_v4, 0.0  ;;  %v2714_v13 = vld [vmem:[%s2632_s14 + $0x28] sm:$0xff]  ;;  %s2313_s20 = smov 8  }
  0xee   : > { %867 = vst.msk [vmem:[#allocation2 + $0x60] sm:$0xff] %vm407_vm0, %v2311_v0  ;;  %869 = vst.msk [vmem:[#allocation2 + $0x70] sm:$0xff] %vm407_vm0, %v2311_v0  ;;  %1660 = vmatprep.subr.mxu0 %v2311_v0  ;;  %1665 = vmatprep.subr.mxu1 %v2311_v0  ;;  %v413_v14 = vsel %vm407_vm0, %v2695_v5, 0.0  ;;  %v415_v15 = vsel %vm407_vm0, %v2698_v6, 0.0  ;;  %v431_v16 = vmul.f32 %v2692_v4, %v2692_v4  ;;  %v437_v20 = vsel %vm407_vm0, %v429_v9, 0.0  ;;  %v2729_v22 = vld [vmem:[%s2632_s14 + $0x30] sm:$0xff] }
  0xef   : > { %871 = vst.msk [vmem:[#allocation2 + $0x80] sm:$0xff] %vm407_vm0, %v2311_v0  ;;  %873 = vst.msk [vmem:[#allocation2 + $0x90] sm:$0xff] %vm407_vm0, %v2311_v0  ;;  %v412_v17 = vadd.f32 %v411_v12, %v410_v11  ;;  %v432_v18 = vmul.f32 %v2695_v5, %v2695_v5  ;;  %v433_v19 = vmul.f32 %v2698_v6, %v2698_v6  ;;  %v438_v21 = vsel %vm407_vm0, %v430_v10, 0.0  ;;  %v2738_v29 = vld [vmem:[%s2632_s14 + $0x38] sm:$0xff]  ;;  %s2314_s16 = smov 16   ;;  %s2315_s10 = smov 24  }
  0xf0   : > { %v439_v24 = vadd.f32 %v438_v21, %v437_v20  ;;  %v440_v25 = vsel %vm407_vm0, %v431_v16, 0.0  ;;  %v417_v26 = vsel %vm407_vm0, %v2714_v13, 0.0  ;;  %v434_v27 = vmul.f32 %v2714_v13, %v2714_v13  ;;  %860 = vst.msk [vmem:[#allocation2 + $0x28] sm:$0x3] %vm855_vm3, %v2311_v0  ;;  %862 = vst.msk [vmem:[#allocation2 + $0x38] sm:$0x3] %vm855_vm3, %v2311_v0 }
  0xf1   : > { %v414_v23 = vadd.f32 %v413_v14, %v412_v17  ;;  %v442_v28 = vsel %vm407_vm0, %v432_v18, 0.0  ;;  %v419_v32 = vsel %vm407_vm0, %v2729_v22, 0.0  ;;  %v435_v33 = vmul.f32 %v2729_v22, %v2729_v22  ;;  %856 = vst.msk [vmem:[#allocation2 + $0x8] sm:$0x3] %vm855_vm3, %v2311_v0  ;;  %858 = vst.msk [vmem:[#allocation2 + $0x18] sm:$0x3] %vm855_vm3, %v2311_v0 }
  0xf2   : > { %v441_v31 = vadd.f32 %v440_v25, %v439_v24  ;;  %v444_v34 = vsel %vm407_vm0, %v433_v19, 0.0  ;;  %v421_v37 = vsel %vm407_vm0, %v2738_v29, 0.0  ;;  %v436_v38 = vmul.f32 %v2738_v29, %v2738_v29  ;;  %864 = vst.msk [vmem:[#allocation2 + $0x48] sm:$0x3] %vm855_vm3, %v2311_v0  ;;  %866 = vst.msk [vmem:[#allocation2 + $0x58] sm:$0x3] %vm855_vm3, %v2311_v0 }
  0xf3   : > { %v416_v30 = vadd.f32 %v415_v15, %v414_v23  ;;  %v446_v39 = vsel %vm407_vm0, %v434_v27, 0.0  ;;  %v448_v42 = vsel %vm407_vm0, %v435_v33, 0.0  ;;  %868 = vst.msk [vmem:[#allocation2 + $0x68] sm:$0x3] %vm855_vm3, %v2311_v0  ;;  %870 = vst.msk [vmem:[#allocation2 + $0x78] sm:$0x3] %vm855_vm3, %v2311_v0  ;;  %v763_v15 = vlaneseq }
  0xf4   : > { %v443_v36 = vadd.f32 %v442_v28, %v441_v31  ;;  %v450_v45 = vsel %vm407_vm0, %v436_v38, 0.0  ;;  %872 = vst.msk [vmem:[#allocation2 + $0x88] sm:$0x3] %vm855_vm3, %v2311_v0  ;;  %874 = vst.msk [vmem:[#allocation2 + $0x98] sm:$0x3] %vm855_vm3, %v2311_v0  ;;  %s2316_s23 = smov 32  }
  0xf5   : > { %v418_v35 = vadd.f32 %v417_v26, %v416_v30  ;;  %v764_v16 = vshrl.u32 %v763_v15, 7  ;;  %v404_v17 = vld [vmem:[#allocation8] sm:$0x1]  ;;  %v405_v23 = vld [vmem:[#allocation9] sm:$0x1]  ;;  %s2317_s17 = smov 40  }
  0xf6   : > { %v445_v41 = vadd.f32 %v444_v34, %v443_v36  ;;  %s2318_s19 = smov 48   ;;  %s2319_s21 = smov 56   ;;  %vm1335_vm4 = vcmask 1043456   ;;  %vm1221_vm5 = vcmask 130048   ;;  %vm1230_vm6 = vcmask 195584  }
  0xf7   : > { %v420_v40 = vadd.f32 %v419_v32, %v418_v35  ;;  %v765_v18 = vsub.s32 0, %v764_v16  ;;  %s2320_s2 = smov 64   ;;  %vm1239_vm7 = vcmask 261120   ;;  %vm1248_vm8 = vcmask 326656   ;;  %s1632_s22 = sshll.u32 %s2384_s30, 10 }
  0xf8   : > { %v447_v44 = vadd.f32 %v446_v39, %v445_v41  ;;  %vm1257_vm9 = vcmask 392192   ;;  %vm1266_vm10 = vcmask 457728   ;;  %vm1275_vm11 = vcmask 523264   ;;  %s394_s28 = scalar_lea.vmem [#allocation15], %s1594_s11  ;;  %s2980_s12 = scalar_lea.hbm %s3038_s7, %s1632_s22 }
  0xf9   : > { %v422_v43 = vadd.f32 %v421_v37, %v420_v40  ;;  %vm1322_vm12 = vcmask 588800   ;;  %s1441_s15 = sshll.u32 %s394_s28, 4  ;;  %s1428_s14 = scalar_lea.sflag [#allocation5], %s2626_s4  ;;  %s2984_s15 = int_to_ptr.vmem [resolvable:$true] %s1441_s15 }
  0xfa   : > { %v449_v47 = vadd.f32 %v448_v42, %v447_v44  ;;  %s2216_s0 = scalar_lea.vmem %s2984_s15, 1024  ;;  %p3067_p2 = scmp.ne.s32.totalorder %s3055_s9, 0 }
  0xfb   : > { %v423_v46 = vrot.slane %v422_v43, 4  ;;  %p2217_p3 = scmp.ne.s32.totalorder %s2984_s15, %s2216_s0  ;;  %s2321_s3 = smov [#allocation15]  }
  0xfc   : > { %v451_v49 = vadd.f32 %v450_v45, %v449_v47 }
  0xfd   : > { %v424_v48 = vadd.f32 %v423_v46, %v422_v43  ;;  %p2218_p6 = pnand %p2217_p3, %p3067_p2 }
  0xfe   : > { %v452_v51 = vrot.slane %v451_v49, 4 }
  0xff   : > { %v425_v50 = vrot.slane %v424_v48, 2  ;;  %p2219_p11 = pneg %p2218_p6 }
 0x100   : > { %v453_v53 = vadd.f32 %v452_v51, %v451_v49 }
 0x101   : > { %v426_v52 = vadd.f32 %v425_v50, %v424_v48 }
 0x102   : > { %v454_v55 = vrot.slane %v453_v53, 2 }
 0x103   : > { %v427_v54 = vrot.slane %v426_v52, 1 }
 0x104   : > { %v455_v57 = vadd.f32 %v454_v55, %v453_v53 }
 0x105   : > { %v428_v56 = vadd.f32 %v427_v54, %v426_v52 }
 0x106   : > { %v456_v58 = vrot.slane %v455_v57, 1 }
 0x107   : > { %1653 = vmatmul.mubr.msk.f32.vlgmr.msra.gmra.mrb[0].mxu0 %vm407_vm0, %v428_v56 }
 0x108   : > { %1662 = vmatprep.mubr.msk.f32.mxu0 %vm2312_vm1, %v2311_v0  ;;  %v457_v59 = vadd.f32 %v456_v58, %v455_v57  ;;  %1661 = vmatpush3.xpose.msk.msra.mxu0 %vm610_vm2, %v2682_v1 }
 0x10a   : > { %1658 = vmatmul.mubr.msk.f32.vlgmr.msra.gmra.mrb[0].mxu1 %vm407_vm0, %v457_v59 }
 0x10b   : > { %1667 = vmatprep.mubr.msk.f32.mxu1 %vm2312_vm1, %v2311_v0  ;;  %1666 = vmatpush3.xpose.msk.msra.mxu1 %vm610_vm2, %v2682_v1 }
 0x1da   : > { %v527_v60 = vpop.f32.mrb[0].mxu0 }
 0x1db   : > { %v531_v61 = vmul.f32 0.0078125, %v527_v60  ;;  %v1654_v62 = vpop.f32.mrb[1].mxu0 }
 0x1dd   : > { %v606_v63 = vmul.f32 %v531_v61, %v531_v61  ;;  %1663 = vmatmul.mubr.msk.f32.vlgmr.msra.gmra.mrb[2].mxu0 %vm610_vm2, %v531_v61  ;;  %v601_v7 = vpop.f32.mrb[0].mxu1 }
 0x1de   : > { %v605_v8 = vmul.f32 0.0078125, %v601_v7  ;;  %v1659_v9 = vpop.f32.mrb[1].mxu1 }
 0x1e0   : > { %v607_v10 = vsub.f32 %v605_v8, %v606_v63 }
 0x1e2   : > { %v608_v11 = vadd.f32 1e-05, %v607_v10 }
 0x1e4   : > { %1982 = vrsqrt.f32 %v608_v11 }
 0x1ee   : > { %v1983_v12 = vpop.eup %1982 }
 0x1ef   : > { %1668 = vmatmul.mubr.msk.f32.vlgmr.msra.gmra.mrb[2].mxu1 %vm610_vm2, %v1983_v12 }
 0x2b0   : > { %v683_v1 = vpop.f32.mrb[2].mxu0 }
 0x2b1   : > { %v1664_v14 = vpop.f32.mrb[3].mxu0 }
 0x2c2   : > { %v756_v19 = vpop.f32.mrb[2].mxu1 }
 0x2c3   : > { %v760_v20 = vmul.f32 %v756_v19, %v404_v17  ;;  %v1669_v21 = vpop.f32.mrb[3].mxu1  ;;  %v892_v19 = vld [vmem:[#allocation2 + $0x1] sm:$0xff] }
 0x2c5   : > { %v761_v24 = vmul.f32 %v760_v20, %v683_v1  ;;  %v766_v25 = vrot.slane %v760_v20, %v765_v18 }
 0x2c7   : > { %v762_v26 = vsub.f32 %v405_v23, %v761_v24  ;;  %v767_v27 = vmul.f32 %v766_v25, %v2685_v2  ;;  %v768_v28 = vmul.f32 %v766_v25, %v2688_v3  ;;  %v769_v30 = vmul.f32 %v766_v25, %v2692_v4 }
 0x2c8   : > { %v770_v0 = vmul.f32 %v766_v25, %v2695_v5  ;;  %v771_v32 = vmul.f32 %v766_v25, %v2698_v6  ;;  %v772_v33 = vmul.f32 %v766_v25, %v2714_v13  ;;  %v773_v34 = vmul.f32 %v766_v25, %v2729_v22 }
 0x2c9   : > { %v779_v31 = vrot.slane %v762_v26, %v765_v18  ;;  %v774_v35 = vmul.f32 %v766_v25, %v2738_v29 }
 0x2cb   : > { %v781_v36 = vadd.f32 %v779_v31, %v767_v27  ;;  %v782_v37 = vadd.f32 %v779_v31, %v768_v28  ;;  %v783_v38 = vadd.f32 %v779_v31, %v769_v30  ;;  %v784_v39 = vadd.f32 %v779_v31, %v770_v0 }
 0x2cc   : > { %v785_v2 = vadd.f32 %v779_v31, %v771_v32  ;;  %v786_v40 = vadd.f32 %v779_v31, %v772_v33  ;;  %v787_v3 = vadd.f32 %v779_v31, %v773_v34  ;;  %v788_v41 = vadd.f32 %v779_v31, %v774_v35  ;;  %v900_v31 = vld [vmem:[#allocation2 + $0x2] sm:$0xff] }
 0x2cd   : > { %v1607_v4 = vmul.f32 -1.442695, %v781_v36  ;;  %v1608_v42 = vmul.f32 -1.442695, %v782_v37  ;;  %v1609_v5 = vmul.f32 -1.442695, %v783_v38 }
 0x2ce   : > { %v1610_v43 = vmul.f32 -1.442695, %v784_v39  ;;  %v1611_v6 = vmul.f32 -1.442695, %v785_v2  ;;  %v1612_v13 = vmul.f32 -1.442695, %v786_v40 }
 0x2cf   : > { %1984 = vpow2.f32 %v1607_v4  ;;  %v1613_v22 = vmul.f32 -1.442695, %v787_v3  ;;  %v1614_v29 = vmul.f32 -1.442695, %v788_v41 }
 0x2d0   : > { %1986 = vpow2.f32 %v1608_v42 }
 0x2d1   : > { %1988 = vpow2.f32 %v1609_v5 }
 0x2d2   : > { %1990 = vpow2.f32 %v1610_v43 }
 0x2d3   : > { %1992 = vpow2.f32 %v1611_v6 }
 0x2d4   : > { %1994 = vpow2.f32 %v1612_v13 }
 0x2d5   : > { %1996 = vpow2.f32 %v1613_v22 }
 0x2d6   : > { %1998 = vpow2.f32 %v1614_v29 }
 0x2d9   : > { %v1985_v44 = vpop.eup %1984 }
 0x2da   : > { %v1987_v45 = vpop.eup %1986  ;;  %v813_v46 = vadd.f32 1.0, %v1985_v44 }
 0x2db   : > { %v1989_v47 = vpop.eup %1988  ;;  %v814_v48 = vadd.f32 1.0, %v1987_v45 }
 0x2dc   : > { %v1991_v49 = vpop.eup %1990  ;;  %v815_v50 = vadd.f32 1.0, %v1989_v47  ;;  %2000 = vrcp.f32 %v813_v46 }
 0x2dd   : > { %v1993_v51 = vpop.eup %1992  ;;  %v816_v52 = vadd.f32 1.0, %v1991_v49  ;;  %2002 = vrcp.f32 %v814_v48 }
 0x2de   : > { %v1995_v53 = vpop.eup %1994  ;;  %v817_v54 = vadd.f32 1.0, %v1993_v51  ;;  %2004 = vrcp.f32 %v815_v50 }
 0x2df   : > { %v1997_v55 = vpop.eup %1996  ;;  %v818_v56 = vadd.f32 1.0, %v1995_v53  ;;  %2006 = vrcp.f32 %v816_v52 }
 0x2e0   : > { %v1999_v57 = vpop.eup %1998  ;;  %v819_v58 = vadd.f32 1.0, %v1997_v55  ;;  %2008 = vrcp.f32 %v817_v54 }
 0x2e1   : > { %v820_v59 = vadd.f32 1.0, %v1999_v57  ;;  %2010 = vrcp.f32 %v818_v56  ;;  %v1977_v57 = vld [vmem:[#allocation12] sm:$0xff]  }
 0x2e2   : > { %2012 = vrcp.f32 %v819_v58  ;;  %1670 = vmatprep.subr.bf16.mxu0 %v1977_v57  ;;  %1688 = vmatprep.subr.bf16.mxu1 %v1977_v57 }
 0x2e3   : > { %2014 = vrcp.f32 %v820_v59  ;;  %1671 = vmatpush3.bf16.msra.mxu0 %v1977_v57  ;;  %1693 = vmatpush3.bf16.msra.mxu1 %v1977_v57 }
 0x2e6   : > { %v2001_v60 = vpop.eup %2000 }
 0x2e7   : > { %v2003_v61 = vpop.eup %2002  ;;  %v837_v62 = vmul.f32 %v2001_v60, %v781_v36  ;;  %v1978_v60 = vld [vmem:[#allocation12 + $0x8] sm:$0xff]  }
 0x2e8   : > { %v2005_v63 = vpop.eup %2004  ;;  %v838_v7 = vmul.f32 %v2003_v61, %v782_v37  ;;  %1672 = vmatprep.subr.bf16.mxu0 %v1978_v60  ;;  %1689 = vmatprep.subr.bf16.mxu1 %v1978_v60 }
 0x2e9   : > { %v2007_v8 = vpop.eup %2006  ;;  %v839_v9 = vmul.f32 %v2005_v63, %v783_v38  ;;  %876 = vst.msk [vmem:[#allocation2 + $0x11] sm:$0xff] %vm407_vm0, %v837_v62  ;;  %v940_v62 = vld [vmem:[#allocation2 + $0x90] sm:$0xff]  ;;  %1673 = vmatpush3.bf16.msra.mxu0 %v1978_v60  ;;  %1694 = vmatpush3.bf16.msra.mxu1 %v1978_v60 }
 0x2ea   : > { %v2009_v10 = vpop.eup %2008  ;;  %v840_v11 = vmul.f32 %v2007_v8, %v784_v39  ;;  %877 = vst.msk [vmem:[#allocation2 + $0x21] sm:$0xff] %vm407_vm0, %v838_v7  ;;  %v1979_v7 = vld [vmem:[#allocation12 + $0x10] sm:$0xff]  }
 0x2eb   : > { %v2011_v12 = vpop.eup %2010  ;;  %v841_v1 = vmul.f32 %v2009_v10, %v785_v2  ;;  %878 = vst.msk [vmem:[#allocation2 + $0x31] sm:$0xff] %vm407_vm0, %v839_v9  ;;  %1674 = vmatprep.subr.bf16.mxu0 %v1979_v7  ;;  %1690 = vmatprep.subr.bf16.mxu1 %v1979_v7  ;;  %v1980_v9 = vld [vmem:[#allocation12 + $0x18] sm:$0xff]   ;;  %v948_v10 = vld [vmem:[#allocation2 + $0x91] sm:$0xff] }
 0x2ec   : > { %v2013_v14 = vpop.eup %2012  ;;  %v842_v15 = vmul.f32 %v2011_v12, %v786_v40  ;;  %879 = vst.msk [vmem:[#allocation2 + $0x41] sm:$0xff] %vm407_vm0, %v840_v11  ;;  %v1981_v12 = vld [vmem:[#allocation12 + $0x20] ss:$0 sps:$4 sm:$0xff]  }
 0x2ed   : > { %v2015_v16 = vpop.eup %2014  ;;  %v843_v17 = vmul.f32 %v2013_v14, %v787_v3  ;;  %880 = vst.msk [vmem:[#allocation2 + $0x51] sm:$0xff] %vm407_vm0, %v841_v1  ;;  %1675 = vmatpush3.bf16.msra.mxu0 %v1979_v7  ;;  %1695 = vmatpush3.bf16.msra.mxu1 %v1979_v7  ;;  %v1337_v1 = vsel %vm1335_vm4, %v1981_v12, 0  ;;  %v956_v14 = vld [vmem:[#allocation2 + $0x92] sm:$0xff] }
 0x2ee   : > { %v844_v18 = vmul.f32 %v2015_v16, %v788_v41  ;;  %881 = vst.msk [vmem:[#allocation2 + $0x61] sm:$0xff] %vm407_vm0, %v842_v15  ;;  %1676 = vmatprep.subr.bf16.mxu0 %v1980_v9  ;;  %1691 = vmatprep.subr.bf16.mxu1 %v1980_v9 }
 0x2ef   : > { %882 = vst.msk [vmem:[#allocation2 + $0x71] sm:$0xff] %vm407_vm0, %v843_v17 }
 0x2f0   : > { %v893_v20 = vld [vmem:[#allocation2 + $0x11] sm:$0xff]  ;;  %883 = vst.msk [vmem:[#allocation2 + $0x81] sm:$0xff] %vm407_vm0, %v844_v18 }
 0x2f1   : > { %v894_v21 = vld [vmem:[#allocation2 + $0x21] sm:$0xff]  ;;  %v1817_v23 = vpack.i.bf16 %v893_v20, %v892_v19  ;;  %v901_v32 = vld [vmem:[#allocation2 + $0x12] sm:$0xff]  ;;  %1677 = vmatpush3.bf16.msra.mxu0 %v1980_v9  ;;  %1696 = vmatpush3.bf16.msra.mxu1 %v1980_v9 }
 0x2f2   : > { %v895_v24 = vld [vmem:[#allocation2 + $0x31] sm:$0xff]  ;;  %v1837_v36 = vpack.i.bf16 %v901_v32, %v900_v31  ;;  %v902_v37 = vld [vmem:[#allocation2 + $0x22] sm:$0xff]  ;;  %v1877_v48 = vpack.i.bf16 %v894_v21, %v893_v20  ;;  %1698 = vmatprep.subr.msk.bf16.mxu0 %vm1335_vm4, %v1981_v12  ;;  %1699 = vmatprep.subr.msk.bf16.mxu1 %vm1335_vm4, %v1981_v12 }
 0x2f3   : > { %v2786_v25 = vpack.i.bf16 %v895_v24, %v894_v21  ;;  %1818 = vrot.lane.b32.xlu0 %v1817_v23, %s2313_s20  ;;  %v896_v26 = vld [vmem:[#allocation2 + $0x41] sm:$0xff]  ;;  %v903_v38 = vld [vmem:[#allocation2 + $0x32] sm:$0xff]  ;;  %v1897_v53 = vpack.i.bf16 %v902_v37, %v901_v32 }
 0x2f4   : > { %v897_v27 = vld [vmem:[#allocation2 + $0x51] sm:$0xff]  ;;  %v904_v34 = vld [vmem:[#allocation2 + $0x42] sm:$0xff]  ;;  %v2802_v3 = vpack.i.bf16 %v903_v38, %v902_v37  ;;  %v1887_v51 = vpack.i.bf16 %v896_v26, %v895_v24 }
 0x2f5   : > { %1828 = vrot.lane.b32.xlu1 %v2786_v25, %s2313_s20  ;;  %v898_v28 = vld [vmem:[#allocation2 + $0x61] sm:$0xff]  ;;  %v2791_v30 = vpack.i.bf16 %v897_v27, %v896_v26  ;;  %v905_v35 = vld [vmem:[#allocation2 + $0x52] sm:$0xff]  ;;  %v1907_v56 = vpack.i.bf16 %v904_v34, %v903_v38  ;;  %1679 = vmatpush3.bf16.msra.mxu0 %v1337_v1 }
 0x2f6   : > { %v899_v0 = vld [vmem:[#allocation2 + $0x71] sm:$0xff]  ;;  %v2799_v39 = vpack.i.bf16 %v905_v35, %v904_v34  ;;  %v906_v2 = vld [vmem:[#allocation2 + $0x62] sm:$0xff]  ;;  %v1882_v49 = vpack.i.bf16 %v898_v28, %v897_v27  ;;  %1697 = vmatpush3.bf16.msra.mxu1 %v1337_v1 }
 0x2f7   : > { %v2793_v33 = vpack.i.bf16 %v899_v0, %v898_v28  ;;  %1823 = vrot.lane.b32.xlu0 %v2791_v30, %s2313_s20  ;;  %v907_v40 = vld [vmem:[#allocation2 + $0x72] sm:$0xff]  ;;  %v2806_v4 = vld [vmem:[#allocation2 + $0x20] sm:$0xff]  ;;  %v1902_v54 = vpack.i.bf16 %v906_v2, %v905_v35 }
 0x2f8   : > { %v2804_v41 = vld [vmem:[#allocation2 + $0x10] sm:$0xff]  ;;  %v2808_v42 = vpack.i.bf16 %v907_v40, %v906_v2  ;;  %v2813_v43 = vld [vmem:[#allocation2 + $0x60] sm:$0xff] }
 0x2f9   : > { %1833 = vrot.lane.b32.xlu1 %v2793_v33, %s2313_s20  ;;  %v2811_v5 = vld [vmem:[#allocation2 + $0x50] sm:$0xff]  ;;  %v1857_v6 = vpack.i.bf16 %v2806_v4, %v2804_v41  ;;  %v2820_v22 = vld [vmem:[#allocation2 + $0x40] sm:$0xff] }
 0x2fa   : > { %v2818_v13 = vld [vmem:[#allocation2 + $0x30] sm:$0xff]  ;;  %v1862_v29 = vpack.i.bf16 %v2813_v43, %v2811_v5  ;;  %v915_v45 = vld [vmem:[#allocation2 + $0x80] sm:$0xff]  ;;  %v1927_v63 = vpack.i.bf16 %v2811_v5, %v2820_v22 }
 0x2fb   : > { %1838 = vrot.lane.b32.xlu0 %v1837_v36, %s2314_s16  ;;  %v2824_v44 = vld [vmem:[#allocation2 + $0x70] sm:$0xff]  ;;  %v1867_v46 = vpack.i.bf16 %v2820_v22, %v2818_v13  ;;  %v923_v50 = vld [vmem:[#allocation2 + $0x81] sm:$0xff]  ;;  %v1917_v59 = vpack.i.bf16 %v2818_v13, %v2806_v4  ;;  %v1932_v8 = vpack.i.bf16 %v940_v62, %v915_v45 }
 0x2fc   : > { %v1872_v47 = vpack.i.bf16 %v915_v45, %v2824_v44  ;;  %v1892_v52 = vpack.i.bf16 %v923_v50, %v899_v0  ;;  %v931_v55 = vld [vmem:[#allocation2 + $0x82] sm:$0xff]  ;;  %v1922_v61 = vpack.i.bf16 %v2824_v44, %v2813_v43  ;;  %v1952_v11 = vpack.i.bf16 %v948_v10, %v923_v50 }
 0x2fd   : > { %1843 = vrot.lane.b32.xlu1 %v2799_v39, %s2314_s16  ;;  %v1912_v58 = vpack.i.bf16 %v931_v55, %v907_v40  ;;  %v1972_v15 = vpack.i.bf16 %v956_v14, %v931_v55  ;;  %v884_v35 = vld [vmem:[#allocation2] sm:$0xff] }
 0x2ff   : > { %1848 = vrot.lane.b32.xlu0 %v2802_v3, %s2314_s16 }
 0x301   : > { %1853 = vrot.lane.b32.xlu1 %v2808_v42, %s2314_s16 }
 0x303   : > { %1858 = vrot.lane.b32.xlu0 %v1857_v6, %s2315_s10 }
 0x305   : > { %1863 = vrot.lane.b32.xlu1 %v1862_v29, %s2315_s10 }
 0x307   : > { %1868 = vrot.lane.b32.xlu0 %v1867_v46, %s2315_s10 }
 0x309   : > { %1873 = vrot.lane.b32.xlu1 %v1872_v47, %s2315_s10 }
 0x30b   : > { %1878 = vrot.lane.b32.xlu0 %v1877_v48, %s2316_s23 }
 0x30d   : > { %1883 = vrot.lane.b32.xlu1 %v1882_v49, %s2316_s23 }
 0x30f   : > { %1888 = vrot.lane.b32.xlu0 %v1887_v51, %s2316_s23 }
 0x311   : > { %1893 = vrot.lane.b32.xlu1 %v1892_v52, %s2316_s23 }
 0x313   : > { %1898 = vrot.lane.b32.xlu0 %v1897_v53, %s2317_s17 }
 0x315   : > { %1903 = vrot.lane.b32.xlu1 %v1902_v54, %s2317_s17 }
 0x317   : > { %1908 = vrot.lane.b32.xlu0 %v1907_v56, %s2317_s17 }
 0x319   : > { %1913 = vrot.lane.b32.xlu1 %v1912_v58, %s2317_s17 }
 0x31b   : > { %1918 = vrot.lane.b32.xlu0 %v1917_v59, %s2318_s19 }
 0x31d   : > { %1923 = vrot.lane.b32.xlu1 %v1922_v61, %s2318_s19 }
 0x31f   : > { %1928 = vrot.lane.b32.xlu0 %v1927_v63, %s2318_s19 }
 0x321   : > { %1933 = vrot.lane.b32.xlu1 %v1932_v8, %s2318_s19 }
 0x323   : > { %1938 = vrot.lane.b32.xlu0 %v2786_v25, %s2319_s21 }
 0x325   : > { %1943 = vrot.lane.b32.xlu1 %v2793_v33, %s2319_s21 }
 0x327   : > { %1948 = vrot.lane.b32.xlu0 %v2791_v30, %s2319_s21 }
 0x329   : > { %1953 = vrot.lane.b32.xlu1 %v1952_v11, %s2319_s21 }
 0x32b   : > { %1958 = vrot.lane.b32.xlu0 %v2802_v3, %s2320_s2 }
 0x32d   : > { %1963 = vrot.lane.b32.xlu1 %v2808_v42, %s2320_s2 }
 0x32f   : > { %1968 = vrot.lane.b32.xlu0 %v2799_v39, %s2320_s2 }
 0x331   : > { %1973 = vrot.lane.b32.xlu1 %v1972_v15, %s2320_s2 }
 0x365   : > { %v1819_v16 = vpop.permute.xlu0 %1818 }
 0x366   : > { %v1821_v32 = vunpack.i.h.bf16 %v1819_v16  ;;  %v1820_v33 = vunpack.i.l.bf16 %v1819_v16 }
 0x367   : > { %v1829_v17 = vpop.permute.xlu1 %1828 }
 0x368   : > { %v1831_v36 = vunpack.i.h.bf16 %v1829_v17  ;;  %v1830_v37 = vunpack.i.l.bf16 %v1829_v17  ;;  %v1213_v40 = vsel %vm407_vm0, %v884_v35, %v1820_v33  ;;  %v1214_v3 = vsel %vm407_vm0, %v2804_v41, %v1821_v32 }
 0x369   : > { %v1824_v18 = vpop.permute.xlu0 %1823 }
 0x36a   : > { %v1826_v39 = vunpack.i.h.bf16 %v1824_v18  ;;  %v1825_v2 = vunpack.i.l.bf16 %v1824_v18  ;;  %v1216_v49 = vsel %vm407_vm0, %v2818_v13, %v1831_v36  ;;  %v1215_v50 = vsel %vm407_vm0, %v2806_v4, %v1830_v37 }
 0x36b   : > { %v1834_v19 = vpop.permute.xlu1 %1833 }
 0x36c   : > { %v1836_v42 = vunpack.i.h.bf16 %v1834_v19  ;;  %v1835_v6 = vunpack.i.l.bf16 %v1834_v19  ;;  %v1218_v41 = vsel %vm407_vm0, %v2811_v5, %v1826_v39  ;;  %v1217_v54 = vsel %vm407_vm0, %v2820_v22, %v1825_v2 }
 0x36d   : > { %v1839_v20 = vpop.permute.xlu0 %1838 }
 0x36e   : > { %v1841_v47 = vunpack.i.h.bf16 %v1839_v20  ;;  %v1840_v48 = vunpack.i.l.bf16 %v1839_v20  ;;  %v1220_v57 = vsel %vm407_vm0, %v2824_v44, %v1836_v42  ;;  %v1219_v13 = vsel %vm407_vm0, %v2813_v43, %v1835_v6 }
 0x36f   : > { %v1844_v21 = vpop.permute.xlu1 %1843 }
 0x370   : > { %v1846_v45 = vunpack.i.h.bf16 %v1844_v21  ;;  %v1845_v46 = vunpack.i.l.bf16 %v1844_v21  ;;  %v1222_v5 = vsel %vm1221_vm5, %v1213_v40, %v1840_v48  ;;  %v1223_v22 = vsel %vm1221_vm5, %v1214_v3, %v1841_v47 }
 0x371   : > { %v1849_v23 = vpop.permute.xlu0 %1848 }
 0x372   : > { %v1851_v51 = vunpack.i.h.bf16 %v1849_v23  ;;  %v1850_v52 = vunpack.i.l.bf16 %v1849_v23  ;;  %v1226_v60 = vsel %vm1221_vm5, %v1217_v54, %v1845_v46  ;;  %v1227_v61 = vsel %vm1221_vm5, %v1218_v41, %v1846_v45 }
 0x373   : > { %v1854_v24 = vpop.permute.xlu1 %1853 }
 0x374   : > { %v1856_v55 = vunpack.i.h.bf16 %v1854_v24  ;;  %v1855_v56 = vunpack.i.l.bf16 %v1854_v24  ;;  %v1225_v62 = vsel %vm1221_vm5, %v1216_v49, %v1851_v51  ;;  %v1224_v44 = vsel %vm1221_vm5, %v1215_v50, %v1850_v52 }
 0x375   : > { %v1859_v25 = vpop.permute.xlu0 %1858 }
 0x376   : > { %v1861_v4 = vunpack.i.h.bf16 %v1859_v25  ;;  %v1860_v58 = vunpack.i.l.bf16 %v1859_v25  ;;  %v1228_v8 = vsel %vm1221_vm5, %v1219_v13, %v1855_v56  ;;  %v1229_v9 = vsel %vm1221_vm5, %v1220_v57, %v1856_v55 }
 0x377   : > { %v2841_v26 = vpop.permute.xlu1 %1863 }
 0x378   : > { %v1866_v63 = vunpack.i.h.bf16 %v2841_v26  ;;  %v1865_v43 = vunpack.i.l.bf16 %v2841_v26  ;;  %v1231_v12 = vsel %vm1230_vm6, %v1222_v5, %v1860_v58  ;;  %v1232_v1 = vsel %vm1230_vm6, %v1223_v22, %v1861_v4 }
 0x379   : > { %v2843_v27 = vpop.permute.xlu0 %1868 }
 0x37a   : > { %v1871_v10 = vunpack.i.h.bf16 %v2843_v27  ;;  %v1870_v11 = vunpack.i.l.bf16 %v2843_v27  ;;  %v1235_v21 = vsel %vm1230_vm6, %v1226_v60, %v1865_v43  ;;  %v1236_v23 = vsel %vm1230_vm6, %v1227_v61, %v1866_v63 }
 0x37b   : > { %v2845_v28 = vpop.permute.xlu1 %1873 }
 0x37c   : > { %v1876_v14 = vunpack.i.h.bf16 %v2845_v28  ;;  %v1875_v15 = vunpack.i.l.bf16 %v2845_v28  ;;  %v1233_v27 = vsel %vm1230_vm6, %v1224_v44, %v1870_v11  ;;  %v1234_v28 = vsel %vm1230_vm6, %v1225_v62, %v1871_v10 }
 0x37d   : > { %v2847_v30 = vpop.permute.xlu0 %1878 }
 0x37e   : > { %v1881_v19 = vunpack.i.h.bf16 %v2847_v30  ;;  %v1880_v20 = vunpack.i.l.bf16 %v2847_v30  ;;  %v1237_v30 = vsel %vm1230_vm6, %v1228_v8, %v1875_v15  ;;  %v1238_v33 = vsel %vm1230_vm6, %v1229_v9, %v1876_v14 }
 0x37f   : > { %v2849_v0 = vpop.permute.xlu1 %1883 }
 0x380   : > { %v1886_v17 = vunpack.i.h.bf16 %v2849_v0  ;;  %v1885_v18 = vunpack.i.l.bf16 %v2849_v0  ;;  %v1240_v2 = vsel %vm1239_vm7, %v1231_v12, %v1880_v20  ;;  %v1241_v40 = vsel %vm1239_vm7, %v1232_v1, %v1881_v19 }
 0x381   : > { %v2851_v31 = vpop.permute.xlu0 %1888 }
 0x382   : > { %v1891_v24 = vunpack.i.h.bf16 %v2851_v31  ;;  %v1890_v25 = vunpack.i.l.bf16 %v2851_v31  ;;  %v1244_v31 = vsel %vm1239_vm7, %v1235_v21, %v1885_v18  ;;  %v1245_v39 = vsel %vm1239_vm7, %v1236_v23, %v1886_v17 }
 0x383   : > { %v2853_v34 = vpop.permute.xlu1 %1893 }
 0x384   : > { %v1896_v0 = vunpack.i.h.bf16 %v2853_v34  ;;  %v1895_v32 = vunpack.i.l.bf16 %v2853_v34  ;;  %v1242_v34 = vsel %vm1239_vm7, %v1233_v27, %v1890_v25  ;;  %v1243_v3 = vsel %vm1239_vm7, %v1234_v28, %v1891_v24 }
 0x385   : > { %v2855_v38 = vpop.permute.xlu0 %1898 }
 0x386   : > { %v1901_v35 = vunpack.i.h.bf16 %v2855_v38  ;;  %v1900_v36 = vunpack.i.l.bf16 %v2855_v38  ;;  %v1246_v45 = vsel %vm1239_vm7, %v1237_v30, %v1895_v32  ;;  %v1247_v46 = vsel %vm1239_vm7, %v1238_v33, %v1896_v0 }
 0x387   : > { %v2860_v29 = vpop.permute.xlu1 %1903 }
 0x388   : > { %v1906_v42 = vunpack.i.h.bf16 %v2860_v29  ;;  %v1905_v6 = vunpack.i.l.bf16 %v2860_v29  ;;  %v1249_v49 = vsel %vm1248_vm8, %v1240_v2, %v1900_v36  ;;  %v1250_v50 = vsel %vm1248_vm8, %v1241_v40, %v1901_v35 }
 0x389   : > { %v2866_v53 = vpop.permute.xlu0 %1908 }
 0x38a   : > { %v1911_v47 = vunpack.i.h.bf16 %v2866_v53  ;;  %v1910_v48 = vunpack.i.l.bf16 %v2866_v53  ;;  %v1253_v57 = vsel %vm1248_vm8, %v1244_v31, %v1905_v6  ;;  %v1254_v53 = vsel %vm1248_vm8, %v1245_v39, %v1906_v42 }
 0x38b   : > { %v2876_v59 = vpop.permute.xlu1 %1913 }
 0x38c   : > { %v1916_v51 = vunpack.i.h.bf16 %v2876_v59  ;;  %v1915_v52 = vunpack.i.l.bf16 %v2876_v59  ;;  %v1251_v60 = vsel %vm1248_vm8, %v1242_v34, %v1910_v48  ;;  %v1252_v61 = vsel %vm1248_vm8, %v1243_v3, %v1911_v47 }
 0x38d   : > { %v2886_v7 = vpop.permute.xlu0 %1918 }
 0x38e   : > { %v1921_v55 = vunpack.i.h.bf16 %v2886_v7  ;;  %v1920_v56 = vunpack.i.l.bf16 %v2886_v7  ;;  %v1255_v22 = vsel %vm1248_vm8, %v1246_v45, %v1915_v52  ;;  %v1256_v62 = vsel %vm1248_vm8, %v1247_v46, %v1916_v51 }
 0x38f   : > { %v1924_v16 = vpop.permute.xlu1 %1923 }
 0x390   : > { %v1926_v29 = vunpack.i.h.bf16 %v1924_v16  ;;  %v1925_v54 = vunpack.i.l.bf16 %v1924_v16  ;;  %v1258_v9 = vsel %vm1257_vm9, %v1249_v49, %v1920_v56  ;;  %v1259_v10 = vsel %vm1257_vm9, %v1250_v50, %v1921_v55  ;;  %v1625_v55 = vld [vmem:[%s340_s8] ss:$0 sm:$0xff]  ;;  %s2220_s8 = sshll.u32 %s2321_s3, 4  ;;  %s2221_s8 = int_to_ptr.vmem [resolvable:$false] %s2220_s8 }
 0x391   : > { %v1929_v26 = vpop.permute.xlu0 %1928  ;;  %s2222_s16 = scalar_lea.vmem %s2221_s8, 2048  ;;  %p2223_p5 = scmp.lt.s32.totalorder %s2984_s15, %s2221_s8 }
 0x392   : > { %v1931_v13 = vunpack.i.h.bf16 %v1929_v26  ;;  %v1930_v4 = vunpack.i.l.bf16 %v1929_v26  ;;  %v1262_v7 = vsel %vm1257_vm9, %v1253_v57, %v1925_v54  ;;  %v1263_v8 = vsel %vm1257_vm9, %v1254_v53, %v1926_v29  ;;  %v1615_v29 = vld [vmem:[#allocation14] ss:$0 sm:$0xff]  ;;  %p2224_p9 = scmp.lt.s32.totalorder %s2222_s16, %s2216_s0 }
 0x393   : > { %v2912_v37 = vpop.permute.xlu1 %1933 }
 0x394   : > { %v1935_v59 = vunpack.i.l.bf16 %v2912_v37  ;;  %v1936_v11 = vunpack.i.h.bf16 %v2912_v37  ;;  %v1260_v12 = vsel %vm1257_vm9, %v1251_v60, %v1930_v4  ;;  %v1261_v1 = vsel %vm1257_vm9, %v1252_v61, %v1931_v13  ;;  %p2225_p0 = por %p2224_p9, %p2223_p5 }
 0x395   : > { %v1939_v38 = vpop.permute.xlu0 %1938 }
 0x396   : > { %v1940_v5 = vunpack.i.l.bf16 %v1939_v38  ;;  %v1941_v63 = vunpack.i.h.bf16 %v1939_v38  ;;  %v1264_v16 = vsel %vm1257_vm9, %v1255_v22, %v1935_v59  ;;  %v1265_v40 = vsel %vm1257_vm9, %v1256_v62, %v1936_v11  ;;  %p2226_p7 = pnand %p2225_p0, %p2219_p11 }
 0x397   : > { %v1944_v41 = vpop.permute.xlu1 %1943 }
 0x398   : > { %v1945_v44 = vunpack.i.l.bf16 %v1944_v41  ;;  %v1946_v14 = vunpack.i.h.bf16 %v1944_v41  ;;  %v1267_v17 = vsel %vm1266_vm10, %v1258_v9, %v1940_v5  ;;  %v1268_v21 = vsel %vm1266_vm10, %v1259_v10, %v1941_v63 }
 0x399   : > { %v1949_v58 = vpop.permute.xlu0 %1948 }
 0x39a   : > { %v1271_v20 = vsel %vm1266_vm10, %v1262_v7, %v1945_v44  ;;  %v1951_v23 = vunpack.i.h.bf16 %v1949_v58  ;;  %v1950_v24 = vunpack.i.l.bf16 %v1949_v58  ;;  %v1272_v32 = vsel %vm1266_vm10, %v1263_v8, %v1946_v14 }
 0x39b   : > { %v1954_v43 = vpop.permute.xlu1 %1953 }
 0x39c   : > { %v1956_v30 = vunpack.i.h.bf16 %v1954_v43  ;;  %v1955_v33 = vunpack.i.l.bf16 %v1954_v43  ;;  %v1269_v34 = vsel %vm1266_vm10, %v1260_v12, %v1950_v24  ;;  %v1270_v3 = vsel %vm1266_vm10, %v1261_v1, %v1951_v23 }
 0x39d   : > { %v1959_v15 = vpop.permute.xlu0 %1958 }
 0x39e   : > { %v1961_v18 = vunpack.i.h.bf16 %v1959_v15  ;;  %v1960_v19 = vunpack.i.l.bf16 %v1959_v15  ;;  %v1273_v48 = vsel %vm1266_vm10, %v1264_v16, %v1955_v33  ;;  %v1274_v49 = vsel %vm1266_vm10, %v1265_v40, %v1956_v30 }
 0x39f   : > { %v1964_v25 = vpop.permute.xlu1 %1963 }
 0x3a0   : > { %v1966_v26 = vunpack.i.h.bf16 %v1964_v25  ;;  %v1965_v27 = vunpack.i.l.bf16 %v1964_v25  ;;  %v1276_v28 = vsel %vm1275_vm11, %v1267_v17, %v1960_v19  ;;  %v1277_v0 = vsel %vm1275_vm11, %v1268_v21, %v1961_v18 }
 0x3a1   : > { %v1284_v35 = vpack.c.bf16 %v1277_v0, %v1276_v28  ;;  %v1969_v36 = vpop.permute.xlu0 %1968 }
 0x3a2   : > { %v1280_v37 = vsel %vm1275_vm11, %v1271_v20, %v1965_v27  ;;  %v1281_v31 = vsel %vm1275_vm11, %v1272_v32, %v1966_v26  ;;  %v1971_v39 = vunpack.i.h.bf16 %v1969_v36  ;;  %v1970_v2 = vunpack.i.l.bf16 %v1969_v36 }
 0x3a3   : > { %v1286_v42 = vpack.c.bf16 %v1281_v31, %v1280_v37  ;;  %v1974_v6 = vpop.permute.xlu1 %1973  ;;  %1680 = vmatprep.mubr.msk.bf16.mxu0 %vm1322_vm12, %v1284_v35 }
 0x3a4   : > { %v1976_v38 = vunpack.i.h.bf16 %v1974_v6  ;;  %v1975_v45 = vunpack.i.l.bf16 %v1974_v6  ;;  %v1278_v46 = vsel %vm1275_vm11, %v1269_v34, %v1970_v2  ;;  %v1279_v47 = vsel %vm1275_vm11, %v1270_v3, %v1971_v39 }
 0x3a5   : > { %v1285_v50 = vpack.c.bf16 %v1279_v47, %v1278_v46  ;;  %1684 = vmatprep.mubr.msk.bf16.mxu1 %vm1322_vm12, %v1286_v42 }
 0x3a6   : > { %v1282_v51 = vsel %vm1275_vm11, %v1273_v48, %v1975_v45  ;;  %v1283_v52 = vsel %vm1275_vm11, %v1274_v49, %v1976_v38 }
 0x3a7   : > { %v1287_v41 = vpack.c.bf16 %v1283_v52, %v1282_v51  ;;  %1681 = vmatmul.mubr.msk.bf16.vlgmr.msra.gmra.mrb[4].mxu0 %vm1322_vm12, %v1285_v50 }
 0x3a9   : > { %1685 = vmatmul.mubr.msk.bf16.vlgmr.msra.gmra.mrb[4].mxu1 %vm1322_vm12, %v1287_v41 }
 0x47a   : > { %v1682_v54 = vpop.f32.mrb[4].mxu0 }
 0x47b   : > { %v1382_v56 = vadd.f32 %v1682_v54, %v1615_v29  ;;  %v1373_v57 = vpop.f32.mrb[5].mxu0 }
 0x47c   : > { %v1686_v53 = vpop.f32.mrb[4].mxu1  ;;  %v1374_v13 = vadd.f32 %v1615_v29, %v1373_v57  ;;  %v1683_v4 = vpop.f32.mrb[6].mxu0 }
 0x47d   : > { %v1413_v58 = vadd.f32 %v1625_v55, %v1382_v56  ;;  %v1398_v60 = vadd.f32 %v1686_v53, %v1615_v29  ;;  %v1389_v61 = vpop.f32.mrb[5].mxu1  ;;  %v1385_v59 = vadd.f32 %v1683_v4, %v1615_v29  ;;  %v1376_v5 = vpop.f32.mrb[7].mxu0 }
 0x47e   : > { %v1411_v22 = vadd.f32 %v1625_v55, %v1374_v13  ;;  %v1390_v62 = vadd.f32 %v1615_v29, %v1389_v61  ;;  %v1687_v44 = vpop.f32.mrb[6].mxu1  ;;  %v1377_v63 = vadd.f32 %v1615_v29, %v1376_v5 }
 0x47f   : > { %1421 = vst.msk [vmem:[%s394_s28 + $0x10] sm:$0xff] %vm1221_vm5, %v1413_v58  ;;  %v1417_v43 = vadd.f32 %v1625_v55, %v1398_v60  ;;  %v1414_v7 = vadd.f32 %v1625_v55, %v1385_v59  ;;  %v1401_v8 = vadd.f32 %v1687_v44, %v1615_v29  ;;  %v1392_v9 = vpop.f32.mrb[7].mxu1 }
 0x480   : > { %1419 = vst.msk [vmem:[%s394_s28] sm:$0xff] %vm1221_vm5, %v1411_v22  ;;  %v1415_v10 = vadd.f32 %v1625_v55, %v1390_v62  ;;  %v1412_v11 = vadd.f32 %v1625_v55, %v1377_v63  ;;  %v1393_v12 = vadd.f32 %v1615_v29, %v1392_v9 }
 0x481   : > { %1425 = vst.msk [vmem:[%s394_s28 + $0x30] sm:$0xff] %vm1221_vm5, %v1417_v43  ;;  %1422 = vst.msk [vmem:[%s394_s28 + $0x18] sm:$0xff] %vm1221_vm5, %v1414_v7  ;;  %v1418_v1 = vadd.f32 %v1625_v55, %v1401_v8 }
 0x482   : > { %1423 = vst.msk [vmem:[%s394_s28 + $0x20] sm:$0xff] %vm1221_vm5, %v1415_v10  ;;  %1420 = vst.msk [vmem:[%s394_s28 + $0x8] sm:$0xff] %vm1221_vm5, %v1412_v11  ;;  %v1416_v14 = vadd.f32 %v1625_v55, %v1393_v12 }
 0x483   : > { %1426 = vst.msk [vmem:[%s394_s28 + $0x38] sm:$0xff] %vm1221_vm5, %v1418_v1 }
 0x484   : > { %1424 = vst.msk [vmem:[%s394_s28 + $0x28] sm:$0xff] %vm1221_vm5, %v1416_v14 }
 0x485   : > { %2229 = shalt.err (!%p2226_p7)
}
 0x486   : > { %s2230_s10 = scalar_lea.hbm %s2980_s12, 1024  ;;  %s2234_s19 = scalar_lea.hbm %s3038_s7, 2048 }
 0x487   : > { %p2231_p12 = scmp.ne.s32.totalorder %s2980_s12, %s2230_s10  ;;  %p2235_p4 = scmp.lt.u32.totalorder %s2980_s12, %s3038_s7 }
 0x488   : > { %p2236_p13 = scmp.lt.u32.totalorder %s2234_s19, %s2230_s10  ;;  %p2238_p3 = scmp.lt.u32.totalorder %s2230_s10, %s2980_s12 }
 0x489   : > { %p2232_p8 = pnand %p2231_p12, %p3067_p2 }
 0x48a   : > { %p2237_p1 = por %p2236_p13, %p2235_p4 }
 0x48b   : > { %p2233_p10 = pneg %p2232_p8 }
 0x48c   : > { %p2239_p6 = por %p2238_p3, %p2237_p1 }
 0x48e   : > { %p2240_p11 = pnand %p2239_p6, %p2233_p10 }
 0x490   : > { %2243 = shalt.err (!%p2240_p11)
}
 0x491   : > { %s2322_s22 = smov 128  }
 0x492   : > { %1724 = dma.vmem_to_hbm [thread:$0]  (%p3067_p2), %s2984_s15, 1024, %s2980_s12, %s1428_s14, %s2322_s22, %s2322_s22, %s2313_s20  }
 0x493 PF: > { %s1456_s28 = sand.u32 1, %s2286_s24   ;;  %p3068_p5 = scmp.ne.s32.totalorder %s3056_s29, 0 }
 0x494   : > { %p3069_p9 = scmp.ge.s32.totalorder %s2298_s27, 2  ;;  %s1457_s30 = scalar_lea.sflag [#allocation5], %s1456_s28 }
 0x496   : > { %p1750_p0 = pnand %p3069_p9, %p3068_p5 }
 0x498   : > { %2281 = dma.done.wait (!%p1750_p0), %s1457_s30, 1024  }
 0x499   : > { %2283 = vsyncadd (!%p1750_p0), %s1457_s30, 4294966272  ;;  %p25_p7 = scmp.ge.s32.totalorder %s2523_s13, 4   ;;  %s3070_s24 = smov %s2290_s25 }
 0x49a   : > { %s3071_s25 = smov %s2294_s26  ;;  %s3072_s26 = smov %s2535_s18 }
 0x49b   : > { %s3073_s27 = smov %s2523_s13  ;;  %27 = sbr.rel (!%p25_p7) target bundleno = 14 (0xe), region = 128 }
 0x4a2   :  { %1462 = vsyncpa [#allocation4], 1 }
 0x4a3   :  { %1464 = vsyncpa [#allocation4 + $0x1], 1 }
 0x4a4   :  { %1465 = vsyncpa [#allocation7], 1 }
 0x4a5   :  { %1467 = vsyncpa [#allocation7 + $0x1], 1 }
 0x4a6   :  { %1468 = vsyncpa [#allocation10], 1 }
 0x4a7   :  { %1469 = vsyncpa [#allocation13], 1 }
 0x4a8   :  { %1470 = vsyncpa [#allocation5], 1 }
 0x4a9   :  { %1472 = vsyncpa [#allocation5 + $0x1], 1 }

// kernel: resnet_block_with_attn.4
= control target key start
LH: loop header
LB: loop body
LE: loop exit
PB: predicated region body
PF: predicated region fallthrough
CT: control target
= control target key end

     0   :  { %s3409_s0 = inlined_call_operand.hbm [shape: f32[2,8,8,16], index: 0, kind: input, shape index: {}]   ;;  %s3410_s1 = inlined_call_operand.hbm [shape: f32[2,8,8,8], index: 1, kind: input, shape index: {}]   ;;  %s3411_s2 = inlined_call_operand.hbm [shape: f32[1,16], index: 2, kind: input, shape index: {}]   ;;  %s3412_s3 = inlined_call_operand.hbm [shape: f32[1,16], index: 3, kind: input, shape index: {}]   ;;  %s3413_s4 = inlined_call_operand.hbm [shape: f32[16,4], index: 4, kind: input, shape index: {}]   ;;  %s3414_s5 = inlined_call_operand.hbm [shape: bf16[144,16], index: 5, kind: input, shape index: {}]   ;;  %s3415_s6 = inlined_call_operand.hbm [shape: f32[1,16], index: 6, kind: input, shape index: {}]   ;;  %s3416_s7 = inlined_call_operand.hbm [shape: bf16[8,16], index: 7, kind: input, shape index: {}]   ;;  %s3417_s8 = inlined_call_operand.hbm [shape: f32[1,16], index: 8, kind: input, shape index: {}]   ;;  %s3418_s9 = inlined_call_operand.hbm [shape: f32[2,8,8,16], index: 9, kind: output, shape index: {}]  }
   0x1   :  { %3427 = sst [smem:[#allocation26_spill]] %s3409_s0 }
   0x2   :  { %3428 = sst [smem:[#allocation27_spill]] %s3411_s2 }
   0x3   :  { %3429 = sst [smem:[#allocation28_spill]] %s3412_s3 }
   0x4   :  { %3430 = sst [smem:[#allocation29_spill]] %s3413_s4 }
   0x5   :  { %3431 = sst [smem:[#allocation30_spill]] %s3414_s5 }
   0x6   :  { %3432 = sst [smem:[#allocation31_spill]] %s3415_s6 }
   0x7   :  { %3433 = sst [smem:[#allocation32_spill]] %s3416_s7 }
   0x8   :  { %3434 = sst [smem:[#allocation33_spill]] %s3418_s9 }
   0x9   :  { %14 = vsyncpa [#allocation4], 0 }
   0xa   :  { %16 = vsyncpa [#allocation4 + $0x1], 0 }
   0xb   :  { %17 = vsyncpa [#allocation7], 0 }
   0xc   :  { %19 = vsyncpa [#allocation7 + $0x1], 0 }
   0xd   :  { %20 = vsyncpa [#allocation10], 0 }
   0xe   :  { %21 = vsyncpa [#allocation13], 0 }
   0xf   :  { %22 = vsyncpa [#allocation16], 0 }
  0x10   :  { %23 = vsyncpa [#allocation5], 0 }
  0x11   :  { %25 = vsyncpa [#allocation5 + $0x1], 0  ;;  %s2666_s30 = smov 0   ;;  %s2668_s10 = smov 0  }
  0x12   :  { %s2670_s11 = smov 0   ;;  %s2672_s12 = smov 0  }
  0x13 LB: > { %s2589_s13 = smov [#allocation8]   ;;  %s2687_s15 = sadd.s32 4294967295, %s2587_s12   ;;  %s2587_s12 = sphi %s2672_s12, %s3468_s12   ;;  %s2583_s11 = sphi %s2670_s11, %s3467_s11   ;;  %s2579_s10 = sphi %s2668_s10, %s3466_s10   ;;  %s2575_s30 = sphi %s2666_s30, %s3465_s30  }
  0x14   : > { %s274_s14 = sshll.u32 %s2589_s13, 4  ;;  %p1784_p0 = scmp.ge.s32.totalorder %s2587_s12, 1  ;;  %s2692_s14 = int_to_ptr.vmem [resolvable:$true] %s274_s14 }
  0x15   : > { %p3420_p1 = scmp.eq.s32.totalorder %s2687_s15, 0  ;;  %p261_p2 = scmp.lt.s32.totalorder %s2587_s12, 3 }
  0x16   : > { %s2590_s17 = smov [#allocation9]   ;;  %s2591_s19 = smov [#allocation12]  }
  0x17   : > { %p2694_p3 = pnand %p1784_p0, %p261_p2  ;;  %s285_s18 = sshll.u32 %s2590_s17, 4  ;;  %s2701_s18 = int_to_ptr.vmem [resolvable:$true] %s285_s18 }
  0x18   : > { %s308_s20 = sshll.u32 %s2591_s19, 4  ;;  %s3437_s2 = sld [smem:[#allocation27_spill]]  ;;  %s2709_s20 = int_to_ptr.vmem [resolvable:$true] %s308_s20 }
  0x19   : > { %s3435_s16 = scalar_select %p2694_p3, 1, 0 }
  0x1a   : > { %p1957_p5 = pneg %p2694_p3 }
  0x1c   : > { %p2705_p6 = pnand %p1957_p5, %p3420_p1 }
  0x1e   : > { %s2245_s24 = scalar_lea.hbm %s3437_s2, 16  ;;  %p2719_p8 = pneg %p2705_p6 }
  0x1f   : > { %p2246_p7 = scmp.ne.s32.totalorder %s3437_s2, %s2245_s24  ;;  %p2252_p11 = scmp.lt.u32.totalorder %s2245_s24, %s3437_s2 }
  0x21   : > { %p2248_p9 = pnand %p2719_p8, %p2246_p7 }
  0x23   : > { %p2249_p10 = pneg %p2248_p9 }
  0x25   : > { %p2254_p12 = pnand %p2252_p11, %p2249_p10 }
  0x27   : > { %2257 = shalt.err (!%p2254_p12)
}
  0x28   : > { %s2258_s13 = scalar_lea.vmem %s2692_s14, 16  ;;  %s2265_s17 = scalar_lea.vmem %s2692_s14, 32 }
  0x29   : > { %p2259_p13 = scmp.ne.s32.totalorder %s2692_s14, %s2258_s13  ;;  %p2266_p5 = scmp.lt.s32.totalorder %s2692_s14, %s2692_s14 }
  0x2a   : > { %p2267_p7 = scmp.lt.s32.totalorder %s2265_s17, %s2258_s13 }
  0x2b   : > { %p2261_p0 = pnand %p2259_p13, %p2719_p8 }
  0x2c   : > { %p2268_p9 = por %p2267_p7, %p2266_p5 }
  0x2d   : > { %p2262_p2 = pneg %p2261_p0 }
  0x2f   : > { %p2269_p4 = pnand %p2268_p9, %p2262_p2 }
  0x31   : > { %2272 = shalt.err (!%p2269_p4)
}
  0x32   : > { %1960 = dma.hbm_to_vmem [thread:$0]  (!%p2705_p6), %s3437_s2, 16, %s2692_s14, [#allocation7]  }
  0x33   : > { %s3439_s3 = sld [smem:[#allocation28_spill]] }
  0x39   : > { %s2273_s25 = scalar_lea.hbm %s3439_s3, 16 }
  0x3a   : > { %p2274_p10 = scmp.ne.s32.totalorder %s3439_s3, %s2273_s25  ;;  %p2280_p4 = scmp.lt.u32.totalorder %s2273_s25, %s3439_s3 }
  0x3c   : > { %p2276_p11 = pnand %p2274_p10, %p2719_p8 }
  0x3e   : > { %p2277_p12 = pneg %p2276_p11 }
  0x40   : > { %p2282_p13 = pnand %p2280_p4, %p2277_p12 }
  0x42   : > { %2285 = shalt.err (!%p2282_p13)
}
  0x43   : > { %s2286_s14 = scalar_lea.vmem %s2701_s18, 16  ;;  %s2293_s17 = scalar_lea.vmem %s2701_s18, 32 }
  0x44   : > { %p2287_p0 = scmp.ne.s32.totalorder %s2701_s18, %s2286_s14  ;;  %p2294_p7 = scmp.lt.s32.totalorder %s2701_s18, %s2701_s18 }
  0x45   : > { %p2295_p9 = scmp.lt.s32.totalorder %s2293_s17, %s2286_s14 }
  0x46   : > { %p2289_p2 = pnand %p2287_p0, %p2719_p8 }
  0x47   : > { %p2296_p10 = por %p2295_p9, %p2294_p7 }
  0x48   : > { %p2290_p5 = pneg %p2289_p2 }
  0x4a   : > { %p2297_p11 = pnand %p2296_p10, %p2290_p5 }
  0x4c   : > { %2300 = shalt.err (!%p2297_p11)
}
  0x4d   : > { %1963 = dma.hbm_to_vmem [thread:$0]  (!%p2705_p6), %s3439_s3, 16, %s2701_s18, [#allocation10]  }
  0x4e   : > { %s3440_s5 = sld [smem:[#allocation30_spill]] }
  0x54   : > { %s2301_s25 = scalar_lea.hbm %s3440_s5, 1152 }
  0x55   : > { %p2302_p12 = scmp.ne.s32.totalorder %s3440_s5, %s2301_s25  ;;  %p2308_p0 = scmp.lt.u32.totalorder %s2301_s25, %s3440_s5 }
  0x57   : > { %p2304_p4 = pnand %p2302_p12, %p2719_p8 }
  0x59   : > { %p2305_p13 = pneg %p2304_p4 }
  0x5b   : > { %p2310_p2 = pnand %p2308_p0, %p2305_p13 }
  0x5d   : > { %2313 = shalt.err (!%p2310_p2)
}
  0x5e   : > { %s2314_s18 = scalar_lea.vmem %s2709_s20, 1152  ;;  %p2322_p10 = scmp.lt.s32.totalorder %s2709_s20, %s2709_s20 }
  0x5f   : > { %p2315_p5 = scmp.ne.s32.totalorder %s2709_s20, %s2314_s18  ;;  %p2323_p11 = scmp.lt.s32.totalorder %s2314_s18, %s2314_s18 }
  0x61   : > { %p2317_p7 = pnand %p2315_p5, %p2719_p8  ;;  %p2324_p12 = por %p2323_p11, %p2322_p10 }
  0x63   : > { %p2318_p9 = pneg %p2317_p7 }
  0x65   : > { %p2325_p4 = pnand %p2324_p12, %p2318_p9 }
  0x67   : > { %2328 = shalt.err (!%p2325_p4)
}
  0x68   : > { %s2592_s14 = smov 64   ;;  %s2593_s17 = smov 4  }
  0x69   : > { %1969 = dma.hbm_to_vmem [thread:$0]  (!%p2705_p6), %s3440_s5, 1152, %s2709_s20, [#allocation13], %s2592_s14, %s2592_s14, %s2593_s17  }
  0x6a   : > { %s2594_s23 = smov [#allocation15]   ;;  %s2595_s25 = smov [#allocation11]  }
  0x6b   : > { %s333_s24 = sshll.u32 %s2594_s23, 4  ;;  %s295_s26 = sshll.u32 %s2595_s25, 4  ;;  %s334_s24 = int_to_ptr.vmem [resolvable:$true] %s333_s24  ;;  %s296_s26 = int_to_ptr.vmem [resolvable:$true] %s295_s26 }
  0x6c   : > { %s3441_s7 = sld [smem:[#allocation32_spill]] }
  0x72   : > { %s2329_s13 = scalar_lea.hbm %s3441_s7, 64 }
  0x73   : > { %p2330_p13 = scmp.ne.s32.totalorder %s3441_s7, %s2329_s13  ;;  %p2336_p5 = scmp.lt.u32.totalorder %s2329_s13, %s3441_s7 }
  0x75   : > { %p2332_p0 = pnand %p2330_p13, %p2719_p8 }
  0x77   : > { %p2333_p2 = pneg %p2332_p0 }
  0x79   : > { %p2338_p7 = pnand %p2336_p5, %p2333_p2 }
  0x7b   : > { %2341 = shalt.err (!%p2338_p7)
}
  0x7c   : > { %s2342_s20 = scalar_lea.vmem %s334_s24, 64  ;;  %p2350_p12 = scmp.lt.s32.totalorder %s334_s24, %s334_s24 }
  0x7d   : > { %p2343_p9 = scmp.ne.s32.totalorder %s334_s24, %s2342_s20  ;;  %p2351_p4 = scmp.lt.s32.totalorder %s2342_s20, %s2342_s20 }
  0x7f   : > { %p2345_p10 = pnand %p2343_p9, %p2719_p8  ;;  %p2352_p1 = por %p2351_p4, %p2350_p12 }
  0x81   : > { %p2346_p11 = pneg %p2345_p10 }
  0x83   : > { %p2353_p3 = pnand %p2352_p1, %p2346_p11 }
  0x85   : > { %2356 = shalt.err (!%p2353_p3)
}
  0x86   : > { %1975 = dma.hbm_to_vmem [thread:$0]  (!%p2705_p6), %s3441_s7, 64, %s334_s24, [#allocation16]  }
  0x87   : > { %s3442_s4 = sld [smem:[#allocation29_spill]] }
  0x8d   : > { %s2357_s17 = scalar_lea.hbm %s3442_s4, 256 }
  0x8e   : > { %p2358_p13 = scmp.ne.s32.totalorder %s3442_s4, %s2357_s17  ;;  %p2364_p3 = scmp.lt.u32.totalorder %s2357_s17, %s3442_s4 }
  0x90   : > { %p2360_p0 = pnand %p2358_p13, %p2719_p8 }
  0x92   : > { %p2361_p1 = pneg %p2360_p0 }
  0x94   : > { %p2366_p2 = pnand %p2364_p3, %p2361_p1 }
  0x96   : > { %2369 = shalt.err (!%p2366_p2)
}
  0x97   : > { %s2370_s28 = scalar_lea.vmem %s296_s26, 256  ;;  %p2378_p10 = scmp.lt.s32.totalorder %s296_s26, %s296_s26 }
  0x98   : > { %p2371_p5 = scmp.ne.s32.totalorder %s296_s26, %s2370_s28  ;;  %p2379_p11 = scmp.lt.s32.totalorder %s2370_s28, %s2370_s28 }
  0x9a   : > { %p2373_p7 = pnand %p2371_p5, %p2719_p8  ;;  %p2380_p12 = por %p2379_p11, %p2378_p10 }
  0x9c   : > { %p2374_p9 = pneg %p2373_p7 }
  0x9e   : > { %p2381_p4 = pnand %p2380_p12, %p2374_p9 }
  0xa0   : > { %2384 = shalt.err (!%p2381_p4)
}
  0xa1   : > { %s3422_s24 = smov 128   ;;  %s3424_s29 = smov 8  }
  0xa2   : > { %1966 = dma.hbm_to_vmem [thread:$0]  (!%p2705_p6), %s3442_s4, 256, %s296_s26, [#allocation10], %s3422_s24, %s3422_s24, %s3424_s29  }
  0xa3   : > { %s2598_s20 = smov [#allocation14]   ;;  %s2599_s14 = smov [#allocation17]  }
  0xa4   : > { %s322_s2 = sshll.u32 %s2598_s20, 4  ;;  %s344_s3 = sshll.u32 %s2599_s14, 4  ;;  %s323_s2 = int_to_ptr.vmem [resolvable:$true] %s322_s2  ;;  %s345_s3 = int_to_ptr.vmem [resolvable:$true] %s344_s3 }
  0xa5   : > { %s3443_s6 = sld [smem:[#allocation31_spill]] }
  0xab   : > { %s2385_s19 = scalar_lea.hbm %s3443_s6, 16 }
  0xac   : > { %p2386_p13 = scmp.ne.s32.totalorder %s3443_s6, %s2385_s19  ;;  %p2392_p3 = scmp.lt.u32.totalorder %s2385_s19, %s3443_s6 }
  0xae   : > { %p2388_p0 = pnand %p2386_p13, %p2719_p8 }
  0xb0   : > { %p2389_p1 = pneg %p2388_p0 }
  0xb2   : > { %p2394_p2 = pnand %p2392_p3, %p2389_p1 }
  0xb4   : > { %2397 = shalt.err (!%p2394_p2)
}
  0xb5   : > { %s2398_s26 = scalar_lea.vmem %s323_s2, 16  ;;  %s2405_s13 = scalar_lea.vmem %s323_s2, 32 }
  0xb6   : > { %p2399_p5 = scmp.ne.s32.totalorder %s323_s2, %s2398_s26  ;;  %p2406_p10 = scmp.lt.s32.totalorder %s323_s2, %s323_s2 }
  0xb7   : > { %p2407_p11 = scmp.lt.s32.totalorder %s2405_s13, %s2398_s26 }
  0xb8   : > { %p2401_p7 = pnand %p2399_p5, %p2719_p8 }
  0xb9   : > { %p2408_p12 = por %p2407_p11, %p2406_p10 }
  0xba   : > { %p2402_p9 = pneg %p2401_p7 }
  0xbc   : > { %p2409_p4 = pnand %p2408_p12, %p2402_p9 }
  0xbe   : > { %2412 = shalt.err (!%p2409_p4)
}
  0xbf   : > { %1972 = dma.hbm_to_vmem [thread:$0]  (!%p2705_p6), %s3443_s6, 16, %s323_s2, [#allocation13]  }
  0xc0   : > { %s2413_s17 = scalar_lea.hbm %s3417_s8, 16 }
  0xc1   : > { %p2414_p13 = scmp.ne.s32.totalorder %s3417_s8, %s2413_s17  ;;  %p2420_p3 = scmp.lt.u32.totalorder %s2413_s17, %s3417_s8 }
  0xc3   : > { %p2416_p0 = pnand %p2414_p13, %p2719_p8 }
  0xc5   : > { %p2417_p1 = pneg %p2416_p0 }
  0xc7   : > { %p2422_p2 = pnand %p2420_p3, %p2417_p1 }
  0xc9   : > { %2425 = shalt.err (!%p2422_p2)
}
  0xca   : > { %s2426_s28 = scalar_lea.vmem %s345_s3, 16  ;;  %s2433_s2 = scalar_lea.vmem %s345_s3, 32 }
  0xcb   : > { %p2427_p5 = scmp.ne.s32.totalorder %s345_s3, %s2426_s28  ;;  %p2434_p10 = scmp.lt.s32.totalorder %s345_s3, %s345_s3 }
  0xcc   : > { %p2435_p11 = scmp.lt.s32.totalorder %s2433_s2, %s2426_s28 }
  0xcd   : > { %p2429_p7 = pnand %p2427_p5, %p2719_p8 }
  0xce   : > { %p2436_p12 = por %p2435_p11, %p2434_p10 }
  0xcf   : > { %p2430_p9 = pneg %p2429_p7 }
  0xd1   : > { %p2437_p4 = pnand %p2436_p12, %p2430_p9 }
  0xd3   : > { %2440 = shalt.err (!%p2437_p4)
}
  0xd4   : > { %1978 = dma.hbm_to_vmem [thread:$0]  (!%p2705_p6), %s3417_s8, 16, %s345_s3, [#allocation16]  }
  0xd5   : > { %s1783_s27 = sadd.s32 4294967294, %s2587_s12   ;;  %s2865_s21 = sadd.s32 1, %s2587_s12  }
  0xd6   : > { %s38_s18 = sadd.s32 1, %s2583_s11  ;;  %s35_s20 = ssub.s32 %s2587_s12, %s2865_s21 }
  0xd7   : > { %p45_p8 = scmp.ne.s32.totalorder %s2583_s11, %s2579_s10  ;;  %p36_p13 = scmp.eq.s32.totalorder %s35_s20, 0 }
  0xd8   : > { %p46_p0 = scmp.eq.s32.totalorder %s2587_s12, 0  ;;  %p51_p1 = scmp.ne.s32.totalorder %s2579_s10, %s2575_s30 }
  0xd9   : > { %p248_p3 = scmp.eq.s32.totalorder %s2687_s15, 1  ;;  %p3444_p5 = scmp.eq.s32.totalorder %s2687_s15, 0 }
  0xda   : > { %s2877_s14 = scalar_select %p36_p13, %s2583_s11, %s38_s18  }
  0xdb   : > { %p47_p2 = por %p46_p0, %p45_p8  ;;  %p2881_p7 = por %p3444_p5, %p51_p1 }
  0xdc   : > { %p2885_p6 = por %p248_p3, %p45_p8  ;;  %p254_p9 = scmp.eq.s32.totalorder %s1783_s27, 1 }
  0xdd   : > { %p1997_p10 = scmp.lt.s32.totalorder %s2587_s12, 2  ;;  %s355_s17 = sand.u32 1, %s2583_s11  }
  0xde   : > { %s3446_s3 = scalar_select %p2885_p6, 1, 0 }
  0xdf   : > { %p2891_p11 = por %p254_p9, %p51_p1  ;;  %s2895_s22 = sshll.u32 %s355_s17, 6 }
  0xe0   : > { %s1850_s23 = sshll.u32 %s2587_s12, 10  ;;  %s3448_s0 = sld [smem:[#allocation26_spill]] }
  0xe1   : > { %s3447_s19 = scalar_select %p2891_p11, 1, 0 }
  0xe2   : > { %s359_s26 = scalar_lea.vmem [#allocation3], %s2895_s22  ;;  %p2904_p12 = pnand %p1997_p10, %p47_p2 }
  0xe3   : > { %s366_s13 = sshll.u32 %s359_s26, 4  ;;  %s2913_s25 = scalar_lea.hbm %s3410_s1, %s1850_s23  ;;  %s2908_s13 = int_to_ptr.vmem [resolvable:$true] %s366_s13 }
  0xe4   : > { %s2915_s28 = scalar_lea.sflag [#allocation4], %s355_s17  ;;  %p2443_p8 = pneg %p2904_p12 }
  0xe6   : > { %s2901_s2 = scalar_lea.hbm %s3448_s0, %s1850_s23  ;;  %s2446_s4 = scalar_lea.hbm %s3448_s0, 2048 }
  0xe7   : > { %s2441_s24 = scalar_lea.hbm %s2901_s2, 1024  ;;  %p2447_p1 = scmp.lt.u32.totalorder %s2901_s2, %s3448_s0 }
  0xe8   : > { %p2442_p4 = scmp.ne.s32.totalorder %s2901_s2, %s2441_s24  ;;  %p2448_p3 = scmp.lt.u32.totalorder %s2446_s4, %s2441_s24 }
  0xe9   : > { %p2450_p5 = scmp.lt.u32.totalorder %s2441_s24, %s2901_s2 }
  0xea   : > { %p2444_p13 = pnand %p2443_p8, %p2442_p4  ;;  %p2449_p2 = por %p2448_p3, %p2447_p1 }
  0xec   : > { %p2445_p0 = pneg %p2444_p13  ;;  %p2451_p9 = por %p2450_p5, %p2449_p2 }
  0xee   : > { %p2452_p10 = pnand %p2451_p9, %p2445_p0 }
  0xf0   : > { %2455 = shalt.err (!%p2452_p10)
}
  0xf1   : > { %s2456_s17 = scalar_lea.vmem %s2908_s13, 1024  ;;  %s2600_s29 = smov [#allocation3]  }
  0xf2   : > { %p2457_p4 = scmp.ne.s32.totalorder %s2908_s13, %s2456_s17  ;;  %s2461_s23 = sshll.u32 %s2600_s29, 4  ;;  %s2462_s23 = int_to_ptr.vmem [resolvable:$false] %s2461_s23 }
  0xf3   : > { %s2463_s5 = scalar_lea.vmem %s2462_s23, 2048  ;;  %p2464_p6 = scmp.lt.s32.totalorder %s2908_s13, %s2462_s23 }
  0xf4   : > { %p2459_p13 = pnand %p2457_p4, %p2443_p8  ;;  %p2465_p1 = scmp.lt.s32.totalorder %s2463_s5, %s2456_s17 }
  0xf6   : > { %p2460_p11 = pneg %p2459_p13  ;;  %p2466_p3 = por %p2465_p1, %p2464_p6 }
  0xf8   : > { %p2467_p2 = pnand %p2466_p3, %p2460_p11 }
  0xfa   : > { %2470 = shalt.err (!%p2467_p2)
}
  0xfb   : > { %s3450_s4 = smov 8   ;;  %s3451_s6 = smov 128  }
  0xfc   : > { %1982 = dma.hbm_to_vmem [thread:$0]  (!%p2904_p12), %s2901_s2, 1024, %s2908_s13, %s2915_s28, %s3451_s6, %s3451_s6, %s3450_s4  }
  0xfd   : > { %s380_s24 = scalar_lea.vmem [#allocation6], %s2895_s22  ;;  %s376_s20 = sand.u32 1, %s2587_s12  }
  0xfe   : > { %s387_s18 = sshll.u32 %s380_s24, 4  ;;  %s2950_s26 = scalar_lea.sflag [#allocation7], %s376_s20  ;;  %s2948_s18 = int_to_ptr.vmem [resolvable:$true] %s387_s18 }
  0xff   : > { %s2471_s17 = scalar_lea.hbm %s2913_s25, 1024  ;;  %s2476_s5 = scalar_lea.hbm %s3410_s1, 2048 }
 0x100   : > { %p2472_p6 = scmp.ne.s32.totalorder %s2913_s25, %s2471_s17  ;;  %p2477_p5 = scmp.lt.u32.totalorder %s2913_s25, %s3410_s1 }
 0x101   : > { %p2478_p9 = scmp.lt.u32.totalorder %s2476_s5, %s2471_s17  ;;  %p2480_p4 = scmp.lt.u32.totalorder %s2471_s17, %s2913_s25 }
 0x102   : > { %p2474_p11 = pnand %p2472_p6, %p2443_p8 }
 0x103   : > { %p2479_p10 = por %p2478_p9, %p2477_p5 }
 0x104   : > { %p2475_p0 = pneg %p2474_p11 }
 0x105   : > { %p2481_p13 = por %p2480_p4, %p2479_p10 }
 0x107   : > { %p2482_p1 = pnand %p2481_p13, %p2475_p0 }
 0x109   : > { %2485 = shalt.err (!%p2482_p1)
}
 0x10a   : > { %s2486_s22 = scalar_lea.vmem %s2948_s18, 1024  ;;  %s2601_s2 = smov [#allocation6]  }
 0x10b   : > { %p2487_p3 = scmp.ne.s32.totalorder %s2948_s18, %s2486_s22  ;;  %s2491_s13 = sshll.u32 %s2601_s2, 4  ;;  %s2492_s13 = int_to_ptr.vmem [resolvable:$false] %s2491_s13 }
 0x10c   : > { %s2493_s0 = scalar_lea.vmem %s2492_s13, 2048  ;;  %p2494_p11 = scmp.lt.s32.totalorder %s2948_s18, %s2492_s13 }
 0x10d   : > { %p2489_p2 = pnand %p2487_p3, %p2443_p8  ;;  %p2495_p5 = scmp.lt.s32.totalorder %s2493_s0, %s2486_s22 }
 0x10f   : > { %p2490_p6 = pneg %p2489_p2  ;;  %p2496_p9 = por %p2495_p5, %p2494_p11 }
 0x111   : > { %p2497_p10 = pnand %p2496_p9, %p2490_p6 }
 0x113   : > { %2500 = shalt.err (!%p2497_p10)
}
 0x114   : > { %1985 = dma.hbm_to_vmem [thread:$0]  (!%p2904_p12), %s2913_s25, 1024, %s2948_s18, %s2950_s26, %s3451_s6, %s3451_s6, %s3450_s4  }
 0x115   : > { %p3452_p8 = scmp.ne.s32.totalorder %s3435_s16, 0 }
 0x116   : > { %s2982_s7 = sand.u32 (!%p3452_p8), 1, %s2579_s10  }
 0x117   : > { %399 = sbr.rel (%p3452_p8) target bundleno = 1233 (0x4d1), region = 56  ;;  %s2985_s28 = sshll.u32 (!%p3452_p8), %s2982_s7, 6 }
 0x118   : > { %s402_s27 = scalar_lea.sflag (!%p3452_p8), [#allocation4], %s2982_s7  ;;  %s2989_s24 = scalar_lea.vmem (!%p3452_p8), [#allocation3], %s2985_s28 }
 0x11e   : > { %2546 = dma.done.wait (%p2881_p7), %s402_s27, 1024  }
 0x11f   : > { %2548 = vsyncadd (%p2881_p7), %s402_s27, 4294966272  ;;  %s410_s16 = sand.u32 1, %s2687_s15   ;;  %s2997_s4 = scalar_lea.vmem [#allocation6], %s2985_s28 }
 0x120   : > { %s411_s25 = scalar_lea.sflag [#allocation7], %s410_s16 }
 0x121   : > { %2550 = dma.done.wait (%p2881_p7), %s411_s25, 1024  }
 0x122   : > { %2552 = vsyncadd (%p2881_p7), %s411_s25, 4294966272  ;;  %p3453_p12 = scmp.eq.s32.totalorder %s2687_s15, 0 }
 0x124   : > { %2554 = dma.done.wait (%p3453_p12), [#allocation7], 16   ;;  %p3454_p0 = pmov %p3453_p12 }
 0x126   : > { %2556 = vsyncadd (%p3454_p0), [#allocation7], 4294967280  ;;  %p3455_p4 = pmov %p3454_p0 }
 0x127   : > { %p3456_p13 = pmov %p3454_p0 }
 0x128   : > { %2558 = dma.done.wait (%p3455_p4), [#allocation10], 272  }
 0x129   : > { %2560 = vsyncadd (%p3456_p13), [#allocation10], 4294967024  ;;  %p3457_p1 = pmov %p3454_p0 }
 0x12a   : > { %p3458_p3 = pmov %p3454_p0 }
 0x12b   : > { %2562 = dma.done.wait (%p3457_p1), [#allocation13], 1168  }
 0x12c   : > { %2564 = vsyncadd (%p3458_p3), [#allocation13], 4294966128  ;;  %p3459_p7 = pmov %p3454_p0 }
 0x12d   : > { %p3460_p2 = pmov %p3454_p0 }
 0x12e   : > { %2566 = dma.done.wait (%p3459_p7), [#allocation16], 80  }
 0x12f   : > { %2568 = vsyncadd (%p3460_p2), [#allocation16], 4294967216  ;;  %vm495_vm0 = vcmask 130048   ;;  %v2602_v0 = vmov 0.0|0.0   ;;  %vm2603_vm1 = vmmov 0   ;;  %v2604_v1 = vmov 0.0  }
 0x130   : > { %1908 = vmatprep.subr.bf16.mxu1 %v2602_v0  ;;  %1874 = vmatprep.mubr.msk.f32.mxu1 %vm2603_vm1, %v2604_v1  ;;  %954 = vst.msk [vmem:[#allocation2] sm:$0xff] %vm495_vm0, %v2604_v1  ;;  %957 = vst.msk [vmem:[#allocation2 + $0x10] sm:$0xff] %vm495_vm0, %v2604_v1  ;;  %v493_v2 = vld [vmem:[#allocation11] sm:$0xff]  ;;  %v494_v3 = vld [vmem:[#allocation11 + $0x8] sm:$0xff]  ;;  %vm698_vm2 = vcmask 31744   ;;  %vm955_vm4 = vcmask 123904  }
 0x131   : > { %959 = vst.msk [vmem:[#allocation2 + $0x20] sm:$0xff] %vm495_vm0, %v2604_v1  ;;  %961 = vst.msk [vmem:[#allocation2 + $0x30] sm:$0xff] %vm495_vm0, %v2604_v1  ;;  %v3043_v4 = vld [vmem:[%s2989_s24] sm:$0xff]  ;;  %v3045_v5 = vpack.c.bf16 %v494_v3, %v493_v2  ;;  %v3048_v6 = vld [vmem:[%s2989_s24 + $0x8] sm:$0xff]  ;;  %s2606_s9 = smov 16   ;;  %s2607_s6 = smov 48  }
 0x132   : > { %963 = vst.msk [vmem:[#allocation2 + $0x40] sm:$0xff] %vm495_vm0, %v2604_v1  ;;  %965 = vst.msk [vmem:[#allocation2 + $0x50] sm:$0xff] %vm495_vm0, %v2604_v1  ;;  %v3051_v7 = vld [vmem:[%s2989_s24 + $0x10] sm:$0xff]  ;;  %v3054_v8 = vld [vmem:[%s2989_s24 + $0x18] sm:$0xff]  ;;  %v496_v9 = vsel %vm495_vm0, %v3043_v4, 0.0  ;;  %v497_v10 = vsel %vm495_vm0, %v3048_v6, 0.0  ;;  %v517_v12 = vmul.f32 %v3043_v4, %v3043_v4  ;;  %v518_v13 = vmul.f32 %v3048_v6, %v3048_v6 }
 0x133   : > { %967 = vst.msk [vmem:[#allocation2 + $0x60] sm:$0xff] %vm495_vm0, %v2604_v1  ;;  %969 = vst.msk [vmem:[#allocation2 + $0x70] sm:$0xff] %vm495_vm0, %v2604_v1  ;;  %v499_v11 = vsel %vm495_vm0, %v3051_v7, 0.0  ;;  %1910 = vmatpush3.bf16.msra.mxu1 %v3045_v5  ;;  %v3068_v14 = vld [vmem:[%s2989_s24 + $0x20] sm:$0xff]  ;;  %v3071_v15 = vld [vmem:[%s2989_s24 + $0x28] sm:$0xff]  ;;  %v498_v16 = vadd.f32 %v497_v10, %v496_v9  ;;  %v501_v18 = vsel %vm495_vm0, %v3054_v8, 0.0  ;;  %v519_v19 = vmul.f32 %v3051_v7, %v3051_v7 }
 0x134   : > { %971 = vst.msk [vmem:[#allocation2 + $0x80] sm:$0xff] %vm495_vm0, %v2604_v1  ;;  %973 = vst.msk [vmem:[#allocation2 + $0x90] sm:$0xff] %vm495_vm0, %v2604_v1  ;;  %1911 = vmatprep.subr.bf16.mxu1 %v2602_v0  ;;  %v3075_v17 = vld [vmem:[%s2989_s24 + $0x30] sm:$0xff]  ;;  %v520_v20 = vmul.f32 %v3054_v8, %v3054_v8  ;;  %v521_v21 = vmul.f32 %v3068_v14, %v3068_v14  ;;  %v503_v23 = vsel %vm495_vm0, %v3068_v14, 0.0  ;;  %v525_v24 = vsel %vm495_vm0, %v517_v12, 0.0  ;;  %v3091_v27 = vld [vmem:[%s2989_s24 + $0x38] sm:$0xff] }
 0x135   : > { %v500_v22 = vadd.f32 %v499_v11, %v498_v16  ;;  %v526_v25 = vsel %vm495_vm0, %v518_v13, 0.0  ;;  %v528_v26 = vsel %vm495_vm0, %v519_v19, 0.0  ;;  %v505_v29 = vsel %vm495_vm0, %v3071_v15, 0.0  ;;  %vm1916_vm3 = vmpackc.low %vm698_vm2, %vm698_vm2  ;;  %960 = vst.msk [vmem:[#allocation2 + $0x28] sm:$0x3] %vm955_vm4, %v2604_v1  ;;  %v2203_v19 = vld [vmem:[#allocation12 + $0x8] sm:$0xff]  }
 0x136   : > { %v507_v30 = vsel %vm495_vm0, %v3075_v17, 0.0  ;;  %v527_v31 = vadd.f32 %v526_v25, %v525_v24  ;;  %v522_v32 = vmul.f32 %v3071_v15, %v3071_v15  ;;  %v530_v33 = vsel %vm495_vm0, %v520_v20, 0.0  ;;  %962 = vst.msk [vmem:[#allocation2 + $0x38] sm:$0x3] %vm955_vm4, %v2604_v1  ;;  %956 = vst.msk [vmem:[#allocation2 + $0x8] sm:$0x3] %vm955_vm4, %v2604_v1 }
 0x137   : > { %v502_v28 = vadd.f32 %v501_v18, %v500_v22  ;;  %v532_v34 = vsel %vm495_vm0, %v521_v21, 0.0  ;;  %v523_v37 = vmul.f32 %v3075_v17, %v3075_v17  ;;  %v509_v40 = vsel %vm495_vm0, %v3091_v27, 0.0  ;;  %958 = vst.msk [vmem:[#allocation2 + $0x18] sm:$0x3] %vm955_vm4, %v2604_v1  ;;  %964 = vst.msk [vmem:[#allocation2 + $0x48] sm:$0x3] %vm955_vm4, %v2604_v1 }
 0x138   : > { %v529_v36 = vadd.f32 %v528_v26, %v527_v31  ;;  %v524_v41 = vmul.f32 %v3091_v27, %v3091_v27  ;;  %v534_v42 = vsel %vm495_vm0, %v522_v32, 0.0  ;;  %966 = vst.msk [vmem:[#allocation2 + $0x58] sm:$0x3] %vm955_vm4, %v2604_v1  ;;  %968 = vst.msk [vmem:[#allocation2 + $0x68] sm:$0x3] %vm955_vm4, %v2604_v1  ;;  %v2204_v20 = vld [vmem:[#allocation12 + $0x10] sm:$0xff]   ;;  %v854_v24 = vlaneseq }
 0x139   : > { %v504_v35 = vadd.f32 %v503_v23, %v502_v28  ;;  %v536_v45 = vsel %vm495_vm0, %v523_v37, 0.0  ;;  %970 = vst.msk [vmem:[#allocation2 + $0x78] sm:$0x3] %vm955_vm4, %v2604_v1  ;;  %972 = vst.msk [vmem:[#allocation2 + $0x88] sm:$0x3] %vm955_vm4, %v2604_v1  ;;  %v2205_v23 = vld [vmem:[#allocation12 + $0x18] sm:$0xff]  }
 0x13a   : > { %v531_v39 = vadd.f32 %v530_v33, %v529_v36  ;;  %v538_v48 = vsel %vm495_vm0, %v524_v41, 0.0  ;;  %974 = vst.msk [vmem:[#allocation2 + $0x98] sm:$0x3] %vm955_vm4, %v2604_v1  ;;  %v855_v25 = vshrl.u32 %v854_v24, 7  ;;  %v491_v26 = vld [vmem:[#allocation8] sm:$0x1] }
 0x13b   : > { %v506_v38 = vadd.f32 %v505_v29, %v504_v35  ;;  %v492_v32 = vld [vmem:[#allocation9] sm:$0x1]  ;;  %vm1522_vm5 = vcmask 1043456   ;;  %s2608_s18 = smov 32   ;;  %s2609_s20 = smov 64   ;;  %vm1509_vm6 = vcmask 64512  }
 0x13c   : > { %v533_v44 = vadd.f32 %v532_v34, %v531_v39  ;;  %v856_v28 = vsub.s32 0, %v855_v25  ;;  %s2610_s26 = smov 80   ;;  %s2611_s17 = smov 96   ;;  %vm1289_vm7 = vcmask 261120   ;;  %vm1298_vm8 = vcmask 392192  }
 0x13d   : > { %v508_v43 = vadd.f32 %v507_v30, %v506_v38  ;;  %s2612_s29 = smov 112   ;;  %vm1307_vm9 = vcmask 523264   ;;  %vm1316_vm10 = vcmask 654336   ;;  %vm1325_vm11 = vcmask 785408   ;;  %s3340_s23 = scalar_lea.vmem [#allocation18], %s2985_s28 }
 0x13e   : > { %v535_v47 = vadd.f32 %v534_v42, %v533_v44  ;;  %vm1334_vm12 = vcmask 916480   ;;  %s1852_s5 = sshll.u32 %s2687_s15, 10  ;;  %s1621_s22 = sshll.u32 %s3340_s23, 4  ;;  %s3361_s22 = int_to_ptr.vmem [resolvable:$true] %s1621_s22 }
 0x13f   : > { %v510_v46 = vadd.f32 %v509_v40, %v508_v43  ;;  %s3461_s0 = sld [smem:[#allocation33_spill]]  ;;  %s1608_s15 = scalar_lea.sflag [#allocation5], %s2982_s7 }
 0x140   : > { %v537_v50 = vadd.f32 %v536_v45, %v535_v47  ;;  %s2501_s27 = scalar_lea.vmem %s3361_s22, 1024  ;;  %p3462_p11 = scmp.ne.s32.totalorder %s3446_s3, 0 }
 0x141   : > { %v511_v49 = vrot.slane %v510_v46, 4  ;;  %p2502_p6 = scmp.ne.s32.totalorder %s3361_s22, %s2501_s27  ;;  %s2613_s24 = smov [#allocation18]  }
 0x142   : > { %v539_v52 = vadd.f32 %v538_v48, %v537_v50  ;;  %s2505_s16 = sshll.u32 %s2613_s24, 4  ;;  %s2506_s16 = int_to_ptr.vmem [resolvable:$false] %s2505_s16 }
 0x143   : > { %v512_v51 = vadd.f32 %v511_v49, %v510_v46  ;;  %p2503_p5 = pnand %p2502_p6, %p3462_p11  ;;  %s2507_s25 = scalar_lea.vmem %s2506_s16, 2048 }
 0x144   : > { %v540_v54 = vrot.slane %v539_v52, 4  ;;  %p2508_p10 = scmp.lt.s32.totalorder %s3361_s22, %s2506_s16  ;;  %p2509_p8 = scmp.lt.s32.totalorder %s2507_s25, %s2501_s27 }
 0x145   : > { %v513_v53 = vrot.slane %v512_v51, 2  ;;  %s3359_s28 = scalar_lea.hbm %s3461_s0, %s1852_s5  ;;  %p2504_p9 = pneg %p2503_p5 }
 0x146   : > { %v541_v56 = vadd.f32 %v540_v54, %v539_v52  ;;  %p2510_p12 = por %p2509_p8, %p2508_p10 }
 0x147   : > { %v514_v55 = vadd.f32 %v513_v53, %v512_v51 }
 0x148   : > { %v542_v58 = vrot.slane %v541_v56, 2  ;;  %p2511_p0 = pnand %p2510_p12, %p2504_p9 }
 0x149   : > { %v515_v57 = vrot.slane %v514_v55, 1 }
 0x14a   : > { %v543_v60 = vadd.f32 %v542_v58, %v541_v56 }
 0x14b   : > { %v516_v59 = vadd.f32 %v515_v57, %v514_v55 }
 0x14c   : > { %v544_v61 = vrot.slane %v543_v60, 1 }
 0x14d   : > { %1875 = vmatmul.mubr.msk.f32.vlgmr.msra.gmra.mrb[0].mxu1 %vm495_vm0, %v516_v59 }
 0x14e   : > { %1913 = vmatpush3.bf16.msra.mxu1 %v3045_v5  ;;  %1881 = vmatprep.mubr.msk.f32.mxu1 %vm2603_vm1, %v2604_v1  ;;  %v545_v62 = vadd.f32 %v544_v61, %v543_v60 }
 0x14f   : > { %1914 = vmatprep.subr.bf16.mxu1 %v2602_v0 }
 0x151   : > { %1882 = vmatmul.mubr.msk.f32.vlgmr.msra.gmra.mrb[2].mxu1 %vm495_vm0, %v545_v62 }
 0x152   : > { %1888 = vmatprep.mubr.msk.f32.mxu1 %vm2603_vm1, %v2604_v1 }
 0x157   : > { %1917 = vmatpush3.bf16.xpose.msk.msra.mxu1 %vm1916_vm3, %v3045_v5 }
 0x158   : > { %1918 = vmatprep.subr.bf16.mxu1 %v2602_v0  ;;  %v2202_v0 = vld [vmem:[#allocation12] sm:$0xff]  }
 0x220   : > { %v615_v63 = vpop.f32.mrb[0].mxu1 }
 0x221   : > { %v619_v2 = vmul.f32 0.00390625, %v615_v63  ;;  %v1876_v3 = vpop.f32.mrb[1].mxu1 }
 0x223   : > { %1889 = vmatmul.mubr.msk.f32.vlgmr.msra.gmra.mrb[4].mxu1 %vm698_vm2, %v619_v2  ;;  %v694_v10 = vmul.f32 %v619_v2, %v619_v2 }
 0x224   : > { %v689_v9 = vpop.f32.mrb[2].mxu1  ;;  %1921 = vmatpush3.bf16.xpose.msk.msra.mxu1 %vm1916_vm3, %v3045_v5  ;;  %1895 = vmatprep.mubr.msk.f32.mxu1 %vm2603_vm1, %v2604_v1  ;;  %v2605_v5 = vmov 0   ;;  %v2206_v1 = vld [vmem:[#allocation12 + $0x20] sm:$0xff]  }
 0x225   : > { %v693_v11 = vmul.f32 0.00390625, %v689_v9  ;;  %v1883_v12 = vpop.f32.mrb[3].mxu1  ;;  %1424 = vmatprep.subr.bf16.mxu0 %v2605_v5 }
 0x226   : > { %1425 = vmatpush1.bf16.msra.mxu0 %v2202_v0 }
 0x227   : > { %v695_v13 = vsub.f32 %v693_v11, %v694_v10  ;;  %1426 = vmatprep.subr.bf16.mxu0 %v2605_v5 }
 0x229   : > { %v696_v16 = vadd.f32 1e-05, %v695_v13 }
 0x22a   : > { %1427 = vmatpush1.bf16.msra.mxu0 %v2203_v19  ;;  %v2207_v19 = vld [vmem:[#allocation12 + $0x28] sm:$0xff]  }
 0x22b   : > { %2211 = vrsqrt.f32 %v696_v16  ;;  %1428 = vmatprep.subr.bf16.mxu0 %v2605_v5 }
 0x22e   : > { %1429 = vmatpush1.bf16.msra.mxu0 %v2204_v20 }
 0x22f   : > { %1430 = vmatprep.subr.bf16.mxu0 %v2605_v5 }
 0x232   : > { %1431 = vmatpush1.bf16.msra.mxu0 %v2205_v23 }
 0x233   : > { %1432 = vmatprep.subr.bf16.mxu0 %v2605_v5 }
 0x235   : > { %v2212_v18 = vpop.eup %2211 }
 0x236   : > { %1896 = vmatmul.mubr.msk.f32.vlgmr.msra.gmra.mrb[6].mxu1 %vm698_vm2, %v2212_v18  ;;  %1433 = vmatpush1.bf16.msra.mxu0 %v2206_v1 }
 0x237   : > { %1434 = vmatprep.subr.bf16.mxu0 %v2605_v5 }
 0x23a   : > { %1435 = vmatpush1.bf16.msra.mxu0 %v2207_v19 }
 0x23b   : > { %1436 = vmatprep.subr.bf16.mxu0 %v2605_v5 }
 0x2f6   : > { %v774_v21 = vpop.f32.mrb[4].mxu1 }
 0x2f7   : > { %v1890_v22 = vpop.f32.mrb[5].mxu1 }
 0x309   : > { %v847_v29 = vpop.f32.mrb[6].mxu1 }
 0x30a   : > { %v851_v30 = vmul.f32 %v847_v29, %v491_v26  ;;  %v1897_v31 = vpop.f32.mrb[7].mxu1 }
 0x30c   : > { %v852_v33 = vmul.f32 %v851_v30, %v774_v21  ;;  %v857_v34 = vrot.slane %v851_v30, %v856_v28  ;;  %v2208_v30 = vld [vmem:[#allocation12 + $0x30] sm:$0xff]  }
 0x30d   : > { %1437 = vmatpush1.bf16.msra.mxu0 %v2208_v30 }
 0x30e   : > { %v853_v35 = vsub.f32 %v492_v32, %v852_v33  ;;  %v858_v36 = vmul.f32 %v857_v34, %v3043_v4  ;;  %v859_v37 = vmul.f32 %v857_v34, %v3048_v6  ;;  %v860_v38 = vmul.f32 %v857_v34, %v3051_v7  ;;  %v992_v32 = vld [vmem:[#allocation2 + $0x1] sm:$0xff]  ;;  %1438 = vmatprep.subr.bf16.mxu0 %v2605_v5 }
 0x30f   : > { %v861_v39 = vmul.f32 %v857_v34, %v3054_v8  ;;  %v862_v41 = vmul.f32 %v857_v34, %v3068_v14  ;;  %v863_v42 = vmul.f32 %v857_v34, %v3071_v15  ;;  %v864_v43 = vmul.f32 %v857_v34, %v3075_v17 }
 0x310   : > { %v870_v40 = vrot.slane %v853_v35, %v856_v28  ;;  %v865_v44 = vmul.f32 %v857_v34, %v3091_v27 }
 0x312   : > { %v872_v45 = vadd.f32 %v870_v40, %v858_v36  ;;  %v873_v46 = vadd.f32 %v870_v40, %v859_v37  ;;  %v874_v47 = vadd.f32 %v870_v40, %v860_v38  ;;  %v875_v48 = vadd.f32 %v870_v40, %v861_v39 }
 0x313   : > { %v876_v4 = vadd.f32 %v870_v40, %v862_v41  ;;  %v877_v49 = vadd.f32 %v870_v40, %v863_v42  ;;  %v3151_v6 = vadd.f32 %v870_v40, %v864_v43  ;;  %v3153_v7 = vadd.f32 %v870_v40, %v865_v44  ;;  %v1000_v40 = vld [vmem:[#allocation2 + $0x2] sm:$0xff] }
 0x314   : > { %v1818_v8 = vmul.f32 -1.442695, %v872_v45  ;;  %v1819_v50 = vmul.f32 -1.442695, %v873_v46  ;;  %v1820_v51 = vmul.f32 -1.442695, %v874_v47 }
 0x315   : > { %v1821_v14 = vmul.f32 -1.442695, %v875_v48  ;;  %v1822_v15 = vmul.f32 -1.442695, %v876_v4  ;;  %v1823_v17 = vmul.f32 -1.442695, %v877_v49 }
 0x316   : > { %2213 = vpow2.f32 %v1818_v8  ;;  %v1824_v27 = vmul.f32 -1.442695, %v3151_v6  ;;  %v1825_v52 = vmul.f32 -1.442695, %v3153_v7  ;;  %v1501_v8 = vld [vmem:[#allocation15] sm:$0xf] }
 0x317   : > { %2215 = vpow2.f32 %v1819_v50  ;;  %1922 = vmatprep.subr.msk.bf16.mxu1 %vm1522_vm5, %v1501_v8 }
 0x318   : > { %2217 = vpow2.f32 %v1820_v51  ;;  %v1524_v51 = vsel %vm1522_vm5, %v1501_v8, 0 }
 0x319   : > { %2219 = vpow2.f32 %v1821_v14  ;;  %v1489_v14 = vld [vmem:[%s2997_s4] sm:$0xff]  ;;  %1899 = vmatpush3.bf16.msra.mxu1 %v1524_v51 }
 0x31a   : > { %2221 = vpow2.f32 %v1822_v15  ;;  %v1490_v15 = vld [vmem:[%s2997_s4 + $0x8] sm:$0xff] }
 0x31b   : > { %2223 = vpow2.f32 %v1823_v17  ;;  %v1491_v17 = vld [vmem:[%s2997_s4 + $0x10] sm:$0xff] }
 0x31c   : > { %2225 = vpow2.f32 %v1824_v27 }
 0x31d   : > { %2227 = vpow2.f32 %v1825_v52 }
 0x320   : > { %v2214_v53 = vpop.eup %2213 }
 0x321   : > { %v2216_v54 = vpop.eup %2215  ;;  %v904_v55 = vadd.f32 1.0, %v2214_v53  ;;  %v2210_v53 = vld [vmem:[#allocation12 + $0x40] sm:$0xff]  }
 0x322   : > { %v2218_v56 = vpop.eup %2217  ;;  %v905_v57 = vadd.f32 1.0, %v2216_v54  ;;  %v1497_v54 = vpack.c.bf16 %v1490_v15, %v1489_v14 }
 0x323   : > { %v2220_v58 = vpop.eup %2219  ;;  %v906_v59 = vadd.f32 1.0, %v2218_v56  ;;  %2229 = vrcp.f32 %v904_v55  ;;  %v1492_v55 = vld [vmem:[%s2997_s4 + $0x18] sm:$0xff] }
 0x324   : > { %v2222_v60 = vpop.eup %2221  ;;  %v907_v61 = vadd.f32 1.0, %v2220_v58  ;;  %2231 = vrcp.f32 %v905_v57  ;;  %v1498_v57 = vpack.c.bf16 %v1492_v55, %v1491_v17  ;;  %1900 = vmatprep.mubr.msk.bf16.mxu1 %vm1509_vm6, %v1497_v54 }
 0x325   : > { %v2224_v62 = vpop.eup %2223  ;;  %v908_v63 = vadd.f32 1.0, %v2222_v60  ;;  %2233 = vrcp.f32 %v906_v59 }
 0x326   : > { %v2226_v2 = vpop.eup %2225  ;;  %v909_v3 = vadd.f32 1.0, %v2224_v62  ;;  %2235 = vrcp.f32 %v907_v61  ;;  %1901 = vmatmul.mubr.msk.bf16.vlgmr.msra.gmra.mrb[8].mxu1 %vm1509_vm6, %v1498_v57 }
 0x327   : > { %v2228_v9 = vpop.eup %2227  ;;  %v910_v10 = vadd.f32 1.0, %v2226_v2  ;;  %2237 = vrcp.f32 %v908_v63 }
 0x328   : > { %v911_v11 = vadd.f32 1.0, %v2228_v9  ;;  %2239 = vrcp.f32 %v909_v3 }
 0x329   : > { %2241 = vrcp.f32 %v910_v10 }
 0x32a   : > { %2243 = vrcp.f32 %v911_v11 }
 0x32d   : > { %v2230_v12 = vpop.eup %2229 }
 0x32e   : > { %v2232_v13 = vpop.eup %2231  ;;  %v928_v16 = vmul.f32 %v2230_v12, %v872_v45 }
 0x32f   : > { %v2234_v18 = vpop.eup %2233  ;;  %v929_v0 = vmul.f32 %v2232_v13, %v873_v46 }
 0x330   : > { %v2236_v20 = vpop.eup %2235  ;;  %v930_v21 = vmul.f32 %v2234_v18, %v874_v47  ;;  %976 = vst.msk [vmem:[#allocation2 + $0x11] sm:$0xff] %vm495_vm0, %v928_v16  ;;  %v1493_v18 = vld [vmem:[%s2997_s4 + $0x20] sm:$0xff] }
 0x331   : > { %v2238_v22 = vpop.eup %2237  ;;  %v931_v23 = vmul.f32 %v2236_v20, %v875_v48  ;;  %977 = vst.msk [vmem:[#allocation2 + $0x21] sm:$0xff] %vm495_vm0, %v929_v0  ;;  %v1494_v0 = vld [vmem:[%s2997_s4 + $0x28] sm:$0xff] }
 0x332   : > { %v2240_v1 = vpop.eup %2239  ;;  %v932_v24 = vmul.f32 %v2238_v22, %v876_v4  ;;  %978 = vst.msk [vmem:[#allocation2 + $0x31] sm:$0xff] %vm495_vm0, %v930_v21  ;;  %v1499_v20 = vpack.c.bf16 %v1494_v0, %v1493_v18  ;;  %v1495_v22 = vld [vmem:[%s2997_s4 + $0x30] sm:$0xff] }
 0x333   : > { %v2242_v25 = vpop.eup %2241  ;;  %v933_v26 = vmul.f32 %v2240_v1, %v877_v49  ;;  %979 = vst.msk [vmem:[#allocation2 + $0x41] sm:$0xff] %vm495_vm0, %v931_v23  ;;  %v1496_v23 = vld [vmem:[%s2997_s4 + $0x38] sm:$0xff] }
 0x334   : > { %v2244_v28 = vpop.eup %2243  ;;  %v934_v29 = vmul.f32 %v2242_v25, %v3151_v6  ;;  %980 = vst.msk [vmem:[#allocation2 + $0x51] sm:$0xff] %vm495_vm0, %v932_v24  ;;  %1904 = vmatprep.mubr.msk.bf16.mxu1 %vm1509_vm6, %v1499_v20  ;;  %v1500_v24 = vpack.c.bf16 %v1496_v23, %v1495_v22 }
 0x335   : > { %v935_v31 = vmul.f32 %v2244_v28, %v3153_v7  ;;  %981 = vst.msk [vmem:[#allocation2 + $0x61] sm:$0xff] %vm495_vm0, %v933_v26  ;;  %v2209_v7 = vld [vmem:[#allocation12 + $0x38] sm:$0xff]  }
 0x336   : > { %982 = vst.msk [vmem:[#allocation2 + $0x71] sm:$0xff] %vm495_vm0, %v934_v29  ;;  %1439 = vmatpush1.bf16.msra.mxu0 %v2209_v7  ;;  %1905 = vmatmul.mubr.msk.bf16.gmra.mrb[12].mxu1 %vm1509_vm6, %v1500_v24  ;;  %v984_v7 = vld [vmem:[#allocation2] sm:$0xff] }
 0x337   : > { %v3167_v33 = vld [vmem:[#allocation2 + $0x10] sm:$0xff]  ;;  %983 = vst.msk [vmem:[#allocation2 + $0x81] sm:$0xff] %vm495_vm0, %v935_v31  ;;  %1440 = vmatprep.subr.bf16.mxu0 %v2605_v5 }
 0x338   : > { %v993_v34 = vld [vmem:[#allocation2 + $0x11] sm:$0xff]  ;;  %v1049_v35 = vld [vmem:[#allocation2 + $0x22] sm:$0xff] }
 0x339   : > { %v3171_v36 = vld [vmem:[#allocation2 + $0x20] sm:$0xff]  ;;  %v2062_v37 = vpack.i.bf16 %v993_v34, %v992_v32  ;;  %v3173_v38 = vld [vmem:[#allocation2 + $0x32] sm:$0xff] }
 0x33a   : > { %v2072_v39 = vpack.i.bf16 %v3171_v36, %v3167_v33  ;;  %v1001_v41 = vld [vmem:[#allocation2 + $0x12] sm:$0xff]  ;;  %v1344_v42 = vpack.c.bf16 %v3173_v38, %v1049_v35  ;;  %v1017_v43 = vld [vmem:[#allocation2 + $0x21] sm:$0xff]  ;;  %1441 = vmatpush1.bf16.msra.mxu0 %v2210_v53  ;;  %v2102_v60 = vpack.i.bf16 %v3173_v38, %v1049_v35 }
 0x33b   : > { %2063 = vrot.lane.b32.xlu0 %v2062_v37, %s2606_s9  ;;  %v3180_v44 = vld [vmem:[#allocation2 + $0x42] sm:$0xff]  ;;  %v3182_v45 = vld [vmem:[#allocation2 + $0x52] sm:$0xff]  ;;  %v2067_v46 = vpack.i.bf16 %v1001_v41, %v1000_v40  ;;  %v2077_v47 = vpack.i.bf16 %v1017_v43, %v993_v34  ;;  %v2082_v50 = vpack.i.bf16 %v1049_v35, %v1001_v41 }
 0x33c   : > { %2073 = vrot.lane.b32.xlu1 %v2072_v39, %s2607_s6  ;;  %1836 = vmatprep.mubr.msk.bf16.mxu0 %vm495_vm0, %v1344_v42  ;;  %v3186_v48 = vld [vmem:[#allocation2 + $0x30] sm:$0xff]  ;;  %v3188_v4 = vld [vmem:[#allocation2 + $0x62] sm:$0xff]  ;;  %v1346_v6 = vpack.c.bf16 %v3182_v45, %v3180_v44  ;;  %v2117_v63 = vpack.i.bf16 %v3180_v44, %v3173_v38  ;;  %v2137_v11 = vpack.i.bf16 %v3182_v45, %v3180_v44 }
 0x33d   : > { %v3190_v49 = vld [vmem:[#allocation2 + $0x72] sm:$0xff]  ;;  %v2087_v27 = vpack.i.bf16 %v3186_v48, %v3171_v36  ;;  %v3209_v59 = vld [vmem:[#allocation2 + $0x40] sm:$0xff]  ;;  %v2152_v1 = vpack.i.bf16 %v3188_v4, %v3182_v45 }
 0x33e   : > { %v995_v52 = vld [vmem:[#allocation2 + $0x31] sm:$0xff]  ;;  %v1348_v56 = vpack.c.bf16 %v3190_v49, %v3188_v4  ;;  %v2107_v5 = vpack.i.bf16 %v3209_v59, %v3186_v48  ;;  %v1019_v61 = vld [vmem:[#allocation2 + $0x41] sm:$0xff]  ;;  %v2172_v30 = vpack.i.bf16 %v3190_v49, %v3188_v4 }
 0x33f   : > { %2068 = vrot.lane.b32.xlu0 %v2067_v46, %s2608_s18  ;;  %v2097_v58 = vpack.i.bf16 %v995_v52, %v1017_v43  ;;  %v2112_v62 = vpack.i.bf16 %v1019_v61, %v995_v52  ;;  %v3219_v2 = vld [vmem:[#allocation2 + $0x50] sm:$0xff]  ;;  %v3229_v12 = vld [vmem:[#allocation2 + $0x60] sm:$0xff] }
 0x340   : > { %2078 = vrot.lane.b32.xlu1 %v2077_v47, %s2609_s20  ;;  %v1044_v3 = vld [vmem:[#allocation2 + $0x51] sm:$0xff]  ;;  %v2122_v9 = vpack.i.bf16 %v3219_v2, %v3209_v59  ;;  %v1021_v13 = vld [vmem:[#allocation2 + $0x61] sm:$0xff]  ;;  %v2142_v16 = vpack.i.bf16 %v3229_v12, %v3219_v2 }
 0x341   : > { %v2127_v10 = vpack.i.bf16 %v1044_v3, %v1019_v61  ;;  %v2147_v19 = vpack.i.bf16 %v1021_v13, %v1044_v3  ;;  %v3238_v21 = vld [vmem:[#allocation2 + $0x70] sm:$0xff]  ;;  %v1015_v29 = vld [vmem:[#allocation2 + $0x80] sm:$0xff] }
 0x342   : > { %v2157_v25 = vpack.i.bf16 %v3238_v21, %v3229_v12  ;;  %v999_v26 = vld [vmem:[#allocation2 + $0x71] sm:$0xff]  ;;  %v2177_v31 = vpack.i.bf16 %v1015_v29, %v3238_v21  ;;  %v1023_v32 = vld [vmem:[#allocation2 + $0x81] sm:$0xff] }
 0x343   : > { %2083 = vrot.lane.b32.xlu0 %v2082_v50, %s2610_s26  ;;  %v2167_v28 = vpack.i.bf16 %v999_v26, %v1021_v13  ;;  %v3257_v34 = vld [vmem:[#allocation2 + $0x82] sm:$0xff]  ;;  %v2182_v35 = vpack.i.bf16 %v1023_v32, %v999_v26  ;;  %v1040_v38 = vld [vmem:[#allocation2 + $0x90] sm:$0xff] }
 0x344   : > { %2088 = vrot.lane.b32.xlu1 %v2087_v27, %s2611_s17  ;;  %v2187_v37 = vpack.i.bf16 %v3257_v34, %v3190_v49  ;;  %v1048_v39 = vld [vmem:[#allocation2 + $0x91] sm:$0xff]  ;;  %v2192_v40 = vpack.i.bf16 %v1040_v38, %v1015_v29 }
 0x345   : > { %v2197_v41 = vpack.i.bf16 %v1048_v39, %v1023_v32 }
 0x347   : > { %2093 = vrot.lane.b32.xlu0 %v2097_v58, %s2612_s29 }
 0x348   : > { %2098 = vrot.lane.b32.xlu1 %v2097_v58, %s2606_s9 }
 0x34b   : > { %2103 = vrot.lane.b32.xlu0 %v2102_v60, %s2608_s18 }
 0x34c   : > { %2108 = vrot.lane.b32.xlu1 %v2107_v5, %s2607_s6 }
 0x34f   : > { %2113 = vrot.lane.b32.xlu0 %v2112_v62, %s2609_s20 }
 0x350   : > { %2118 = vrot.lane.b32.xlu1 %v2117_v63, %s2610_s26 }
 0x353   : > { %2123 = vrot.lane.b32.xlu0 %v2122_v9, %s2611_s17 }
 0x354   : > { %2128 = vrot.lane.b32.xlu1 %v2127_v10, %s2612_s29 }
 0x357   : > { %2133 = vrot.lane.b32.xlu0 %v2127_v10, %s2606_s9 }
 0x358   : > { %2138 = vrot.lane.b32.xlu1 %v2137_v11, %s2608_s18 }
 0x35b   : > { %2143 = vrot.lane.b32.xlu0 %v2142_v16, %s2607_s6 }
 0x35c   : > { %2148 = vrot.lane.b32.xlu1 %v2147_v19, %s2609_s20 }
 0x35f   : > { %2153 = vrot.lane.b32.xlu0 %v2152_v1, %s2610_s26 }
 0x360   : > { %2158 = vrot.lane.b32.xlu1 %v2157_v25, %s2611_s17 }
 0x363   : > { %2163 = vrot.lane.b32.xlu0 %v2167_v28, %s2612_s29 }
 0x364   : > { %2168 = vrot.lane.b32.xlu1 %v2167_v28, %s2606_s9 }
 0x367   : > { %2173 = vrot.lane.b32.xlu0 %v2172_v30, %s2608_s18 }
 0x368   : > { %2178 = vrot.lane.b32.xlu1 %v2177_v31, %s2607_s6 }
 0x36b   : > { %2183 = vrot.lane.b32.xlu0 %v2182_v35, %s2609_s20 }
 0x36c   : > { %2188 = vrot.lane.b32.xlu1 %v2187_v37, %s2610_s26 }
 0x36f   : > { %2193 = vrot.lane.b32.xlu0 %v2192_v40, %s2611_s17 }
 0x370   : > { %2198 = vrot.lane.b32.xlu1 %v2197_v41, %s2612_s29 }
 0x3ad   : > { %v2064_v42 = vpop.permute.xlu0 %2063 }
 0x3ae   : > { %v2074_v43 = vpop.permute.xlu1 %2073  ;;  %v2066_v46 = vunpack.i.h.bf16 %v2064_v42  ;;  %v2065_v47 = vunpack.i.l.bf16 %v2064_v42 }
 0x3af   : > { %v2076_v15 = vunpack.i.h.bf16 %v2074_v43  ;;  %v2075_v17 = vunpack.i.l.bf16 %v2074_v43 }
 0x3b0   : > { %v1281_v27 = vsel %vm495_vm0, %v984_v7, %v2065_v47  ;;  %v1282_v52 = vsel %vm495_vm0, %v3167_v33, %v2066_v46 }
 0x3b1   : > { %v2069_v8 = vpop.permute.xlu0 %2068 }
 0x3b2   : > { %v2079_v50 = vpop.permute.xlu1 %2078  ;;  %v2071_v51 = vunpack.i.h.bf16 %v2069_v8  ;;  %v2070_v14 = vunpack.i.l.bf16 %v2069_v8 }
 0x3b3   : > { %v2081_v53 = vunpack.i.h.bf16 %v2079_v50  ;;  %v2080_v54 = vunpack.i.l.bf16 %v2079_v50 }
 0x3b4   : > { %v1290_v55 = vsel %vm1289_vm7, %v1281_v27, %v2070_v14  ;;  %v1291_v57 = vsel %vm1289_vm7, %v1282_v52, %v2071_v51 }
 0x3b5   : > { %v1299_v58 = vsel %vm1298_vm8, %v1290_v55, %v2075_v17  ;;  %v1300_v60 = vsel %vm1298_vm8, %v1291_v57, %v2076_v15  ;;  %v2084_v5 = vpop.permute.xlu0 %2083 }
 0x3b6   : > { %v2089_v61 = vpop.permute.xlu1 %2088  ;;  %v2086_v62 = vunpack.i.h.bf16 %v2084_v5  ;;  %v2085_v63 = vunpack.i.l.bf16 %v2084_v5  ;;  %v1308_v3 = vsel %vm1307_vm9, %v1299_v58, %v2080_v54  ;;  %v1309_v9 = vsel %vm1307_vm9, %v1300_v60, %v2081_v53 }
 0x3b7   : > { %v2091_v33 = vunpack.i.h.bf16 %v2089_v61  ;;  %v2090_v10 = vunpack.i.l.bf16 %v2089_v61 }
 0x3b8   : > { %v1317_v11 = vsel %vm1316_vm10, %v1308_v3, %v2085_v63  ;;  %v1318_v13 = vsel %vm1316_vm10, %v1309_v9, %v2086_v62 }
 0x3b9   : > { %v2094_v16 = vpop.permute.xlu0 %2093  ;;  %v1326_v23 = vsel %vm1325_vm11, %v1317_v11, %v2090_v10  ;;  %v1327_v1 = vsel %vm1325_vm11, %v1318_v13, %v2091_v33 }
 0x3ba   : > { %v2099_v18 = vpop.permute.xlu1 %2098  ;;  %v2096_v0 = vunpack.i.h.bf16 %v2094_v16  ;;  %v2095_v19 = vunpack.i.l.bf16 %v2094_v16 }
 0x3bb   : > { %v2101_v20 = vunpack.i.h.bf16 %v2099_v18  ;;  %v2100_v22 = vunpack.i.l.bf16 %v2099_v18 }
 0x3bc   : > { %v1335_v24 = vsel %vm1334_vm12, %v1326_v23, %v2095_v19  ;;  %v1336_v25 = vsel %vm1334_vm12, %v1327_v1, %v2096_v0 }
 0x3bd   : > { %v2104_v26 = vpop.permute.xlu0 %2103  ;;  %v1343_v28 = vpack.c.bf16 %v1336_v25, %v1335_v24  ;;  %v1284_v32 = vsel %vm495_vm0, %v3186_v48, %v2101_v20  ;;  %v1283_v35 = vsel %vm495_vm0, %v3171_v36, %v2100_v22 }
 0x3be   : > { %v2109_v29 = vpop.permute.xlu1 %2108  ;;  %v2106_v30 = vunpack.i.h.bf16 %v2104_v26  ;;  %v2105_v31 = vunpack.i.l.bf16 %v2104_v26 }
 0x3bf   : > { %v2111_v37 = vunpack.i.h.bf16 %v2109_v29  ;;  %v2110_v38 = vunpack.i.l.bf16 %v2109_v29  ;;  %1457 = vmatmul.mubr.bf16.vlgmr.msra.gmra.mrb[0].mxu0 %v1343_v28 }
 0x3c0   : > { %v1293_v39 = vsel %vm1289_vm7, %v1284_v32, %v2106_v30  ;;  %v1292_v40 = vsel %vm1289_vm7, %v1283_v35, %v2105_v31  ;;  %1837 = vmatprep.mubr.msk.bf16.mxu0 %vm495_vm0, %v1346_v6 }
 0x3c1   : > { %v2114_v41 = vpop.permute.xlu0 %2113  ;;  %v1301_v36 = vsel %vm1298_vm8, %v1292_v40, %v2110_v38  ;;  %v1302_v7 = vsel %vm1298_vm8, %v1293_v39, %v2111_v37  ;;  %v1056_v39 = vld [vmem:[#allocation2 + $0x92] sm:$0xff] }
 0x3c2   : > { %v2119_v42 = vpop.permute.xlu1 %2118  ;;  %v2116_v43 = vunpack.i.h.bf16 %v2114_v41  ;;  %v2115_v46 = vunpack.i.l.bf16 %v2114_v41 }
 0x3c3   : > { %v2121_v48 = vunpack.i.h.bf16 %v2119_v42  ;;  %v2120_v47 = vunpack.i.l.bf16 %v2119_v42 }
 0x3c4   : > { %v1310_v8 = vsel %vm1307_vm9, %v1301_v36, %v2115_v46  ;;  %v1311_v50 = vsel %vm1307_vm9, %v1302_v7, %v2116_v43  ;;  %v1350_v36 = vpack.c.bf16 %v1056_v39, %v3257_v34 }
 0x3c5   : > { %v2124_v51 = vpop.permute.xlu0 %2123  ;;  %v1319_v17 = vsel %vm1316_vm10, %v1310_v8, %v2120_v47  ;;  %v1320_v27 = vsel %vm1316_vm10, %v1311_v50, %v2121_v48 }
 0x3c6   : > { %v2129_v14 = vpop.permute.xlu1 %2128  ;;  %v2126_v15 = vunpack.i.h.bf16 %v2124_v51  ;;  %v2125_v44 = vunpack.i.l.bf16 %v2124_v51 }
 0x3c7   : > { %v2131_v45 = vunpack.i.h.bf16 %v2129_v14  ;;  %v2130_v6 = vunpack.i.l.bf16 %v2129_v14 }
 0x3c8   : > { %v1328_v52 = vsel %vm1325_vm11, %v1319_v17, %v2125_v44  ;;  %v1329_v53 = vsel %vm1325_vm11, %v1320_v27, %v2126_v15 }
 0x3c9   : > { %v2134_v54 = vpop.permute.xlu0 %2133  ;;  %v1337_v55 = vsel %vm1334_vm12, %v1328_v52, %v2130_v6  ;;  %v1338_v57 = vsel %vm1334_vm12, %v1329_v53, %v2131_v45 }
 0x3ca   : > { %v2139_v58 = vpop.permute.xlu1 %2138  ;;  %v2136_v60 = vunpack.i.h.bf16 %v2134_v54  ;;  %v2135_v5 = vunpack.i.l.bf16 %v2134_v54  ;;  %v1345_v61 = vpack.c.bf16 %v1338_v57, %v1337_v55 }
 0x3cb   : > { %v2141_v62 = vunpack.i.h.bf16 %v2139_v58  ;;  %v2140_v63 = vunpack.i.l.bf16 %v2139_v58 }
 0x3cc   : > { %v1286_v3 = vsel %vm495_vm0, %v3219_v2, %v2136_v60  ;;  %v1285_v9 = vsel %vm495_vm0, %v3209_v59, %v2135_v5  ;;  %1465 = vmatmul.mubr.bf16.gmra.mrb[4].mxu0 %v1345_v61 }
 0x3cd   : > { %v2144_v33 = vpop.permute.xlu0 %2143  ;;  %1838 = vmatprep.mubr.msk.bf16.mxu0 %vm495_vm0, %v1348_v56  ;;  %v1294_v0 = vsel %vm1289_vm7, %v1285_v9, %v2140_v63  ;;  %v1295_v19 = vsel %vm1289_vm7, %v1286_v3, %v2141_v62 }
 0x3ce   : > { %v2149_v10 = vpop.permute.xlu1 %2148  ;;  %v2146_v11 = vunpack.i.h.bf16 %v2144_v33  ;;  %v2145_v13 = vunpack.i.l.bf16 %v2144_v33 }
 0x3cf   : > { %v2151_v16 = vunpack.i.h.bf16 %v2149_v10  ;;  %v2150_v18 = vunpack.i.l.bf16 %v2149_v10 }
 0x3d0   : > { %v1303_v2 = vsel %vm1298_vm8, %v1294_v0, %v2145_v13  ;;  %v1304_v59 = vsel %vm1298_vm8, %v1295_v19, %v2146_v11 }
 0x3d1   : > { %v2154_v20 = vpop.permute.xlu0 %2153  ;;  %v1312_v56 = vsel %vm1307_vm9, %v1303_v2, %v2150_v18  ;;  %v1313_v24 = vsel %vm1307_vm9, %v1304_v59, %v2151_v16 }
 0x3d2   : > { %v2159_v22 = vpop.permute.xlu1 %2158  ;;  %v2156_v23 = vunpack.i.h.bf16 %v2154_v20  ;;  %v2155_v1 = vunpack.i.l.bf16 %v2154_v20  ;;  %v1840_v20 = vld [vmem:[#allocation17] ss:$0 sm:$0xff] }
 0x3d3   : > { %v2161_v4 = vunpack.i.h.bf16 %v2159_v22  ;;  %v2160_v49 = vunpack.i.l.bf16 %v2159_v22  ;;  %v1826_v22 = vld [vmem:[#allocation14] ss:$0 sm:$0xff] }
 0x3d4   : > { %v1321_v25 = vsel %vm1316_vm10, %v1312_v56, %v2155_v1  ;;  %v1322_v26 = vsel %vm1316_vm10, %v1313_v24, %v2156_v23 }
 0x3d5   : > { %v2164_v28 = vpop.permute.xlu0 %2163  ;;  %v1330_v37 = vsel %vm1325_vm11, %v1321_v25, %v2160_v49  ;;  %v1331_v38 = vsel %vm1325_vm11, %v1322_v26, %v2161_v4 }
 0x3d6   : > { %v2169_v29 = vpop.permute.xlu1 %2168  ;;  %v2166_v30 = vunpack.i.h.bf16 %v2164_v28  ;;  %v2165_v31 = vunpack.i.l.bf16 %v2164_v28 }
 0x3d7   : > { %v2171_v32 = vunpack.i.h.bf16 %v2169_v29  ;;  %v2170_v35 = vunpack.i.l.bf16 %v2169_v29 }
 0x3d8   : > { %v1339_v40 = vsel %vm1334_vm12, %v1330_v37, %v2165_v31  ;;  %v1340_v41 = vsel %vm1334_vm12, %v1331_v38, %v2166_v30 }
 0x3d9   : > { %v2174_v42 = vpop.permute.xlu0 %2173  ;;  %v1347_v43 = vpack.c.bf16 %v1340_v41, %v1339_v40  ;;  %v1288_v7 = vsel %vm495_vm0, %v3238_v21, %v2171_v32  ;;  %v1287_v8 = vsel %vm495_vm0, %v3229_v12, %v2170_v35 }
 0x3da   : > { %v2179_v46 = vpop.permute.xlu1 %2178  ;;  %v2176_v48 = vunpack.i.h.bf16 %v2174_v42  ;;  %v2175_v47 = vunpack.i.l.bf16 %v2174_v42 }
 0x3db   : > { %v2181_v50 = vunpack.i.h.bf16 %v2179_v46  ;;  %v2180_v51 = vunpack.i.l.bf16 %v2179_v46  ;;  %1473 = vmatmul.mubr.bf16.gmra.mrb[8].mxu0 %v1347_v43 }
 0x3dc   : > { %v1297_v14 = vsel %vm1289_vm7, %v1288_v7, %v2176_v48  ;;  %v1296_v15 = vsel %vm1289_vm7, %v1287_v8, %v2175_v47  ;;  %1839 = vmatprep.mubr.msk.bf16.mxu0 %vm495_vm0, %v1350_v36 }
 0x3dd   : > { %v2184_v44 = vpop.permute.xlu0 %2183  ;;  %v1305_v21 = vsel %vm1298_vm8, %v1296_v15, %v2180_v51  ;;  %v1306_v52 = vsel %vm1298_vm8, %v1297_v14, %v2181_v50 }
 0x3de   : > { %v2189_v45 = vpop.permute.xlu1 %2188  ;;  %v2186_v6 = vunpack.i.h.bf16 %v2184_v44  ;;  %v2185_v17 = vunpack.i.l.bf16 %v2184_v44 }
 0x3df   : > { %v2191_v34 = vunpack.i.h.bf16 %v2189_v45  ;;  %v2190_v27 = vunpack.i.l.bf16 %v2189_v45 }
 0x3e0   : > { %v1314_v12 = vsel %vm1307_vm9, %v1305_v21, %v2185_v17  ;;  %v1315_v53 = vsel %vm1307_vm9, %v1306_v52, %v2186_v6 }
 0x3e1   : > { %v2194_v54 = vpop.permute.xlu0 %2193  ;;  %v1323_v61 = vsel %vm1316_vm10, %v1314_v12, %v2190_v27  ;;  %v1324_v62 = vsel %vm1316_vm10, %v1315_v53, %v2191_v34 }
 0x3e2   : > { %v2199_v55 = vpop.permute.xlu1 %2198  ;;  %v2196_v57 = vunpack.i.h.bf16 %v2194_v54  ;;  %v2195_v58 = vunpack.i.l.bf16 %v2194_v54 }
 0x3e3   : > { %v2201_v60 = vunpack.i.h.bf16 %v2199_v55  ;;  %v2200_v5 = vunpack.i.l.bf16 %v2199_v55 }
 0x3e4   : > { %v1332_v63 = vsel %vm1325_vm11, %v1323_v61, %v2195_v58  ;;  %v1333_v3 = vsel %vm1325_vm11, %v1324_v62, %v2196_v57 }
 0x3e5   : > { %v1341_v9 = vsel %vm1334_vm12, %v1332_v63, %v2200_v5  ;;  %v1342_v33 = vsel %vm1334_vm12, %v1333_v3, %v2201_v60 }
 0x3e6   : > { %v1349_v10 = vpack.c.bf16 %v1342_v33, %v1341_v9 }
 0x3e8   : > { %1481 = vmatmul.mubr.bf16.gmra.mrb[12].mxu0 %v1349_v10 }
 0x3f9   : > { %v1902_v11 = vpop.f32.mrb[8].mxu1 }
 0x3fa   : > { %v1560_v13 = vpop.f32.mrb[9].mxu1  ;;  %v1569_v30 = vadd.f32 %v1902_v11, %v1840_v20 }
 0x3fb   : > { %v1903_v16 = vpop.f32.mrb[10].mxu1  ;;  %v1561_v23 = vadd.f32 %v1840_v20, %v1560_v13 }
 0x3fc   : > { %v1563_v18 = vpop.f32.mrb[11].mxu1  ;;  %v1572_v32 = vadd.f32 %v1903_v16, %v1840_v20 }
 0x3fd   : > { %v1564_v56 = vadd.f32 %v1840_v20, %v1563_v18 }
 0x409   : > { %v1906_v0 = vpop.f32.mrb[12].mxu1 }
 0x40a   : > { %v1576_v19 = vpop.f32.mrb[13].mxu1  ;;  %v1585_v15 = vadd.f32 %v1906_v0, %v1840_v20 }
 0x40b   : > { %v1907_v2 = vpop.f32.mrb[14].mxu1  ;;  %v1577_v43 = vadd.f32 %v1840_v20, %v1576_v19 }
 0x40c   : > { %v1579_v59 = vpop.f32.mrb[15].mxu1  ;;  %v1588_v34 = vadd.f32 %v1907_v2, %v1840_v20 }
 0x40d   : > { %v1580_v36 = vadd.f32 %v1840_v20, %v1579_v59 }
 0x492   : > { %v1458_v1 = vpop.f32.mrb[0].mxu0 }
 0x493   : > { %v1459_v4 = vadd.f32 %v1826_v22, %v1458_v1  ;;  %v1460_v49 = vpop.f32.mrb[1].mxu0 }
 0x494   : > { %v1461_v24 = vpop.f32.mrb[2].mxu0 }
 0x495   : > { %v1591_v25 = vadd.f32 %v1561_v23, %v1459_v4  ;;  %v1462_v26 = vadd.f32 %v1826_v22, %v1461_v24  ;;  %v1463_v28 = vpop.f32.mrb[3].mxu0 }
 0x497   : > { %1599 = vst.msk [vmem:[%s3340_s23] sm:$0xff] %vm495_vm0, %v1591_v25  ;;  %v1592_v29 = vadd.f32 %v1564_v56, %v1462_v26 }
 0x499   : > { %1600 = vst.msk [vmem:[%s3340_s23 + $0x8] sm:$0xff] %vm495_vm0, %v1592_v29 }
 0x49f   : > { %v1466_v31 = vpop.f32.mrb[4].mxu0 }
 0x4a0   : > { %v1467_v35 = vadd.f32 %v1826_v22, %v1466_v31  ;;  %v1468_v37 = vpop.f32.mrb[5].mxu0 }
 0x4a1   : > { %v1469_v38 = vpop.f32.mrb[6].mxu0 }
 0x4a2   : > { %v1593_v39 = vadd.f32 %v1569_v30, %v1467_v35  ;;  %v1470_v40 = vadd.f32 %v1826_v22, %v1469_v38  ;;  %v1471_v41 = vpop.f32.mrb[7].mxu0 }
 0x4a4   : > { %1601 = vst.msk [vmem:[%s3340_s23 + $0x10] sm:$0xff] %vm495_vm0, %v1593_v39  ;;  %v1594_v42 = vadd.f32 %v1572_v32, %v1470_v40 }
 0x4a6   : > { %1602 = vst.msk [vmem:[%s3340_s23 + $0x18] sm:$0xff] %vm495_vm0, %v1594_v42 }
 0x4ae   : > { %v1474_v46 = vpop.f32.mrb[8].mxu0 }
 0x4af   : > { %v1475_v48 = vadd.f32 %v1826_v22, %v1474_v46  ;;  %v1476_v47 = vpop.f32.mrb[9].mxu0 }
 0x4b0   : > { %v1477_v7 = vpop.f32.mrb[10].mxu0 }
 0x4b1   : > { %v1595_v8 = vadd.f32 %v1577_v43, %v1475_v48  ;;  %v1478_v50 = vadd.f32 %v1826_v22, %v1477_v7  ;;  %v1479_v51 = vpop.f32.mrb[11].mxu0 }
 0x4b3   : > { %1603 = vst.msk [vmem:[%s3340_s23 + $0x20] sm:$0xff] %vm495_vm0, %v1595_v8  ;;  %v1596_v14 = vadd.f32 %v1580_v36, %v1478_v50 }
 0x4b5   : > { %1604 = vst.msk [vmem:[%s3340_s23 + $0x28] sm:$0xff] %vm495_vm0, %v1596_v14 }
 0x4bb   : > { %v1482_v44 = vpop.f32.mrb[12].mxu0 }
 0x4bc   : > { %v1483_v45 = vadd.f32 %v1826_v22, %v1482_v44  ;;  %v1484_v6 = vpop.f32.mrb[13].mxu0 }
 0x4bd   : > { %v1485_v17 = vpop.f32.mrb[14].mxu0 }
 0x4be   : > { %v1597_v27 = vadd.f32 %v1585_v15, %v1483_v45  ;;  %v1486_v21 = vadd.f32 %v1826_v22, %v1485_v17  ;;  %v1487_v52 = vpop.f32.mrb[15].mxu0 }
 0x4c0   : > { %1605 = vst.msk [vmem:[%s3340_s23 + $0x30] sm:$0xff] %vm495_vm0, %v1597_v27  ;;  %v1598_v12 = vadd.f32 %v1588_v34, %v1486_v21 }
 0x4c2   : > { %1606 = vst.msk [vmem:[%s3340_s23 + $0x38] sm:$0xff] %vm495_vm0, %v1598_v12 }
 0x4c3   : > { %2514 = shalt.err (!%p2511_p0)
}
 0x4c4   : > { %s2515_s4 = scalar_lea.hbm %s3359_s28, 1024  ;;  %s2519_s18 = scalar_lea.hbm %s3461_s0, 2048 }
 0x4c5   : > { %p2516_p4 = scmp.ne.s32.totalorder %s3359_s28, %s2515_s4  ;;  %p2520_p3 = scmp.lt.u32.totalorder %s3359_s28, %s3461_s0 }
 0x4c6   : > { %p2521_p7 = scmp.lt.u32.totalorder %s2519_s18, %s2515_s4  ;;  %p2523_p6 = scmp.lt.u32.totalorder %s2515_s4, %s3359_s28 }
 0x4c7   : > { %p2517_p13 = pnand %p2516_p4, %p3462_p11 }
 0x4c8   : > { %p2522_p2 = por %p2521_p7, %p2520_p3 }
 0x4c9   : > { %p2518_p1 = pneg %p2517_p13 }
 0x4ca   : > { %p2524_p5 = por %p2523_p6, %p2522_p2 }
 0x4cc   : > { %p2525_p9 = pnand %p2524_p5, %p2518_p1 }
 0x4ce   : > { %2528 = shalt.err (!%p2525_p9)
}
 0x4cf   : > { %s2614_s17 = smov 128   ;;  %s2615_s29 = smov 8  }
 0x4d0   : > { %1955 = dma.vmem_to_hbm [thread:$0]  (%p3462_p11), %s3361_s22, 1024, %s3359_s28, %s1608_s15, %s2614_s17, %s2614_s17, %s2615_s29  }
 0x4d1 PF: > { %s1636_s23 = sand.u32 1, %s2575_s30   ;;  %p3463_p10 = scmp.ne.s32.totalorder %s3447_s19, 0 }
 0x4d2   : > { %p3464_p8 = scmp.ge.s32.totalorder %s2587_s12, 2  ;;  %s1637_s5 = scalar_lea.sflag [#allocation5], %s1636_s23 }
 0x4d4   : > { %p1987_p12 = pnand %p3464_p8, %p3463_p10 }
 0x4d6   : > { %2570 = dma.done.wait (!%p1987_p12), %s1637_s5, 1024  }
 0x4d7   : > { %2572 = vsyncadd (!%p1987_p12), %s1637_s5, 4294966272  ;;  %p28_p0 = scmp.ge.s32.totalorder %s2865_s21, 4   ;;  %s3465_s30 = smov %s2579_s10 }
 0x4d8   : > { %s3466_s10 = smov %s2583_s11  ;;  %s3467_s11 = smov %s2877_s14 }
 0x4d9   : > { %s3468_s12 = smov %s2865_s21  ;;  %30 = sbr.rel (!%p28_p0) target bundleno = 19 (0x13), region = 144 }
 0x4e0   :  { %1642 = vsyncpa [#allocation4], 1 }
 0x4e1   :  { %1644 = vsyncpa [#allocation4 + $0x1], 1 }
 0x4e2   :  { %1645 = vsyncpa [#allocation7], 1 }
 0x4e3   :  { %1647 = vsyncpa [#allocation7 + $0x1], 1 }
 0x4e4   :  { %1648 = vsyncpa [#allocation10], 1 }
 0x4e5   :  { %1649 = vsyncpa [#allocation13], 1 }
 0x4e6   :  { %1650 = vsyncpa [#allocation16], 1 }
 0x4e7   :  { %1651 = vsyncpa [#allocation5], 1 }
 0x4e8   :  { %1653 = vsyncpa [#allocation5 + $0x1], 1 }

</bundles_post_ra>
